<compile_context>
chip_gen: v5e
topology: v5e:2x2
jax: 0.10.0
libtpu: 0.0.40
codegen_flags: <defaults>
</compile_context>

<pallas_src>
import functools

import jax
import jax.numpy as jnp
import numpy as np
from jax.experimental import pallas as pl
from jax.experimental.pallas import tpu as pltpu

# ----------------------------- model config ---------------------------------
K = 32            # model dim
HEADS = 4
DEPTH = 2
SEQ_LEN = 8
NUM_TOKENS = 64
NUM_CLASSES = 8
BATCH = 2
HIDDEN = 4 * K
LN_EPS = 1e-5

# Row layout of the packed per-block "small params" tile, shape (8, 128).
_ROW_BU, _ROW_G1, _ROW_BE1, _ROW_B1, _ROW_B2, _ROW_G2, _ROW_BE2 = range(7)


def _layernorm(x, g, b):
    mu = jnp.mean(x, axis=-1, keepdims=True)
    var = jnp.mean((x - mu) ** 2, axis=-1, keepdims=True)
    return (x - mu) * jax.lax.rsqrt(var + LN_EPS) * g + b


# --------------------------- fused forward kernel ----------------------------
def fused_transformer_kernel(x_ref, wqkv_ref, wu_ref, w1_ref, w2_ref,
                             small_ref, wout_ref, bout_ref, o_ref, attn_scr):
    """Entire forward pass for the whole batch in one invocation.

    x_ref     : (B*T, K)            embedded input (token + positional)
    wqkv_ref  : (DEPTH, K, 3*H*K)   fused QKV projection weights
    wu_ref    : (DEPTH, H*K, K)     unify-heads weights
    w1_ref    : (DEPTH, K, 4K)      FF layer 1 weights
    w2_ref    : (DEPTH, 4K, K)      FF layer 2 weights
    small_ref : (DEPTH, 8, 128)     packed bu/g1/be1/b1/b2/g2/be2 rows
    wout_ref  : (K, C), bout_ref: (1, C)
    o_ref     : (B, C)              log-probabilities
    attn_scr  : (B*T, H*K) VMEM scratch for per-head attention outputs
    """
    BT = x_ref.shape[0]
    T = SEQ_LEN
    B = BT // T
    HK = HEADS * K
    scale = float(K) ** (-0.25)

    x = x_ref[...].astype(jnp.float32)                          # (B*T, K)

    for d in range(DEPTH):                                      # static unroll
        small = small_ref[d].astype(jnp.float32)                # (8, 128)
        bu  = small[_ROW_BU:_ROW_BU + 1, :K]
        g1  = small[_ROW_G1:_ROW_G1 + 1, :K]
        be1 = small[_ROW_BE1:_ROW_BE1 + 1, :K]
        b1  = small[_ROW_B1:_ROW_B1 + 1, :HIDDEN]
        b2  = small[_ROW_B2:_ROW_B2 + 1, :K]
        g2  = small[_ROW_G2:_ROW_G2 + 1, :K]
        be2 = small[_ROW_BE2:_ROW_BE2 + 1, :K]

        # Fused QKV projection: one MXU matmul for all heads and all rows.
        qkv = jnp.dot(x, wqkv_ref[d],
                      preferred_element_type=jnp.float32)       # (B*T, 3*H*K)

        # Per-(batch, head) scaled dot-product attention; head results go
        # into static lane slices of the VMEM scratch (no lane concatenate).
        for b in range(B):
            r0 = b * T
            qkv_b = qkv[r0:r0 + T, :]
            for h in range(HEADS):
                qh = qkv_b[:, h * K:(h + 1) * K] * scale
                kh = qkv_b[:, HK + h * K:HK + (h + 1) * K] * scale
                vh = qkv_b[:, 2 * HK + h * K:2 * HK + (h + 1) * K]
                logits = jnp.dot(qh, kh.T,
                                 preferred_element_type=jnp.float32)  # (T, T)
                logits = logits - jnp.max(logits, axis=-1, keepdims=True)
                p = jnp.exp(logits)
                p = p / jnp.sum(p, axis=-1, keepdims=True)
                attn_scr[r0:r0 + T, h * K:(h + 1) * K] = jnp.dot(
                    p, vh, preferred_element_type=jnp.float32)

        # Unify heads: one matmul over the lane-dense (B*T, H*K) scratch.
        attn = jnp.dot(attn_scr[...], wu_ref[d],
                       preferred_element_type=jnp.float32) + bu  # (B*T, K)

        # residual + LayerNorm 1
        h1 = _layernorm(attn + x, g1, be1)

        # feed-forward: Linear -> ReLU -> Linear
        f = jnp.dot(h1, w1_ref[d], preferred_element_type=jnp.float32) + b1
        f = jnp.maximum(f, 0.0)
        f = jnp.dot(f, w2_ref[d], preferred_element_type=jnp.float32) + b2

        # residual + LayerNorm 2
        x = _layernorm(f + h1, g2, be2)

    # mean-pool over time (per batch element), classifier, log_softmax
    pooled = jnp.concatenate(
        [jnp.mean(x[b * T:(b + 1) * T, :], axis=0, keepdims=True)
         for b in range(B)], axis=0)                             # (B, K)
    logits = jnp.dot(pooled, wout_ref[...],
                     preferred_element_type=jnp.float32) + bout_ref[...]
    logits = logits - jnp.max(logits, axis=-1, keepdims=True)
    lse = jnp.log(jnp.sum(jnp.exp(logits), axis=-1, keepdims=True))
    o_ref[...] = (logits - lse).astype(o_ref.dtype)


# ----------------------------- full forward ---------------------------------
@jax.jit
def transformer_forward(token_ids, packed):
    """token_ids: (b, t) int32 -> (b, num_classes) log-probs."""
    b, t = token_ids.shape
    # Embedding gathers stay in the wrapper (glue); everything else is fused.
    tokens = jnp.take(packed["token_emb"], token_ids, axis=0)    # (b, t, K)
    x = (tokens + packed["pos_emb"][:t][None, :, :]).reshape(b * t, K)

    vmem = pltpu.MemorySpace.VMEM
    return pl.pallas_call(
        fused_transformer_kernel,
        out_shape=jax.ShapeDtypeStruct((b, NUM_CLASSES), jnp.float32),
        in_specs=[pl.BlockSpec(memory_space=vmem)] * 8,
        out_specs=pl.BlockSpec(memory_space=vmem),
        scratch_shapes=[pltpu.VMEM((b * t, HEADS * K), jnp.float32)],
    )(x, packed["wqkv"], packed["wu"], packed["w1"], packed["w2"],
      packed["small"], packed["w_out"], packed["b_out"])


# ------------------------- pure-JAX reference -------------------------------
def _block_ref(x, p):
    bsz, t, kdim = x.shape
    h = p["wq"].shape[1] // kdim
    scale = kdim ** 0.25

    def proj(w):
        y = jnp.einsum("btk,kd->btd", x, w).reshape(bsz, t, h, kdim)
        return jnp.transpose(y, (0, 2, 1, 3))                    # (b, h, t, k)

    q, kk, v = proj(p["wq"]) / scale, proj(p["wk"]) / scale, proj(p["wv"])
    w = jnp.einsum("bhtk,bhsk->bhts", q, kk)
    w = jax.nn.softmax(w, axis=-1)
    out = jnp.einsum("bhts,bhsk->bhtk", w, v)
    out = jnp.transpose(out, (0, 2, 1, 3)).reshape(bsz, t, h * kdim)
    attn = out @ p["wu"] + p["bu"][0]
    x1 = _layernorm(attn + x, p["g1"][0], p["be1"][0])
    f = jax.nn.relu(x1 @ p["w1"] + p["b1"][0]) @ p["w2"] + p["b2"][0]
    return _layernorm(f + x1, p["g2"][0], p["be2"][0])


def transformer_ref(token_ids, params):
    tokens = jnp.take(params["token_emb"], token_ids, axis=0)
    x = tokens + params["pos_emb"][: token_ids.shape[1]][None]
    for blk in params["blocks"]:
        x = _block_ref(x, blk)
    logits = jnp.mean(x, axis=1) @ params["w_out"] + params["b_out"][0]
    return jax.nn.log_softmax(logits, axis=1)


# ------------------------------ param init ----------------------------------
def init_params(key):
    ks = jax.random.split(key, 4 + DEPTH)
    params = {
        "token_emb": 0.1 * jax.random.normal(ks[0], (NUM_TOKENS, K), jnp.float32),
        "pos_emb": 0.1 * jax.random.normal(ks[1], (SEQ_LEN, K), jnp.float32),
        "w_out": 0.05 * jax.random.normal(ks[2], (K, NUM_CLASSES), jnp.float32),
        "b_out": jnp.zeros((1, NUM_CLASSES), jnp.float32),
        "blocks": [],
    }
    for d in range(DEPTH):
        bks = jax.random.split(ks[4 + d], 8)
        blk = {
            "wq": 0.05 * jax.random.normal(bks[0], (K, HEADS * K), jnp.float32),
            "wk": 0.05 * jax.random.normal(bks[1], (K, HEADS * K), jnp.float32),
            "wv": 0.05 * jax.random.normal(bks[2], (K, HEADS * K), jnp.float32),
            "wu": 0.05 * jax.random.normal(bks[3], (HEADS * K, K), jnp.float32),
            "bu": 0.01 * jax.random.normal(bks[4], (1, K), jnp.float32),
            "g1": jnp.ones((1, K), jnp.float32),
            "be1": jnp.zeros((1, K), jnp.float32),
            "w1": 0.05 * jax.random.normal(bks[5], (K, HIDDEN), jnp.float32),
            "b1": 0.01 * jax.random.normal(bks[6], (1, HIDDEN), jnp.float32),
            "w2": 0.05 * jax.random.normal(bks[7], (HIDDEN, K), jnp.float32),
            "b2": jnp.zeros((1, K), jnp.float32),
            "g2": jnp.ones((1, K), jnp.float32),
            "be2": jnp.zeros((1, K), jnp.float32),
        }
        params["blocks"].append(blk)
    return params


def pack_params(params):
    """Stack per-block weights on a leading DEPTH axis and pack small params
    into one lane-dense (8, 128) tile per block."""
    wqkv, wu, w1, w2, small = [], [], [], [], []
    for blk in params["blocks"]:
        wqkv.append(jnp.concatenate([blk["wq"], blk["wk"], blk["wv"]], axis=1))
        wu.append(blk["wu"])
        w1.append(blk["w1"])
        w2.append(blk["w2"])
        tile = jnp.zeros((8, 128), jnp.float32)
        tile = tile.at[_ROW_BU, :K].set(blk["bu"][0])
        tile = tile.at[_ROW_G1, :K].set(blk["g1"][0])
        tile = tile.at[_ROW_BE1, :K].set(blk["be1"][0])
        tile = tile.at[_ROW_B1, :HIDDEN].set(blk["b1"][0])
        tile = tile.at[_ROW_B2, :K].set(blk["b2"][0])
        tile = tile.at[_ROW_G2, :K].set(blk["g2"][0])
        tile = tile.at[_ROW_BE2, :K].set(blk["be2"][0])
        small.append(tile)
    return {
        "token_emb": params["token_emb"],
        "pos_emb": params["pos_emb"],
        "wqkv": jnp.stack(wqkv),       # (DEPTH, K, 3*H*K)
        "wu": jnp.stack(wu),           # (DEPTH, H*K, K)
        "w1": jnp.stack(w1),           # (DEPTH, K, 4K)
        "w2": jnp.stack(w2),           # (DEPTH, 4K, K)
        "small": jnp.stack(small),     # (DEPTH, 8, 128)
        "w_out": params["w_out"],      # (K, C)
        "b_out": params["b_out"],      # (1, C)
    }


# --------------------------------- main --------------------------------------
if __name__ == "__main__":
    key = jax.random.PRNGKey(0)
    pkey, xkey = jax.random.split(key)
    params = init_params(pkey)
    packed = pack_params(params)
    token_ids = jax.random.randint(xkey, (BATCH, SEQ_LEN), 0, NUM_TOKENS, jnp.int32)

    out = jax.block_until_ready(transformer_forward(token_ids, packed))
    ref = jax.block_until_ready(transformer_ref(token_ids, params))
    np.testing.assert_allclose(np.asarray(out), np.asarray(ref), atol=1e-4, rtol=1e-4)
    assert out.shape == (BATCH, NUM_CLASSES)

    print("KERNEL_OK")
</pallas_src>

<mosaic_0001>
module attributes {stable_mosaic.version = 11 : i64} {
  func.func @fused_transformer_kernel(%arg0: memref<16x32xf32, #tpu.memory_space<vmem>>, %arg1: memref<2x32x384xf32, #tpu.memory_space<vmem>>, %arg2: memref<2x128x32xf32, #tpu.memory_space<vmem>>, %arg3: memref<2x32x128xf32, #tpu.memory_space<vmem>>, %arg4: memref<2x128x32xf32, #tpu.memory_space<vmem>>, %arg5: memref<2x8x128xf32, #tpu.memory_space<vmem>>, %arg6: memref<32x8xf32, #tpu.memory_space<vmem>>, %arg7: memref<1x8xf32, #tpu.memory_space<vmem>>, %arg8: memref<2x8xf32, #tpu.memory_space<vmem>>, %arg9: memref<16x128xf32, #tpu.memory_space<vmem>>) attributes {dimension_semantics = [], scalar_prefetch = 0 : i64, scratch_operands = 1 : i64, tpu.core_type = #tpu.core_type<tc>} {
    %c0 = arith.constant 0 : index
    %c0_0 = arith.constant 0 : index
    %0 = vector.load %arg0[%c0, %c0_0] : memref<16x32xf32, #tpu.memory_space<vmem>>, vector<16x32xf32>
    %c0_1 = arith.constant 0 : index
    %c0_2 = arith.constant 0 : index
    %c0_3 = arith.constant 0 : index
    %1 = vector.load %arg5[%c0_1, %c0_2, %c0_3] : memref<2x8x128xf32, #tpu.memory_space<vmem>>, vector<1x8x128xf32>
    %2 = vector.shape_cast %1 : vector<1x8x128xf32> to vector<8x128xf32>
    %3 = vector.extract_strided_slice %2 {offsets = [0, 0], sizes = [1, 32], strides = [1, 1]} : vector<8x128xf32> to vector<1x32xf32>
    %4 = vector.extract_strided_slice %2 {offsets = [1, 0], sizes = [1, 32], strides = [1, 1]} : vector<8x128xf32> to vector<1x32xf32>
    %5 = vector.extract_strided_slice %2 {offsets = [2, 0], sizes = [1, 32], strides = [1, 1]} : vector<8x128xf32> to vector<1x32xf32>
    %6 = vector.extract_strided_slice %2 {offsets = [3, 0], sizes = [1, 128], strides = [1, 1]} : vector<8x128xf32> to vector<1x128xf32>
    %7 = vector.extract_strided_slice %2 {offsets = [4, 0], sizes = [1, 32], strides = [1, 1]} : vector<8x128xf32> to vector<1x32xf32>
    %8 = vector.extract_strided_slice %2 {offsets = [5, 0], sizes = [1, 32], strides = [1, 1]} : vector<8x128xf32> to vector<1x32xf32>
    %9 = vector.extract_strided_slice %2 {offsets = [6, 0], sizes = [1, 32], strides = [1, 1]} : vector<8x128xf32> to vector<1x32xf32>
    %c0_4 = arith.constant 0 : index
    %c0_5 = arith.constant 0 : index
    %c0_6 = arith.constant 0 : index
    %10 = vector.load %arg1[%c0_4, %c0_5, %c0_6] : memref<2x32x384xf32, #tpu.memory_space<vmem>>, vector<1x32x384xf32>
    %11 = vector.shape_cast %10 : vector<1x32x384xf32> to vector<32x384xf32>
    %cst = arith.constant dense<0.000000e+00> : vector<16x384xf32>
    %12 = tpu.matmul %0, %11, %cst {dimension_numbers = #tpu.dot_dimension_numbers<[1], [0], [0], [1], [0, 0, 1, 1], [], []>} : vector<16x32xf32>, vector<32x384xf32>, vector<16x384xf32> -> vector<16x384xf32>
    %13 = vector.extract_strided_slice %12 {offsets = [0, 0], sizes = [8, 384], strides = [1, 1]} : vector<16x384xf32> to vector<8x384xf32>
    %14 = vector.extract_strided_slice %13 {offsets = [0, 0], sizes = [8, 32], strides = [1, 1]} : vector<8x384xf32> to vector<8x32xf32>
    %cst_7 = arith.constant 0.420448214 : f32
    %15 = vector.broadcast %cst_7 : f32 to vector<8x32xf32>
    %16 = arith.mulf %14, %15 : vector<8x32xf32>
    %17 = vector.extract_strided_slice %13 {offsets = [0, 128], sizes = [8, 32], strides = [1, 1]} : vector<8x384xf32> to vector<8x32xf32>
    %cst_8 = arith.constant 0.420448214 : f32
    %18 = vector.broadcast %cst_8 : f32 to vector<8x32xf32>
    %19 = arith.mulf %17, %18 : vector<8x32xf32>
    %20 = vector.extract_strided_slice %13 {offsets = [0, 256], sizes = [8, 32], strides = [1, 1]} : vector<8x384xf32> to vector<8x32xf32>
    %21 = tpu.transpose %19, [1, 0] : vector<8x32xf32> -> vector<32x8xf32>
    %cst_9 = arith.constant dense<0.000000e+00> : vector<8x8xf32>
    %22 = tpu.matmul %16, %21, %cst_9 {dimension_numbers = #tpu.dot_dimension_numbers<[1], [0], [0], [1], [0, 0, 1, 1], [], []>} : vector<8x32xf32>, vector<32x8xf32>, vector<8x8xf32> -> vector<8x8xf32>
    %cst_10 = arith.constant dense<0xFF800000> : vector<8xf32>
    %23 = vector.multi_reduction <maximumf>, %22, %cst_10 [1] : vector<8x8xf32> to vector<8xf32>
    %24 = vector.shape_cast %23 : vector<8xf32> to vector<8x1xf32>
    %25 = vector.broadcast %24 : vector<8x1xf32> to vector<8x8xf32>
    %26 = arith.subf %22, %25 : vector<8x8xf32>
    %27 = math.exp %26 : vector<8x8xf32>
    %cst_11 = arith.constant dense<0.000000e+00> : vector<8xf32>
    %28 = vector.multi_reduction <add>, %27, %cst_11 [1] : vector<8x8xf32> to vector<8xf32>
    %29 = vector.shape_cast %28 : vector<8xf32> to vector<8x1xf32>
    %30 = vector.broadcast %29 : vector<8x1xf32> to vector<8x8xf32>
    %31 = arith.divf %27, %30 : vector<8x8xf32>
    %cst_12 = arith.constant dense<0.000000e+00> : vector<8x32xf32>
    %32 = tpu.matmul %31, %20, %cst_12 {dimension_numbers = #tpu.dot_dimension_numbers<[1], [0], [0], [1], [0, 0, 1, 1], [], []>} : vector<8x8xf32>, vector<8x32xf32>, vector<8x32xf32> -> vector<8x32xf32>
    %c0_13 = arith.constant 0 : index
    %c0_14 = arith.constant 0 : index
    %33 = vector.load %arg9[%c0_13, %c0_14] : memref<16x128xf32, #tpu.memory_space<vmem>>, vector<8x32xf32>
    tpu.vector_store %arg9[%c0_13, %c0_14], %32 {strides = array<i32>} : memref<16x128xf32, #tpu.memory_space<vmem>>, vector<8x32xf32>,
    %34 = vector.extract_strided_slice %13 {offsets = [0, 32], sizes = [8, 32], strides = [1, 1]} : vector<8x384xf32> to vector<8x32xf32>
    %cst_15 = arith.constant 0.420448214 : f32
    %35 = vector.broadcast %cst_15 : f32 to vector<8x32xf32>
    %36 = arith.mulf %34, %35 : vector<8x32xf32>
    %37 = vector.extract_strided_slice %13 {offsets = [0, 160], sizes = [8, 32], strides = [1, 1]} : vector<8x384xf32> to vector<8x32xf32>
    %cst_16 = arith.constant 0.420448214 : f32
    %38 = vector.broadcast %cst_16 : f32 to vector<8x32xf32>
    %39 = arith.mulf %37, %38 : vector<8x32xf32>
    %40 = vector.extract_strided_slice %13 {offsets = [0, 288], sizes = [8, 32], strides = [1, 1]} : vector<8x384xf32> to vector<8x32xf32>
    %41 = tpu.transpose %39, [1, 0] : vector<8x32xf32> -> vector<32x8xf32>
    %cst_17 = arith.constant dense<0.000000e+00> : vector<8x8xf32>
    %42 = tpu.matmul %36, %41, %cst_17 {dimension_numbers = #tpu.dot_dimension_numbers<[1], [0], [0], [1], [0, 0, 1, 1], [], []>} : vector<8x32xf32>, vector<32x8xf32>, vector<8x8xf32> -> vector<8x8xf32>
    %cst_18 = arith.constant dense<0xFF800000> : vector<8xf32>
    %43 = vector.multi_reduction <maximumf>, %42, %cst_18 [1] : vector<8x8xf32> to vector<8xf32>
    %44 = vector.shape_cast %43 : vector<8xf32> to vector<8x1xf32>
    %45 = vector.broadcast %44 : vector<8x1xf32> to vector<8x8xf32>
    %46 = arith.subf %42, %45 : vector<8x8xf32>
    %47 = math.exp %46 : vector<8x8xf32>
    %cst_19 = arith.constant dense<0.000000e+00> : vector<8xf32>
    %48 = vector.multi_reduction <add>, %47, %cst_19 [1] : vector<8x8xf32> to vector<8xf32>
    %49 = vector.shape_cast %48 : vector<8xf32> to vector<8x1xf32>
    %50 = vector.broadcast %49 : vector<8x1xf32> to vector<8x8xf32>
    %51 = arith.divf %47, %50 : vector<8x8xf32>
    %cst_20 = arith.constant dense<0.000000e+00> : vector<8x32xf32>
    %52 = tpu.matmul %51, %40, %cst_20 {dimension_numbers = #tpu.dot_dimension_numbers<[1], [0], [0], [1], [0, 0, 1, 1], [], []>} : vector<8x8xf32>, vector<8x32xf32>, vector<8x32xf32> -> vector<8x32xf32>
    %c0_21 = arith.constant 0 : index
    %c32 = arith.constant 32 : index
    %53 = vector.load %arg9[%c0_21, %c32] : memref<16x128xf32, #tpu.memory_space<vmem>>, vector<8x32xf32>
    tpu.vector_store %arg9[%c0_21, %c32], %52 {strides = array<i32>} : memref<16x128xf32, #tpu.memory_space<vmem>>, vector<8x32xf32>,
    %54 = vector.extract_strided_slice %13 {offsets = [0, 64], sizes = [8, 32], strides = [1, 1]} : vector<8x384xf32> to vector<8x32xf32>
    %cst_22 = arith.constant 0.420448214 : f32
    %55 = vector.broadcast %cst_22 : f32 to vector<8x32xf32>
    %56 = arith.mulf %54, %55 : vector<8x32xf32>
    %57 = vector.extract_strided_slice %13 {offsets = [0, 192], sizes = [8, 32], strides = [1, 1]} : vector<8x384xf32> to vector<8x32xf32>
    %cst_23 = arith.constant 0.420448214 : f32
    %58 = vector.broadcast %cst_23 : f32 to vector<8x32xf32>
    %59 = arith.mulf %57, %58 : vector<8x32xf32>
    %60 = vector.extract_strided_slice %13 {offsets = [0, 320], sizes = [8, 32], strides = [1, 1]} : vector<8x384xf32> to vector<8x32xf32>
    %61 = tpu.transpose %59, [1, 0] : vector<8x32xf32> -> vector<32x8xf32>
    %cst_24 = arith.constant dense<0.000000e+00> : vector<8x8xf32>
    %62 = tpu.matmul %56, %61, %cst_24 {dimension_numbers = #tpu.dot_dimension_numbers<[1], [0], [0], [1], [0, 0, 1, 1], [], []>} : vector<8x32xf32>, vector<32x8xf32>, vector<8x8xf32> -> vector<8x8xf32>
    %cst_25 = arith.constant dense<0xFF800000> : vector<8xf32>
    %63 = vector.multi_reduction <maximumf>, %62, %cst_25 [1] : vector<8x8xf32> to vector<8xf32>
    %64 = vector.shape_cast %63 : vector<8xf32> to vector<8x1xf32>
    %65 = vector.broadcast %64 : vector<8x1xf32> to vector<8x8xf32>
    %66 = arith.subf %62, %65 : vector<8x8xf32>
    %67 = math.exp %66 : vector<8x8xf32>
    %cst_26 = arith.constant dense<0.000000e+00> : vector<8xf32>
    %68 = vector.multi_reduction <add>, %67, %cst_26 [1] : vector<8x8xf32> to vector<8xf32>
    %69 = vector.shape_cast %68 : vector<8xf32> to vector<8x1xf32>
    %70 = vector.broadcast %69 : vector<8x1xf32> to vector<8x8xf32>
    %71 = arith.divf %67, %70 : vector<8x8xf32>
    %cst_27 = arith.constant dense<0.000000e+00> : vector<8x32xf32>
    %72 = tpu.matmul %71, %60, %cst_27 {dimension_numbers = #tpu.dot_dimension_numbers<[1], [0], [0], [1], [0, 0, 1, 1], [], []>} : vector<8x8xf32>, vector<8x32xf32>, vector<8x32xf32> -> vector<8x32xf32>
    %c0_28 = arith.constant 0 : index
    %c64 = arith.constant 64 : index
    %73 = vector.load %arg9[%c0_28, %c64] : memref<16x128xf32, #tpu.memory_space<vmem>>, vector<8x32xf32>
    tpu.vector_store %arg9[%c0_28, %c64], %72 {strides = array<i32>} : memref<16x128xf32, #tpu.memory_space<vmem>>, vector<8x32xf32>,
    %74 = vector.extract_strided_slice %13 {offsets = [0, 96], sizes = [8, 32], strides = [1, 1]} : vector<8x384xf32> to vector<8x32xf32>
    %cst_29 = arith.constant 0.420448214 : f32
    %75 = vector.broadcast %cst_29 : f32 to vector<8x32xf32>
    %76 = arith.mulf %74, %75 : vector<8x32xf32>
    %77 = vector.extract_strided_slice %13 {offsets = [0, 224], sizes = [8, 32], strides = [1, 1]} : vector<8x384xf32> to vector<8x32xf32>
    %cst_30 = arith.constant 0.420448214 : f32
    %78 = vector.broadcast %cst_30 : f32 to vector<8x32xf32>
    %79 = arith.mulf %77, %78 : vector<8x32xf32>
    %80 = vector.extract_strided_slice %13 {offsets = [0, 352], sizes = [8, 32], strides = [1, 1]} : vector<8x384xf32> to vector<8x32xf32>
    %81 = tpu.transpose %79, [1, 0] : vector<8x32xf32> -> vector<32x8xf32>
    %cst_31 = arith.constant dense<0.000000e+00> : vector<8x8xf32>
    %82 = tpu.matmul %76, %81, %cst_31 {dimension_numbers = #tpu.dot_dimension_numbers<[1], [0], [0], [1], [0, 0, 1, 1], [], []>} : vector<8x32xf32>, vector<32x8xf32>, vector<8x8xf32> -> vector<8x8xf32>
    %cst_32 = arith.constant dense<0xFF800000> : vector<8xf32>
    %83 = vector.multi_reduction <maximumf>, %82, %cst_32 [1] : vector<8x8xf32> to vector<8xf32>
    %84 = vector.shape_cast %83 : vector<8xf32> to vector<8x1xf32>
    %85 = vector.broadcast %84 : vector<8x1xf32> to vector<8x8xf32>
    %86 = arith.subf %82, %85 : vector<8x8xf32>
    %87 = math.exp %86 : vector<8x8xf32>
    %cst_33 = arith.constant dense<0.000000e+00> : vector<8xf32>
    %88 = vector.multi_reduction <add>, %87, %cst_33 [1] : vector<8x8xf32> to vector<8xf32>
    %89 = vector.shape_cast %88 : vector<8xf32> to vector<8x1xf32>
    %90 = vector.broadcast %89 : vector<8x1xf32> to vector<8x8xf32>
    %91 = arith.divf %87, %90 : vector<8x8xf32>
    %cst_34 = arith.constant dense<0.000000e+00> : vector<8x32xf32>
    %92 = tpu.matmul %91, %80, %cst_34 {dimension_numbers = #tpu.dot_dimension_numbers<[1], [0], [0], [1], [0, 0, 1, 1], [], []>} : vector<8x8xf32>, vector<8x32xf32>, vector<8x32xf32> -> vector<8x32xf32>
    %c0_35 = arith.constant 0 : index
    %c96 = arith.constant 96 : index
    %93 = vector.load %arg9[%c0_35, %c96] : memref<16x128xf32, #tpu.memory_space<vmem>>, vector<8x32xf32>
    tpu.vector_store %arg9[%c0_35, %c96], %92 {strides = array<i32>} : memref<16x128xf32, #tpu.memory_space<vmem>>, vector<8x32xf32>,
    %94 = vector.extract_strided_slice %12 {offsets = [8, 0], sizes = [8, 384], strides = [1, 1]} : vector<16x384xf32> to vector<8x384xf32>
    %95 = vector.extract_strided_slice %94 {offsets = [0, 0], sizes = [8, 32], strides = [1, 1]} : vector<8x384xf32> to vector<8x32xf32>
    %cst_36 = arith.constant 0.420448214 : f32
    %96 = vector.broadcast %cst_36 : f32 to vector<8x32xf32>
    %97 = arith.mulf %95, %96 : vector<8x32xf32>
    %98 = vector.extract_strided_slice %94 {offsets = [0, 128], sizes = [8, 32], strides = [1, 1]} : vector<8x384xf32> to vector<8x32xf32>
    %cst_37 = arith.constant 0.420448214 : f32
    %99 = vector.broadcast %cst_37 : f32 to vector<8x32xf32>
    %100 = arith.mulf %98, %99 : vector<8x32xf32>
    %101 = vector.extract_strided_slice %94 {offsets = [0, 256], sizes = [8, 32], strides = [1, 1]} : vector<8x384xf32> to vector<8x32xf32>
    %102 = tpu.transpose %100, [1, 0] : vector<8x32xf32> -> vector<32x8xf32>
    %cst_38 = arith.constant dense<0.000000e+00> : vector<8x8xf32>
    %103 = tpu.matmul %97, %102, %cst_38 {dimension_numbers = #tpu.dot_dimension_numbers<[1], [0], [0], [1], [0, 0, 1, 1], [], []>} : vector<8x32xf32>, vector<32x8xf32>, vector<8x8xf32> -> vector<8x8xf32>
    %cst_39 = arith.constant dense<0xFF800000> : vector<8xf32>
    %104 = vector.multi_reduction <maximumf>, %103, %cst_39 [1] : vector<8x8xf32> to vector<8xf32>
    %105 = vector.shape_cast %104 : vector<8xf32> to vector<8x1xf32>
    %106 = vector.broadcast %105 : vector<8x1xf32> to vector<8x8xf32>
    %107 = arith.subf %103, %106 : vector<8x8xf32>
    %108 = math.exp %107 : vector<8x8xf32>
    %cst_40 = arith.constant dense<0.000000e+00> : vector<8xf32>
    %109 = vector.multi_reduction <add>, %108, %cst_40 [1] : vector<8x8xf32> to vector<8xf32>
    %110 = vector.shape_cast %109 : vector<8xf32> to vector<8x1xf32>
    %111 = vector.broadcast %110 : vector<8x1xf32> to vector<8x8xf32>
    %112 = arith.divf %108, %111 : vector<8x8xf32>
    %cst_41 = arith.constant dense<0.000000e+00> : vector<8x32xf32>
    %113 = tpu.matmul %112, %101, %cst_41 {dimension_numbers = #tpu.dot_dimension_numbers<[1], [0], [0], [1], [0, 0, 1, 1], [], []>} : vector<8x8xf32>, vector<8x32xf32>, vector<8x32xf32> -> vector<8x32xf32>
    %c8 = arith.constant 8 : index
    %c0_42 = arith.constant 0 : index
    %114 = vector.load %arg9[%c8, %c0_42] : memref<16x128xf32, #tpu.memory_space<vmem>>, vector<8x32xf32>
    tpu.vector_store %arg9[%c8, %c0_42], %113 {strides = array<i32>} : memref<16x128xf32, #tpu.memory_space<vmem>>, vector<8x32xf32>,
    %115 = vector.extract_strided_slice %94 {offsets = [0, 32], sizes = [8, 32], strides = [1, 1]} : vector<8x384xf32> to vector<8x32xf32>
    %cst_43 = arith.constant 0.420448214 : f32
    %116 = vector.broadcast %cst_43 : f32 to vector<8x32xf32>
    %117 = arith.mulf %115, %116 : vector<8x32xf32>
    %118 = vector.extract_strided_slice %94 {offsets = [0, 160], sizes = [8, 32], strides = [1, 1]} : vector<8x384xf32> to vector<8x32xf32>
    %cst_44 = arith.constant 0.420448214 : f32
    %119 = vector.broadcast %cst_44 : f32 to vector<8x32xf32>
    %120 = arith.mulf %118, %119 : vector<8x32xf32>
    %121 = vector.extract_strided_slice %94 {offsets = [0, 288], sizes = [8, 32], strides = [1, 1]} : vector<8x384xf32> to vector<8x32xf32>
    %122 = tpu.transpose %120, [1, 0] : vector<8x32xf32> -> vector<32x8xf32>
    %cst_45 = arith.constant dense<0.000000e+00> : vector<8x8xf32>
    %123 = tpu.matmul %117, %122, %cst_45 {dimension_numbers = #tpu.dot_dimension_numbers<[1], [0], [0], [1], [0, 0, 1, 1], [], []>} : vector<8x32xf32>, vector<32x8xf32>, vector<8x8xf32> -> vector<8x8xf32>
    %cst_46 = arith.constant dense<0xFF800000> : vector<8xf32>
    %124 = vector.multi_reduction <maximumf>, %123, %cst_46 [1] : vector<8x8xf32> to vector<8xf32>
    %125 = vector.shape_cast %124 : vector<8xf32> to vector<8x1xf32>
    %126 = vector.broadcast %125 : vector<8x1xf32> to vector<8x8xf32>
    %127 = arith.subf %123, %126 : vector<8x8xf32>
    %128 = math.exp %127 : vector<8x8xf32>
    %cst_47 = arith.constant dense<0.000000e+00> : vector<8xf32>
    %129 = vector.multi_reduction <add>, %128, %cst_47 [1] : vector<8x8xf32> to vector<8xf32>
    %130 = vector.shape_cast %129 : vector<8xf32> to vector<8x1xf32>
    %131 = vector.broadcast %130 : vector<8x1xf32> to vector<8x8xf32>
    %132 = arith.divf %128, %131 : vector<8x8xf32>
    %cst_48 = arith.constant dense<0.000000e+00> : vector<8x32xf32>
    %133 = tpu.matmul %132, %121, %cst_48 {dimension_numbers = #tpu.dot_dimension_numbers<[1], [0], [0], [1], [0, 0, 1, 1], [], []>} : vector<8x8xf32>, vector<8x32xf32>, vector<8x32xf32> -> vector<8x32xf32>
    %c8_49 = arith.constant 8 : index
    %c32_50 = arith.constant 32 : index
    %134 = vector.load %arg9[%c8_49, %c32_50] : memref<16x128xf32, #tpu.memory_space<vmem>>, vector<8x32xf32>
    tpu.vector_store %arg9[%c8_49, %c32_50], %133 {strides = array<i32>} : memref<16x128xf32, #tpu.memory_space<vmem>>, vector<8x32xf32>,
    %135 = vector.extract_strided_slice %94 {offsets = [0, 64], sizes = [8, 32], strides = [1, 1]} : vector<8x384xf32> to vector<8x32xf32>
    %cst_51 = arith.constant 0.420448214 : f32
    %136 = vector.broadcast %cst_51 : f32 to vector<8x32xf32>
    %137 = arith.mulf %135, %136 : vector<8x32xf32>
    %138 = vector.extract_strided_slice %94 {offsets = [0, 192], sizes = [8, 32], strides = [1, 1]} : vector<8x384xf32> to vector<8x32xf32>
    %cst_52 = arith.constant 0.420448214 : f32
    %139 = vector.broadcast %cst_52 : f32 to vector<8x32xf32>
    %140 = arith.mulf %138, %139 : vector<8x32xf32>
    %141 = vector.extract_strided_slice %94 {offsets = [0, 320], sizes = [8, 32], strides = [1, 1]} : vector<8x384xf32> to vector<8x32xf32>
    %142 = tpu.transpose %140, [1, 0] : vector<8x32xf32> -> vector<32x8xf32>
    %cst_53 = arith.constant dense<0.000000e+00> : vector<8x8xf32>
    %143 = tpu.matmul %137, %142, %cst_53 {dimension_numbers = #tpu.dot_dimension_numbers<[1], [0], [0], [1], [0, 0, 1, 1], [], []>} : vector<8x32xf32>, vector<32x8xf32>, vector<8x8xf32> -> vector<8x8xf32>
    %cst_54 = arith.constant dense<0xFF800000> : vector<8xf32>
    %144 = vector.multi_reduction <maximumf>, %143, %cst_54 [1] : vector<8x8xf32> to vector<8xf32>
    %145 = vector.shape_cast %144 : vector<8xf32> to vector<8x1xf32>
    %146 = vector.broadcast %145 : vector<8x1xf32> to vector<8x8xf32>
    %147 = arith.subf %143, %146 : vector<8x8xf32>
    %148 = math.exp %147 : vector<8x8xf32>
    %cst_55 = arith.constant dense<0.000000e+00> : vector<8xf32>
    %149 = vector.multi_reduction <add>, %148, %cst_55 [1] : vector<8x8xf32> to vector<8xf32>
    %150 = vector.shape_cast %149 : vector<8xf32> to vector<8x1xf32>
    %151 = vector.broadcast %150 : vector<8x1xf32> to vector<8x8xf32>
    %152 = arith.divf %148, %151 : vector<8x8xf32>
    %cst_56 = arith.constant dense<0.000000e+00> : vector<8x32xf32>
    %153 = tpu.matmul %152, %141, %cst_56 {dimension_numbers = #tpu.dot_dimension_numbers<[1], [0], [0], [1], [0, 0, 1, 1], [], []>} : vector<8x8xf32>, vector<8x32xf32>, vector<8x32xf32> -> vector<8x32xf32>
    %c8_57 = arith.constant 8 : index
    %c64_58 = arith.constant 64 : index
    %154 = vector.load %arg9[%c8_57, %c64_58] : memref<16x128xf32, #tpu.memory_space<vmem>>, vector<8x32xf32>
    tpu.vector_store %arg9[%c8_57, %c64_58], %153 {strides = array<i32>} : memref<16x128xf32, #tpu.memory_space<vmem>>, vector<8x32xf32>,
    %155 = vector.extract_strided_slice %94 {offsets = [0, 96], sizes = [8, 32], strides = [1, 1]} : vector<8x384xf32> to vector<8x32xf32>
    %cst_59 = arith.constant 0.420448214 : f32
    %156 = vector.broadcast %cst_59 : f32 to vector<8x32xf32>
    %157 = arith.mulf %155, %156 : vector<8x32xf32>
    %158 = vector.extract_strided_slice %94 {offsets = [0, 224], sizes = [8, 32], strides = [1, 1]} : vector<8x384xf32> to vector<8x32xf32>
    %cst_60 = arith.constant 0.420448214 : f32
    %159 = vector.broadcast %cst_60 : f32 to vector<8x32xf32>
    %160 = arith.mulf %158, %159 : vector<8x32xf32>
    %161 = vector.extract_strided_slice %94 {offsets = [0, 352], sizes = [8, 32], strides = [1, 1]} : vector<8x384xf32> to vector<8x32xf32>
    %162 = tpu.transpose %160, [1, 0] : vector<8x32xf32> -> vector<32x8xf32>
    %cst_61 = arith.constant dense<0.000000e+00> : vector<8x8xf32>
    %163 = tpu.matmul %157, %162, %cst_61 {dimension_numbers = #tpu.dot_dimension_numbers<[1], [0], [0], [1], [0, 0, 1, 1], [], []>} : vector<8x32xf32>, vector<32x8xf32>, vector<8x8xf32> -> vector<8x8xf32>
    %cst_62 = arith.constant dense<0xFF800000> : vector<8xf32>
    %164 = vector.multi_reduction <maximumf>, %163, %cst_62 [1] : vector<8x8xf32> to vector<8xf32>
    %165 = vector.shape_cast %164 : vector<8xf32> to vector<8x1xf32>
    %166 = vector.broadcast %165 : vector<8x1xf32> to vector<8x8xf32>
    %167 = arith.subf %163, %166 : vector<8x8xf32>
    %168 = math.exp %167 : vector<8x8xf32>
    %cst_63 = arith.constant dense<0.000000e+00> : vector<8xf32>
    %169 = vector.multi_reduction <add>, %168, %cst_63 [1] : vector<8x8xf32> to vector<8xf32>
    %170 = vector.shape_cast %169 : vector<8xf32> to vector<8x1xf32>
    %171 = vector.broadcast %170 : vector<8x1xf32> to vector<8x8xf32>
    %172 = arith.divf %168, %171 : vector<8x8xf32>
    %cst_64 = arith.constant dense<0.000000e+00> : vector<8x32xf32>
    %173 = tpu.matmul %172, %161, %cst_64 {dimension_numbers = #tpu.dot_dimension_numbers<[1], [0], [0], [1], [0, 0, 1, 1], [], []>} : vector<8x8xf32>, vector<8x32xf32>, vector<8x32xf32> -> vector<8x32xf32>
    %c8_65 = arith.constant 8 : index
    %c96_66 = arith.constant 96 : index
    %174 = vector.load %arg9[%c8_65, %c96_66] : memref<16x128xf32, #tpu.memory_space<vmem>>, vector<8x32xf32>
    tpu.vector_store %arg9[%c8_65, %c96_66], %173 {strides = array<i32>} : memref<16x128xf32, #tpu.memory_space<vmem>>, vector<8x32xf32>,
    %c0_67 = arith.constant 0 : index
    %c0_68 = arith.constant 0 : index
    %175 = vector.load %arg9[%c0_67, %c0_68] : memref<16x128xf32, #tpu.memory_space<vmem>>, vector<16x128xf32>
    %c0_69 = arith.constant 0 : index
    %c0_70 = arith.constant 0 : index
    %c0_71 = arith.constant 0 : index
    %176 = vector.load %arg2[%c0_69, %c0_70, %c0_71] : memref<2x128x32xf32, #tpu.memory_space<vmem>>, vector<1x128x32xf32>
    %177 = vector.shape_cast %176 : vector<1x128x32xf32> to vector<128x32xf32>
    %cst_72 = arith.constant dense<0.000000e+00> : vector<16x32xf32>
    %178 = tpu.matmul %175, %177, %cst_72 {dimension_numbers = #tpu.dot_dimension_numbers<[1], [0], [0], [1], [0, 0, 1, 1], [], []>} : vector<16x128xf32>, vector<128x32xf32>, vector<16x32xf32> -> vector<16x32xf32>
    %179 = vector.broadcast %3 : vector<1x32xf32> to vector<16x32xf32>
    %180 = arith.addf %178, %179 : vector<16x32xf32>
    %181 = arith.addf %180, %0 : vector<16x32xf32>
    %cst_73 = arith.constant dense<0.000000e+00> : vector<16xf32>
    %182 = vector.multi_reduction <add>, %181, %cst_73 [1] : vector<16x32xf32> to vector<16xf32>
    %183 = vector.shape_cast %182 : vector<16xf32> to vector<16x1xf32>
    %cst_74 = arith.constant 3.200000e+01 : f32
    %184 = vector.broadcast %cst_74 : f32 to vector<16x1xf32>
    %185 = arith.divf %183, %184 : vector<16x1xf32>
    %186 = vector.broadcast %185 : vector<16x1xf32> to vector<16x32xf32>
    %187 = arith.subf %181, %186 : vector<16x32xf32>
    %188 = arith.mulf %187, %187 : vector<16x32xf32>
    %cst_75 = arith.constant dense<0.000000e+00> : vector<16xf32>
    %189 = vector.multi_reduction <add>, %188, %cst_75 [1] : vector<16x32xf32> to vector<16xf32>
    %190 = vector.shape_cast %189 : vector<16xf32> to vector<16x1xf32>
    %cst_76 = arith.constant 3.200000e+01 : f32
    %191 = vector.broadcast %cst_76 : f32 to vector<16x1xf32>
    %192 = arith.divf %190, %191 : vector<16x1xf32>
    %193 = vector.broadcast %185 : vector<16x1xf32> to vector<16x32xf32>
    %194 = arith.subf %181, %193 : vector<16x32xf32>
    %cst_77 = arith.constant 9.99999974E-6 : f32
    %195 = vector.broadcast %cst_77 : f32 to vector<16x1xf32>
    %196 = arith.addf %192, %195 : vector<16x1xf32>
    %197 = math.rsqrt %196 : vector<16x1xf32>
    %198 = vector.broadcast %197 : vector<16x1xf32> to vector<16x32xf32>
    %199 = arith.mulf %194, %198 : vector<16x32xf32>
    %200 = vector.broadcast %4 : vector<1x32xf32> to vector<16x32xf32>
    %201 = arith.mulf %199, %200 : vector<16x32xf32>
    %202 = vector.broadcast %5 : vector<1x32xf32> to vector<16x32xf32>
    %203 = arith.addf %201, %202 : vector<16x32xf32>
    %c0_78 = arith.constant 0 : index
    %c0_79 = arith.constant 0 : index
    %c0_80 = arith.constant 0 : index
    %204 = vector.load %arg3[%c0_78, %c0_79, %c0_80] : memref<2x32x128xf32, #tpu.memory_space<vmem>>, vector<1x32x128xf32>
    %205 = vector.shape_cast %204 : vector<1x32x128xf32> to vector<32x128xf32>
    %cst_81 = arith.constant dense<0.000000e+00> : vector<16x128xf32>
    %206 = tpu.matmul %203, %205, %cst_81 {dimension_numbers = #tpu.dot_dimension_numbers<[1], [0], [0], [1], [0, 0, 1, 1], [], []>} : vector<16x32xf32>, vector<32x128xf32>, vector<16x128xf32> -> vector<16x128xf32>
    %207 = vector.broadcast %6 : vector<1x128xf32> to vector<16x128xf32>
    %208 = arith.addf %206, %207 : vector<16x128xf32>
    %cst_82 = arith.constant 0.000000e+00 : f32
    %209 = vector.broadcast %cst_82 : f32 to vector<16x128xf32>
    %210 = arith.maximumf %208, %209 : vector<16x128xf32>
    %c0_83 = arith.constant 0 : index
    %c0_84 = arith.constant 0 : index
    %c0_85 = arith.constant 0 : index
    %211 = vector.load %arg4[%c0_83, %c0_84, %c0_85] : memref<2x128x32xf32, #tpu.memory_space<vmem>>, vector<1x128x32xf32>
    %212 = vector.shape_cast %211 : vector<1x128x32xf32> to vector<128x32xf32>
    %cst_86 = arith.constant dense<0.000000e+00> : vector<16x32xf32>
    %213 = tpu.matmul %210, %212, %cst_86 {dimension_numbers = #tpu.dot_dimension_numbers<[1], [0], [0], [1], [0, 0, 1, 1], [], []>} : vector<16x128xf32>, vector<128x32xf32>, vector<16x32xf32> -> vector<16x32xf32>
    %214 = vector.broadcast %7 : vector<1x32xf32> to vector<16x32xf32>
    %215 = arith.addf %213, %214 : vector<16x32xf32>
    %216 = arith.addf %215, %203 : vector<16x32xf32>
    %cst_87 = arith.constant dense<0.000000e+00> : vector<16xf32>
    %217 = vector.multi_reduction <add>, %216, %cst_87 [1] : vector<16x32xf32> to vector<16xf32>
    %218 = vector.shape_cast %217 : vector<16xf32> to vector<16x1xf32>
    %cst_88 = arith.constant 3.200000e+01 : f32
    %219 = vector.broadcast %cst_88 : f32 to vector<16x1xf32>
    %220 = arith.divf %218, %219 : vector<16x1xf32>
    %221 = vector.broadcast %220 : vector<16x1xf32> to vector<16x32xf32>
    %222 = arith.subf %216, %221 : vector<16x32xf32>
    %223 = arith.mulf %222, %222 : vector<16x32xf32>
    %cst_89 = arith.constant dense<0.000000e+00> : vector<16xf32>
    %224 = vector.multi_reduction <add>, %223, %cst_89 [1] : vector<16x32xf32> to vector<16xf32>
    %225 = vector.shape_cast %224 : vector<16xf32> to vector<16x1xf32>
    %cst_90 = arith.constant 3.200000e+01 : f32
    %226 = vector.broadcast %cst_90 : f32 to vector<16x1xf32>
    %227 = arith.divf %225, %226 : vector<16x1xf32>
    %228 = vector.broadcast %220 : vector<16x1xf32> to vector<16x32xf32>
    %229 = arith.subf %216, %228 : vector<16x32xf32>
    %cst_91 = arith.constant 9.99999974E-6 : f32
    %230 = vector.broadcast %cst_91 : f32 to vector<16x1xf32>
    %231 = arith.addf %227, %230 : vector<16x1xf32>
    %232 = math.rsqrt %231 : vector<16x1xf32>
    %233 = vector.broadcast %232 : vector<16x1xf32> to vector<16x32xf32>
    %234 = arith.mulf %229, %233 : vector<16x32xf32>
    %235 = vector.broadcast %8 : vector<1x32xf32> to vector<16x32xf32>
    %236 = arith.mulf %234, %235 : vector<16x32xf32>
    %237 = vector.broadcast %9 : vector<1x32xf32> to vector<16x32xf32>
    %238 = arith.addf %236, %237 : vector<16x32xf32>
    %c1 = arith.constant 1 : index
    %c0_92 = arith.constant 0 : index
    %c0_93 = arith.constant 0 : index
    %239 = vector.load %arg5[%c1, %c0_92, %c0_93] : memref<2x8x128xf32, #tpu.memory_space<vmem>>, vector<1x8x128xf32>
    %240 = vector.shape_cast %239 : vector<1x8x128xf32> to vector<8x128xf32>
    %241 = vector.extract_strided_slice %240 {offsets = [0, 0], sizes = [1, 32], strides = [1, 1]} : vector<8x128xf32> to vector<1x32xf32>
    %242 = vector.extract_strided_slice %240 {offsets = [1, 0], sizes = [1, 32], strides = [1, 1]} : vector<8x128xf32> to vector<1x32xf32>
    %243 = vector.extract_strided_slice %240 {offsets = [2, 0], sizes = [1, 32], strides = [1, 1]} : vector<8x128xf32> to vector<1x32xf32>
    %244 = vector.extract_strided_slice %240 {offsets = [3, 0], sizes = [1, 128], strides = [1, 1]} : vector<8x128xf32> to vector<1x128xf32>
    %245 = vector.extract_strided_slice %240 {offsets = [4, 0], sizes = [1, 32], strides = [1, 1]} : vector<8x128xf32> to vector<1x32xf32>
    %246 = vector.extract_strided_slice %240 {offsets = [5, 0], sizes = [1, 32], strides = [1, 1]} : vector<8x128xf32> to vector<1x32xf32>
    %247 = vector.extract_strided_slice %240 {offsets = [6, 0], sizes = [1, 32], strides = [1, 1]} : vector<8x128xf32> to vector<1x32xf32>
    %c1_94 = arith.constant 1 : index
    %c0_95 = arith.constant 0 : index
    %c0_96 = arith.constant 0 : index
    %248 = vector.load %arg1[%c1_94, %c0_95, %c0_96] : memref<2x32x384xf32, #tpu.memory_space<vmem>>, vector<1x32x384xf32>
    %249 = vector.shape_cast %248 : vector<1x32x384xf32> to vector<32x384xf32>
    %cst_97 = arith.constant dense<0.000000e+00> : vector<16x384xf32>
    %250 = tpu.matmul %238, %249, %cst_97 {dimension_numbers = #tpu.dot_dimension_numbers<[1], [0], [0], [1], [0, 0, 1, 1], [], []>} : vector<16x32xf32>, vector<32x384xf32>, vector<16x384xf32> -> vector<16x384xf32>
    %251 = vector.extract_strided_slice %250 {offsets = [0, 0], sizes = [8, 384], strides = [1, 1]} : vector<16x384xf32> to vector<8x384xf32>
    %252 = vector.extract_strided_slice %251 {offsets = [0, 0], sizes = [8, 32], strides = [1, 1]} : vector<8x384xf32> to vector<8x32xf32>
    %cst_98 = arith.constant 0.420448214 : f32
    %253 = vector.broadcast %cst_98 : f32 to vector<8x32xf32>
    %254 = arith.mulf %252, %253 : vector<8x32xf32>
    %255 = vector.extract_strided_slice %251 {offsets = [0, 128], sizes = [8, 32], strides = [1, 1]} : vector<8x384xf32> to vector<8x32xf32>
    %cst_99 = arith.constant 0.420448214 : f32
    %256 = vector.broadcast %cst_99 : f32 to vector<8x32xf32>
    %257 = arith.mulf %255, %256 : vector<8x32xf32>
    %258 = vector.extract_strided_slice %251 {offsets = [0, 256], sizes = [8, 32], strides = [1, 1]} : vector<8x384xf32> to vector<8x32xf32>
    %259 = tpu.transpose %257, [1, 0] : vector<8x32xf32> -> vector<32x8xf32>
    %cst_100 = arith.constant dense<0.000000e+00> : vector<8x8xf32>
    %260 = tpu.matmul %254, %259, %cst_100 {dimension_numbers = #tpu.dot_dimension_numbers<[1], [0], [0], [1], [0, 0, 1, 1], [], []>} : vector<8x32xf32>, vector<32x8xf32>, vector<8x8xf32> -> vector<8x8xf32>
    %cst_101 = arith.constant dense<0xFF800000> : vector<8xf32>
    %261 = vector.multi_reduction <maximumf>, %260, %cst_101 [1] : vector<8x8xf32> to vector<8xf32>
    %262 = vector.shape_cast %261 : vector<8xf32> to vector<8x1xf32>
    %263 = vector.broadcast %262 : vector<8x1xf32> to vector<8x8xf32>
    %264 = arith.subf %260, %263 : vector<8x8xf32>
    %265 = math.exp %264 : vector<8x8xf32>
    %cst_102 = arith.constant dense<0.000000e+00> : vector<8xf32>
    %266 = vector.multi_reduction <add>, %265, %cst_102 [1] : vector<8x8xf32> to vector<8xf32>
    %267 = vector.shape_cast %266 : vector<8xf32> to vector<8x1xf32>
    %268 = vector.broadcast %267 : vector<8x1xf32> to vector<8x8xf32>
    %269 = arith.divf %265, %268 : vector<8x8xf32>
    %cst_103 = arith.constant dense<0.000000e+00> : vector<8x32xf32>
    %270 = tpu.matmul %269, %258, %cst_103 {dimension_numbers = #tpu.dot_dimension_numbers<[1], [0], [0], [1], [0, 0, 1, 1], [], []>} : vector<8x8xf32>, vector<8x32xf32>, vector<8x32xf32> -> vector<8x32xf32>
    %c0_104 = arith.constant 0 : index
    %c0_105 = arith.constant 0 : index
    %271 = vector.load %arg9[%c0_104, %c0_105] : memref<16x128xf32, #tpu.memory_space<vmem>>, vector<8x32xf32>
    tpu.vector_store %arg9[%c0_104, %c0_105], %270 {strides = array<i32>} : memref<16x128xf32, #tpu.memory_space<vmem>>, vector<8x32xf32>,
    %272 = vector.extract_strided_slice %251 {offsets = [0, 32], sizes = [8, 32], strides = [1, 1]} : vector<8x384xf32> to vector<8x32xf32>
    %cst_106 = arith.constant 0.420448214 : f32
    %273 = vector.broadcast %cst_106 : f32 to vector<8x32xf32>
    %274 = arith.mulf %272, %273 : vector<8x32xf32>
    %275 = vector.extract_strided_slice %251 {offsets = [0, 160], sizes = [8, 32], strides = [1, 1]} : vector<8x384xf32> to vector<8x32xf32>
    %cst_107 = arith.constant 0.420448214 : f32
    %276 = vector.broadcast %cst_107 : f32 to vector<8x32xf32>
    %277 = arith.mulf %275, %276 : vector<8x32xf32>
    %278 = vector.extract_strided_slice %251 {offsets = [0, 288], sizes = [8, 32], strides = [1, 1]} : vector<8x384xf32> to vector<8x32xf32>
    %279 = tpu.transpose %277, [1, 0] : vector<8x32xf32> -> vector<32x8xf32>
    %cst_108 = arith.constant dense<0.000000e+00> : vector<8x8xf32>
    %280 = tpu.matmul %274, %279, %cst_108 {dimension_numbers = #tpu.dot_dimension_numbers<[1], [0], [0], [1], [0, 0, 1, 1], [], []>} : vector<8x32xf32>, vector<32x8xf32>, vector<8x8xf32> -> vector<8x8xf32>
    %cst_109 = arith.constant dense<0xFF800000> : vector<8xf32>
    %281 = vector.multi_reduction <maximumf>, %280, %cst_109 [1] : vector<8x8xf32> to vector<8xf32>
    %282 = vector.shape_cast %281 : vector<8xf32> to vector<8x1xf32>
    %283 = vector.broadcast %282 : vector<8x1xf32> to vector<8x8xf32>
    %284 = arith.subf %280, %283 : vector<8x8xf32>
    %285 = math.exp %284 : vector<8x8xf32>
    %cst_110 = arith.constant dense<0.000000e+00> : vector<8xf32>
    %286 = vector.multi_reduction <add>, %285, %cst_110 [1] : vector<8x8xf32> to vector<8xf32>
    %287 = vector.shape_cast %286 : vector<8xf32> to vector<8x1xf32>
    %288 = vector.broadcast %287 : vector<8x1xf32> to vector<8x8xf32>
    %289 = arith.divf %285, %288 : vector<8x8xf32>
    %cst_111 = arith.constant dense<0.000000e+00> : vector<8x32xf32>
    %290 = tpu.matmul %289, %278, %cst_111 {dimension_numbers = #tpu.dot_dimension_numbers<[1], [0], [0], [1], [0, 0, 1, 1], [], []>} : vector<8x8xf32>, vector<8x32xf32>, vector<8x32xf32> -> vector<8x32xf32>
    %c0_112 = arith.constant 0 : index
    %c32_113 = arith.constant 32 : index
    %291 = vector.load %arg9[%c0_112, %c32_113] : memref<16x128xf32, #tpu.memory_space<vmem>>, vector<8x32xf32>
    tpu.vector_store %arg9[%c0_112, %c32_113], %290 {strides = array<i32>} : memref<16x128xf32, #tpu.memory_space<vmem>>, vector<8x32xf32>,
    %292 = vector.extract_strided_slice %251 {offsets = [0, 64], sizes = [8, 32], strides = [1, 1]} : vector<8x384xf32> to vector<8x32xf32>
    %cst_114 = arith.constant 0.420448214 : f32
    %293 = vector.broadcast %cst_114 : f32 to vector<8x32xf32>
    %294 = arith.mulf %292, %293 : vector<8x32xf32>
    %295 = vector.extract_strided_slice %251 {offsets = [0, 192], sizes = [8, 32], strides = [1, 1]} : vector<8x384xf32> to vector<8x32xf32>
    %cst_115 = arith.constant 0.420448214 : f32
    %296 = vector.broadcast %cst_115 : f32 to vector<8x32xf32>
    %297 = arith.mulf %295, %296 : vector<8x32xf32>
    %298 = vector.extract_strided_slice %251 {offsets = [0, 320], sizes = [8, 32], strides = [1, 1]} : vector<8x384xf32> to vector<8x32xf32>
    %299 = tpu.transpose %297, [1, 0] : vector<8x32xf32> -> vector<32x8xf32>
    %cst_116 = arith.constant dense<0.000000e+00> : vector<8x8xf32>
    %300 = tpu.matmul %294, %299, %cst_116 {dimension_numbers = #tpu.dot_dimension_numbers<[1], [0], [0], [1], [0, 0, 1, 1], [], []>} : vector<8x32xf32>, vector<32x8xf32>, vector<8x8xf32> -> vector<8x8xf32>
    %cst_117 = arith.constant dense<0xFF800000> : vector<8xf32>
    %301 = vector.multi_reduction <maximumf>, %300, %cst_117 [1] : vector<8x8xf32> to vector<8xf32>
    %302 = vector.shape_cast %301 : vector<8xf32> to vector<8x1xf32>
    %303 = vector.broadcast %302 : vector<8x1xf32> to vector<8x8xf32>
    %304 = arith.subf %300, %303 : vector<8x8xf32>
    %305 = math.exp %304 : vector<8x8xf32>
    %cst_118 = arith.constant dense<0.000000e+00> : vector<8xf32>
    %306 = vector.multi_reduction <add>, %305, %cst_118 [1] : vector<8x8xf32> to vector<8xf32>
    %307 = vector.shape_cast %306 : vector<8xf32> to vector<8x1xf32>
    %308 = vector.broadcast %307 : vector<8x1xf32> to vector<8x8xf32>
    %309 = arith.divf %305, %308 : vector<8x8xf32>
    %cst_119 = arith.constant dense<0.000000e+00> : vector<8x32xf32>
    %310 = tpu.matmul %309, %298, %cst_119 {dimension_numbers = #tpu.dot_dimension_numbers<[1], [0], [0], [1], [0, 0, 1, 1], [], []>} : vector<8x8xf32>, vector<8x32xf32>, vector<8x32xf32> -> vector<8x32xf32>
    %c0_120 = arith.constant 0 : index
    %c64_121 = arith.constant 64 : index
    %311 = vector.load %arg9[%c0_120, %c64_121] : memref<16x128xf32, #tpu.memory_space<vmem>>, vector<8x32xf32>
    tpu.vector_store %arg9[%c0_120, %c64_121], %310 {strides = array<i32>} : memref<16x128xf32, #tpu.memory_space<vmem>>, vector<8x32xf32>,
    %312 = vector.extract_strided_slice %251 {offsets = [0, 96], sizes = [8, 32], strides = [1, 1]} : vector<8x384xf32> to vector<8x32xf32>
    %cst_122 = arith.constant 0.420448214 : f32
    %313 = vector.broadcast %cst_122 : f32 to vector<8x32xf32>
    %314 = arith.mulf %312, %313 : vector<8x32xf32>
    %315 = vector.extract_strided_slice %251 {offsets = [0, 224], sizes = [8, 32], strides = [1, 1]} : vector<8x384xf32> to vector<8x32xf32>
    %cst_123 = arith.constant 0.420448214 : f32
    %316 = vector.broadcast %cst_123 : f32 to vector<8x32xf32>
    %317 = arith.mulf %315, %316 : vector<8x32xf32>
    %318 = vector.extract_strided_slice %251 {offsets = [0, 352], sizes = [8, 32], strides = [1, 1]} : vector<8x384xf32> to vector<8x32xf32>
    %319 = tpu.transpose %317, [1, 0] : vector<8x32xf32> -> vector<32x8xf32>
    %cst_124 = arith.constant dense<0.000000e+00> : vector<8x8xf32>
    %320 = tpu.matmul %314, %319, %cst_124 {dimension_numbers = #tpu.dot_dimension_numbers<[1], [0], [0], [1], [0, 0, 1, 1], [], []>} : vector<8x32xf32>, vector<32x8xf32>, vector<8x8xf32> -> vector<8x8xf32>
    %cst_125 = arith.constant dense<0xFF800000> : vector<8xf32>
    %321 = vector.multi_reduction <maximumf>, %320, %cst_125 [1] : vector<8x8xf32> to vector<8xf32>
    %322 = vector.shape_cast %321 : vector<8xf32> to vector<8x1xf32>
    %323 = vector.broadcast %322 : vector<8x1xf32> to vector<8x8xf32>
    %324 = arith.subf %320, %323 : vector<8x8xf32>
    %325 = math.exp %324 : vector<8x8xf32>
    %cst_126 = arith.constant dense<0.000000e+00> : vector<8xf32>
    %326 = vector.multi_reduction <add>, %325, %cst_126 [1] : vector<8x8xf32> to vector<8xf32>
    %327 = vector.shape_cast %326 : vector<8xf32> to vector<8x1xf32>
    %328 = vector.broadcast %327 : vector<8x1xf32> to vector<8x8xf32>
    %329 = arith.divf %325, %328 : vector<8x8xf32>
    %cst_127 = arith.constant dense<0.000000e+00> : vector<8x32xf32>
    %330 = tpu.matmul %329, %318, %cst_127 {dimension_numbers = #tpu.dot_dimension_numbers<[1], [0], [0], [1], [0, 0, 1, 1], [], []>} : vector<8x8xf32>, vector<8x32xf32>, vector<8x32xf32> -> vector<8x32xf32>
    %c0_128 = arith.constant 0 : index
    %c96_129 = arith.constant 96 : index
    %331 = vector.load %arg9[%c0_128, %c96_129] : memref<16x128xf32, #tpu.memory_space<vmem>>, vector<8x32xf32>
    tpu.vector_store %arg9[%c0_128, %c96_129], %330 {strides = array<i32>} : memref<16x128xf32, #tpu.memory_space<vmem>>, vector<8x32xf32>,
    %332 = vector.extract_strided_slice %250 {offsets = [8, 0], sizes = [8, 384], strides = [1, 1]} : vector<16x384xf32> to vector<8x384xf32>
    %333 = vector.extract_strided_slice %332 {offsets = [0, 0], sizes = [8, 32], strides = [1, 1]} : vector<8x384xf32> to vector<8x32xf32>
    %cst_130 = arith.constant 0.420448214 : f32
    %334 = vector.broadcast %cst_130 : f32 to vector<8x32xf32>
    %335 = arith.mulf %333, %334 : vector<8x32xf32>
    %336 = vector.extract_strided_slice %332 {offsets = [0, 128], sizes = [8, 32], strides = [1, 1]} : vector<8x384xf32> to vector<8x32xf32>
    %cst_131 = arith.constant 0.420448214 : f32
    %337 = vector.broadcast %cst_131 : f32 to vector<8x32xf32>
    %338 = arith.mulf %336, %337 : vector<8x32xf32>
    %339 = vector.extract_strided_slice %332 {offsets = [0, 256], sizes = [8, 32], strides = [1, 1]} : vector<8x384xf32> to vector<8x32xf32>
    %340 = tpu.transpose %338, [1, 0] : vector<8x32xf32> -> vector<32x8xf32>
    %cst_132 = arith.constant dense<0.000000e+00> : vector<8x8xf32>
    %341 = tpu.matmul %335, %340, %cst_132 {dimension_numbers = #tpu.dot_dimension_numbers<[1], [0], [0], [1], [0, 0, 1, 1], [], []>} : vector<8x32xf32>, vector<32x8xf32>, vector<8x8xf32> -> vector<8x8xf32>
    %cst_133 = arith.constant dense<0xFF800000> : vector<8xf32>
    %342 = vector.multi_reduction <maximumf>, %341, %cst_133 [1] : vector<8x8xf32> to vector<8xf32>
    %343 = vector.shape_cast %342 : vector<8xf32> to vector<8x1xf32>
    %344 = vector.broadcast %343 : vector<8x1xf32> to vector<8x8xf32>
    %345 = arith.subf %341, %344 : vector<8x8xf32>
    %346 = math.exp %345 : vector<8x8xf32>
    %cst_134 = arith.constant dense<0.000000e+00> : vector<8xf32>
    %347 = vector.multi_reduction <add>, %346, %cst_134 [1] : vector<8x8xf32> to vector<8xf32>
    %348 = vector.shape_cast %347 : vector<8xf32> to vector<8x1xf32>
    %349 = vector.broadcast %348 : vector<8x1xf32> to vector<8x8xf32>
    %350 = arith.divf %346, %349 : vector<8x8xf32>
    %cst_135 = arith.constant dense<0.000000e+00> : vector<8x32xf32>
    %351 = tpu.matmul %350, %339, %cst_135 {dimension_numbers = #tpu.dot_dimension_numbers<[1], [0], [0], [1], [0, 0, 1, 1], [], []>} : vector<8x8xf32>, vector<8x32xf32>, vector<8x32xf32> -> vector<8x32xf32>
    %c8_136 = arith.constant 8 : index
    %c0_137 = arith.constant 0 : index
    %352 = vector.load %arg9[%c8_136, %c0_137] : memref<16x128xf32, #tpu.memory_space<vmem>>, vector<8x32xf32>
    tpu.vector_store %arg9[%c8_136, %c0_137], %351 {strides = array<i32>} : memref<16x128xf32, #tpu.memory_space<vmem>>, vector<8x32xf32>,
    %353 = vector.extract_strided_slice %332 {offsets = [0, 32], sizes = [8, 32], strides = [1, 1]} : vector<8x384xf32> to vector<8x32xf32>
    %cst_138 = arith.constant 0.420448214 : f32
    %354 = vector.broadcast %cst_138 : f32 to vector<8x32xf32>
    %355 = arith.mulf %353, %354 : vector<8x32xf32>
    %356 = vector.extract_strided_slice %332 {offsets = [0, 160], sizes = [8, 32], strides = [1, 1]} : vector<8x384xf32> to vector<8x32xf32>
    %cst_139 = arith.constant 0.420448214 : f32
    %357 = vector.broadcast %cst_139 : f32 to vector<8x32xf32>
    %358 = arith.mulf %356, %357 : vector<8x32xf32>
    %359 = vector.extract_strided_slice %332 {offsets = [0, 288], sizes = [8, 32], strides = [1, 1]} : vector<8x384xf32> to vector<8x32xf32>
    %360 = tpu.transpose %358, [1, 0] : vector<8x32xf32> -> vector<32x8xf32>
    %cst_140 = arith.constant dense<0.000000e+00> : vector<8x8xf32>
    %361 = tpu.matmul %355, %360, %cst_140 {dimension_numbers = #tpu.dot_dimension_numbers<[1], [0], [0], [1], [0, 0, 1, 1], [], []>} : vector<8x32xf32>, vector<32x8xf32>, vector<8x8xf32> -> vector<8x8xf32>
    %cst_141 = arith.constant dense<0xFF800000> : vector<8xf32>
    %362 = vector.multi_reduction <maximumf>, %361, %cst_141 [1] : vector<8x8xf32> to vector<8xf32>
    %363 = vector.shape_cast %362 : vector<8xf32> to vector<8x1xf32>
    %364 = vector.broadcast %363 : vector<8x1xf32> to vector<8x8xf32>
    %365 = arith.subf %361, %364 : vector<8x8xf32>
    %366 = math.exp %365 : vector<8x8xf32>
    %cst_142 = arith.constant dense<0.000000e+00> : vector<8xf32>
    %367 = vector.multi_reduction <add>, %366, %cst_142 [1] : vector<8x8xf32> to vector<8xf32>
    %368 = vector.shape_cast %367 : vector<8xf32> to vector<8x1xf32>
    %369 = vector.broadcast %368 : vector<8x1xf32> to vector<8x8xf32>
    %370 = arith.divf %366, %369 : vector<8x8xf32>
    %cst_143 = arith.constant dense<0.000000e+00> : vector<8x32xf32>
    %371 = tpu.matmul %370, %359, %cst_143 {dimension_numbers = #tpu.dot_dimension_numbers<[1], [0], [0], [1], [0, 0, 1, 1], [], []>} : vector<8x8xf32>, vector<8x32xf32>, vector<8x32xf32> -> vector<8x32xf32>
    %c8_144 = arith.constant 8 : index
    %c32_145 = arith.constant 32 : index
    %372 = vector.load %arg9[%c8_144, %c32_145] : memref<16x128xf32, #tpu.memory_space<vmem>>, vector<8x32xf32>
    tpu.vector_store %arg9[%c8_144, %c32_145], %371 {strides = array<i32>} : memref<16x128xf32, #tpu.memory_space<vmem>>, vector<8x32xf32>,
    %373 = vector.extract_strided_slice %332 {offsets = [0, 64], sizes = [8, 32], strides = [1, 1]} : vector<8x384xf32> to vector<8x32xf32>
    %cst_146 = arith.constant 0.420448214 : f32
    %374 = vector.broadcast %cst_146 : f32 to vector<8x32xf32>
    %375 = arith.mulf %373, %374 : vector<8x32xf32>
    %376 = vector.extract_strided_slice %332 {offsets = [0, 192], sizes = [8, 32], strides = [1, 1]} : vector<8x384xf32> to vector<8x32xf32>
    %cst_147 = arith.constant 0.420448214 : f32
    %377 = vector.broadcast %cst_147 : f32 to vector<8x32xf32>
    %378 = arith.mulf %376, %377 : vector<8x32xf32>
    %379 = vector.extract_strided_slice %332 {offsets = [0, 320], sizes = [8, 32], strides = [1, 1]} : vector<8x384xf32> to vector<8x32xf32>
    %380 = tpu.transpose %378, [1, 0] : vector<8x32xf32> -> vector<32x8xf32>
    %cst_148 = arith.constant dense<0.000000e+00> : vector<8x8xf32>
    %381 = tpu.matmul %375, %380, %cst_148 {dimension_numbers = #tpu.dot_dimension_numbers<[1], [0], [0], [1], [0, 0, 1, 1], [], []>} : vector<8x32xf32>, vector<32x8xf32>, vector<8x8xf32> -> vector<8x8xf32>
    %cst_149 = arith.constant dense<0xFF800000> : vector<8xf32>
    %382 = vector.multi_reduction <maximumf>, %381, %cst_149 [1] : vector<8x8xf32> to vector<8xf32>
    %383 = vector.shape_cast %382 : vector<8xf32> to vector<8x1xf32>
    %384 = vector.broadcast %383 : vector<8x1xf32> to vector<8x8xf32>
    %385 = arith.subf %381, %384 : vector<8x8xf32>
    %386 = math.exp %385 : vector<8x8xf32>
    %cst_150 = arith.constant dense<0.000000e+00> : vector<8xf32>
    %387 = vector.multi_reduction <add>, %386, %cst_150 [1] : vector<8x8xf32> to vector<8xf32>
    %388 = vector.shape_cast %387 : vector<8xf32> to vector<8x1xf32>
    %389 = vector.broadcast %388 : vector<8x1xf32> to vector<8x8xf32>
    %390 = arith.divf %386, %389 : vector<8x8xf32>
    %cst_151 = arith.constant dense<0.000000e+00> : vector<8x32xf32>
    %391 = tpu.matmul %390, %379, %cst_151 {dimension_numbers = #tpu.dot_dimension_numbers<[1], [0], [0], [1], [0, 0, 1, 1], [], []>} : vector<8x8xf32>, vector<8x32xf32>, vector<8x32xf32> -> vector<8x32xf32>
    %c8_152 = arith.constant 8 : index
    %c64_153 = arith.constant 64 : index
    %392 = vector.load %arg9[%c8_152, %c64_153] : memref<16x128xf32, #tpu.memory_space<vmem>>, vector<8x32xf32>
    tpu.vector_store %arg9[%c8_152, %c64_153], %391 {strides = array<i32>} : memref<16x128xf32, #tpu.memory_space<vmem>>, vector<8x32xf32>,
    %393 = vector.extract_strided_slice %332 {offsets = [0, 96], sizes = [8, 32], strides = [1, 1]} : vector<8x384xf32> to vector<8x32xf32>
    %cst_154 = arith.constant 0.420448214 : f32
    %394 = vector.broadcast %cst_154 : f32 to vector<8x32xf32>
    %395 = arith.mulf %393, %394 : vector<8x32xf32>
    %396 = vector.extract_strided_slice %332 {offsets = [0, 224], sizes = [8, 32], strides = [1, 1]} : vector<8x384xf32> to vector<8x32xf32>
    %cst_155 = arith.constant 0.420448214 : f32
    %397 = vector.broadcast %cst_155 : f32 to vector<8x32xf32>
    %398 = arith.mulf %396, %397 : vector<8x32xf32>
    %399 = vector.extract_strided_slice %332 {offsets = [0, 352], sizes = [8, 32], strides = [1, 1]} : vector<8x384xf32> to vector<8x32xf32>
    %400 = tpu.transpose %398, [1, 0] : vector<8x32xf32> -> vector<32x8xf32>
    %cst_156 = arith.constant dense<0.000000e+00> : vector<8x8xf32>
    %401 = tpu.matmul %395, %400, %cst_156 {dimension_numbers = #tpu.dot_dimension_numbers<[1], [0], [0], [1], [0, 0, 1, 1], [], []>} : vector<8x32xf32>, vector<32x8xf32>, vector<8x8xf32> -> vector<8x8xf32>
    %cst_157 = arith.constant dense<0xFF800000> : vector<8xf32>
    %402 = vector.multi_reduction <maximumf>, %401, %cst_157 [1] : vector<8x8xf32> to vector<8xf32>
    %403 = vector.shape_cast %402 : vector<8xf32> to vector<8x1xf32>
    %404 = vector.broadcast %403 : vector<8x1xf32> to vector<8x8xf32>
    %405 = arith.subf %401, %404 : vector<8x8xf32>
    %406 = math.exp %405 : vector<8x8xf32>
    %cst_158 = arith.constant dense<0.000000e+00> : vector<8xf32>
    %407 = vector.multi_reduction <add>, %406, %cst_158 [1] : vector<8x8xf32> to vector<8xf32>
    %408 = vector.shape_cast %407 : vector<8xf32> to vector<8x1xf32>
    %409 = vector.broadcast %408 : vector<8x1xf32> to vector<8x8xf32>
    %410 = arith.divf %406, %409 : vector<8x8xf32>
    %cst_159 = arith.constant dense<0.000000e+00> : vector<8x32xf32>
    %411 = tpu.matmul %410, %399, %cst_159 {dimension_numbers = #tpu.dot_dimension_numbers<[1], [0], [0], [1], [0, 0, 1, 1], [], []>} : vector<8x8xf32>, vector<8x32xf32>, vector<8x32xf32> -> vector<8x32xf32>
    %c8_160 = arith.constant 8 : index
    %c96_161 = arith.constant 96 : index
    %412 = vector.load %arg9[%c8_160, %c96_161] : memref<16x128xf32, #tpu.memory_space<vmem>>, vector<8x32xf32>
    tpu.vector_store %arg9[%c8_160, %c96_161], %411 {strides = array<i32>} : memref<16x128xf32, #tpu.memory_space<vmem>>, vector<8x32xf32>,
    %c0_162 = arith.constant 0 : index
    %c0_163 = arith.constant 0 : index
    %413 = vector.load %arg9[%c0_162, %c0_163] : memref<16x128xf32, #tpu.memory_space<vmem>>, vector<16x128xf32>
    %c1_164 = arith.constant 1 : index
    %c0_165 = arith.constant 0 : index
    %c0_166 = arith.constant 0 : index
    %414 = vector.load %arg2[%c1_164, %c0_165, %c0_166] : memref<2x128x32xf32, #tpu.memory_space<vmem>>, vector<1x128x32xf32>
    %415 = vector.shape_cast %414 : vector<1x128x32xf32> to vector<128x32xf32>
    %cst_167 = arith.constant dense<0.000000e+00> : vector<16x32xf32>
    %416 = tpu.matmul %413, %415, %cst_167 {dimension_numbers = #tpu.dot_dimension_numbers<[1], [0], [0], [1], [0, 0, 1, 1], [], []>} : vector<16x128xf32>, vector<128x32xf32>, vector<16x32xf32> -> vector<16x32xf32>
    %417 = vector.broadcast %241 : vector<1x32xf32> to vector<16x32xf32>
    %418 = arith.addf %416, %417 : vector<16x32xf32>
    %419 = arith.addf %418, %238 : vector<16x32xf32>
    %cst_168 = arith.constant dense<0.000000e+00> : vector<16xf32>
    %420 = vector.multi_reduction <add>, %419, %cst_168 [1] : vector<16x32xf32> to vector<16xf32>
    %421 = vector.shape_cast %420 : vector<16xf32> to vector<16x1xf32>
    %cst_169 = arith.constant 3.200000e+01 : f32
    %422 = vector.broadcast %cst_169 : f32 to vector<16x1xf32>
    %423 = arith.divf %421, %422 : vector<16x1xf32>
    %424 = vector.broadcast %423 : vector<16x1xf32> to vector<16x32xf32>
    %425 = arith.subf %419, %424 : vector<16x32xf32>
    %426 = arith.mulf %425, %425 : vector<16x32xf32>
    %cst_170 = arith.constant dense<0.000000e+00> : vector<16xf32>
    %427 = vector.multi_reduction <add>, %426, %cst_170 [1] : vector<16x32xf32> to vector<16xf32>
    %428 = vector.shape_cast %427 : vector<16xf32> to vector<16x1xf32>
    %cst_171 = arith.constant 3.200000e+01 : f32
    %429 = vector.broadcast %cst_171 : f32 to vector<16x1xf32>
    %430 = arith.divf %428, %429 : vector<16x1xf32>
    %431 = vector.broadcast %423 : vector<16x1xf32> to vector<16x32xf32>
    %432 = arith.subf %419, %431 : vector<16x32xf32>
    %cst_172 = arith.constant 9.99999974E-6 : f32
    %433 = vector.broadcast %cst_172 : f32 to vector<16x1xf32>
    %434 = arith.addf %430, %433 : vector<16x1xf32>
    %435 = math.rsqrt %434 : vector<16x1xf32>
    %436 = vector.broadcast %435 : vector<16x1xf32> to vector<16x32xf32>
    %437 = arith.mulf %432, %436 : vector<16x32xf32>
    %438 = vector.broadcast %242 : vector<1x32xf32> to vector<16x32xf32>
    %439 = arith.mulf %437, %438 : vector<16x32xf32>
    %440 = vector.broadcast %243 : vector<1x32xf32> to vector<16x32xf32>
    %441 = arith.addf %439, %440 : vector<16x32xf32>
    %c1_173 = arith.constant 1 : index
    %c0_174 = arith.constant 0 : index
    %c0_175 = arith.constant 0 : index
    %442 = vector.load %arg3[%c1_173, %c0_174, %c0_175] : memref<2x32x128xf32, #tpu.memory_space<vmem>>, vector<1x32x128xf32>
    %443 = vector.shape_cast %442 : vector<1x32x128xf32> to vector<32x128xf32>
    %cst_176 = arith.constant dense<0.000000e+00> : vector<16x128xf32>
    %444 = tpu.matmul %441, %443, %cst_176 {dimension_numbers = #tpu.dot_dimension_numbers<[1], [0], [0], [1], [0, 0, 1, 1], [], []>} : vector<16x32xf32>, vector<32x128xf32>, vector<16x128xf32> -> vector<16x128xf32>
    %445 = vector.broadcast %244 : vector<1x128xf32> to vector<16x128xf32>
    %446 = arith.addf %444, %445 : vector<16x128xf32>
    %cst_177 = arith.constant 0.000000e+00 : f32
    %447 = vector.broadcast %cst_177 : f32 to vector<16x128xf32>
    %448 = arith.maximumf %446, %447 : vector<16x128xf32>
    %c1_178 = arith.constant 1 : index
    %c0_179 = arith.constant 0 : index
    %c0_180 = arith.constant 0 : index
    %449 = vector.load %arg4[%c1_178, %c0_179, %c0_180] : memref<2x128x32xf32, #tpu.memory_space<vmem>>, vector<1x128x32xf32>
    %450 = vector.shape_cast %449 : vector<1x128x32xf32> to vector<128x32xf32>
    %cst_181 = arith.constant dense<0.000000e+00> : vector<16x32xf32>
    %451 = tpu.matmul %448, %450, %cst_181 {dimension_numbers = #tpu.dot_dimension_numbers<[1], [0], [0], [1], [0, 0, 1, 1], [], []>} : vector<16x128xf32>, vector<128x32xf32>, vector<16x32xf32> -> vector<16x32xf32>
    %452 = vector.broadcast %245 : vector<1x32xf32> to vector<16x32xf32>
    %453 = arith.addf %451, %452 : vector<16x32xf32>
    %454 = arith.addf %453, %441 : vector<16x32xf32>
    %cst_182 = arith.constant dense<0.000000e+00> : vector<16xf32>
    %455 = vector.multi_reduction <add>, %454, %cst_182 [1] : vector<16x32xf32> to vector<16xf32>
    %456 = vector.shape_cast %455 : vector<16xf32> to vector<16x1xf32>
    %cst_183 = arith.constant 3.200000e+01 : f32
    %457 = vector.broadcast %cst_183 : f32 to vector<16x1xf32>
    %458 = arith.divf %456, %457 : vector<16x1xf32>
    %459 = vector.broadcast %458 : vector<16x1xf32> to vector<16x32xf32>
    %460 = arith.subf %454, %459 : vector<16x32xf32>
    %461 = arith.mulf %460, %460 : vector<16x32xf32>
    %cst_184 = arith.constant dense<0.000000e+00> : vector<16xf32>
    %462 = vector.multi_reduction <add>, %461, %cst_184 [1] : vector<16x32xf32> to vector<16xf32>
    %463 = vector.shape_cast %462 : vector<16xf32> to vector<16x1xf32>
    %cst_185 = arith.constant 3.200000e+01 : f32
    %464 = vector.broadcast %cst_185 : f32 to vector<16x1xf32>
    %465 = arith.divf %463, %464 : vector<16x1xf32>
    %466 = vector.broadcast %458 : vector<16x1xf32> to vector<16x32xf32>
    %467 = arith.subf %454, %466 : vector<16x32xf32>
    %cst_186 = arith.constant 9.99999974E-6 : f32
    %468 = vector.broadcast %cst_186 : f32 to vector<16x1xf32>
    %469 = arith.addf %465, %468 : vector<16x1xf32>
    %470 = math.rsqrt %469 : vector<16x1xf32>
    %471 = vector.broadcast %470 : vector<16x1xf32> to vector<16x32xf32>
    %472 = arith.mulf %467, %471 : vector<16x32xf32>
    %473 = vector.broadcast %246 : vector<1x32xf32> to vector<16x32xf32>
    %474 = arith.mulf %472, %473 : vector<16x32xf32>
    %475 = vector.broadcast %247 : vector<1x32xf32> to vector<16x32xf32>
    %476 = arith.addf %474, %475 : vector<16x32xf32>
    %477 = vector.extract_strided_slice %476 {offsets = [0, 0], sizes = [8, 32], strides = [1, 1]} : vector<16x32xf32> to vector<8x32xf32>
    %cst_187 = arith.constant dense<0.000000e+00> : vector<32xf32>
    %478 = vector.multi_reduction <add>, %477, %cst_187 [0] : vector<8x32xf32> to vector<32xf32>
    %479 = vector.shape_cast %478 : vector<32xf32> to vector<1x32xf32>
    %cst_188 = arith.constant 8.000000e+00 : f32
    %480 = vector.broadcast %cst_188 : f32 to vector<1x32xf32>
    %481 = arith.divf %479, %480 : vector<1x32xf32>
    %482 = vector.extract_strided_slice %476 {offsets = [8, 0], sizes = [8, 32], strides = [1, 1]} : vector<16x32xf32> to vector<8x32xf32>
    %cst_189 = arith.constant dense<0.000000e+00> : vector<32xf32>
    %483 = vector.multi_reduction <add>, %482, %cst_189 [0] : vector<8x32xf32> to vector<32xf32>
    %484 = vector.shape_cast %483 : vector<32xf32> to vector<1x32xf32>
    %cst_190 = arith.constant 8.000000e+00 : f32
    %485 = vector.broadcast %cst_190 : f32 to vector<1x32xf32>
    %486 = arith.divf %484, %485 : vector<1x32xf32>
    %487 = tpu.concatenate %481, %486 in 0 : vector<1x32xf32>, vector<1x32xf32> -> vector<2x32xf32>
    %c0_191 = arith.constant 0 : index
    %c0_192 = arith.constant 0 : index
    %488 = vector.load %arg6[%c0_191, %c0_192] : memref<32x8xf32, #tpu.memory_space<vmem>>, vector<32x8xf32>
    %cst_193 = arith.constant dense<0.000000e+00> : vector<2x8xf32>
    %489 = tpu.matmul %487, %488, %cst_193 {dimension_numbers = #tpu.dot_dimension_numbers<[1], [0], [0], [1], [0, 0, 1, 1], [], []>} : vector<2x32xf32>, vector<32x8xf32>, vector<2x8xf32> -> vector<2x8xf32>
    %c0_194 = arith.constant 0 : index
    %c0_195 = arith.constant 0 : index
    %490 = vector.load %arg7[%c0_194, %c0_195] : memref<1x8xf32, #tpu.memory_space<vmem>>, vector<1x8xf32>
    %491 = vector.broadcast %490 : vector<1x8xf32> to vector<2x8xf32>
    %492 = arith.addf %489, %491 : vector<2x8xf32>
    %cst_196 = arith.constant dense<0xFF800000> : vector<2xf32>
    %493 = vector.multi_reduction <maximumf>, %492, %cst_196 [1] : vector<2x8xf32> to vector<2xf32>
    %494 = vector.shape_cast %493 : vector<2xf32> to vector<2x1xf32>
    %495 = vector.broadcast %494 : vector<2x1xf32> to vector<2x8xf32>
    %496 = arith.subf %492, %495 : vector<2x8xf32>
    %497 = math.exp %496 : vector<2x8xf32>
    %cst_197 = arith.constant dense<0.000000e+00> : vector<2xf32>
    %498 = vector.multi_reduction <add>, %497, %cst_197 [1] : vector<2x8xf32> to vector<2xf32>
    %499 = vector.shape_cast %498 : vector<2xf32> to vector<2x1xf32>
    %500 = math.log %499 : vector<2x1xf32>
    %501 = vector.broadcast %500 : vector<2x1xf32> to vector<2x8xf32>
    %502 = arith.subf %496, %501 : vector<2x8xf32>
    %c0_198 = arith.constant 0 : index
    %c0_199 = arith.constant 0 : index
    %503 = vector.load %arg8[%c0_198, %c0_199] : memref<2x8xf32, #tpu.memory_space<vmem>>, vector<2x8xf32>
    tpu.vector_store %arg8[%c0_198, %c0_199], %502 {strides = array<i32>} : memref<2x8xf32, #tpu.memory_space<vmem>>, vector<2x8xf32>,
    return
  }
}

</mosaic_0001>

<bundles_post_ra>
// kernel: transformer_forward.1
= control target key start
LH: loop header
LB: loop body
LE: loop exit
PB: predicated region body
PF: predicated region fallthrough
CT: control target
= control target key end

     0   :  { %vm45_vm0 = vcmask 261120   ;;  %s3080_s0 = inlined_call_operand.vmem [shape: f32[16,32], index: 0, kind: input, shape index: {}]   ;;  %s3081_s1 = inlined_call_operand.vmem [shape: f32[2,32,384], index: 1, kind: input, shape index: {}]   ;;  %s3082_s2 = inlined_call_operand.vmem [shape: f32[2,128,32], index: 2, kind: input, shape index: {}]   ;;  %s3083_s3 = inlined_call_operand.vmem [shape: f32[2,32,128], index: 3, kind: input, shape index: {}]   ;;  %s3084_s4 = inlined_call_operand.vmem [shape: f32[2,128,32], index: 4, kind: input, shape index: {}]   ;;  %s3085_s5 = inlined_call_operand.vmem [shape: f32[2,8,128], index: 5, kind: input, shape index: {}]   ;;  %s3086_s6 = inlined_call_operand.vmem [shape: f32[32,8], index: 6, kind: input, shape index: {}]   ;;  %s3087_s7 = inlined_call_operand.vmem [shape: f32[1,8], index: 7, kind: input, shape index: {}]   ;;  %s3088_s8 = inlined_call_operand.hbm [shape: f32[2,8], index: 8, kind: output, shape index: {}]  }
   0x1   :  { %v43_v0 = vld [vmem:[%s3081_s1 + $0x50] sm:$0xff]  ;;  %v40_v1 = vld [vmem:[%s3081_s1 + $0x38] sm:$0xff]  ;;  %v42_v2 = vld [vmem:[%s3081_s1 + $0x48] sm:$0xff] }
   0x2   :  { %87 = vmatpush.msra.mxu2 %v43_v0  ;;  %v37_v3 = vld [vmem:[%s3081_s1 + $0x20] sm:$0xff]  ;;  %64 = vmatpush.msra.mxu0 %v42_v2  ;;  %v39_v4 = vld [vmem:[%s3081_s1 + $0x30] sm:$0xff]  ;;  %v36_v5 = vld [vmem:[%s3081_s1 + $0x18] sm:$0xff] }
   0x3   :  { %v34_v6 = vld [vmem:[%s3081_s1 + $0x8] sm:$0xff]  ;;  %v2369_v7 = vld [vmem:[%s3080_s0] sm:$0xff] }
   0x4   :  { %88 = vmatpush.msra.mxu2 %v40_v1  ;;  %65 = vmatpush.msra.mxu0 %v39_v4  ;;  %v33_v8 = vld [vmem:[%s3081_s1] sm:$0xff] }
   0x6   :  { %89 = vmatpush.msra.mxu2 %v37_v3 }
   0x7   :  { %13 = vsyncpa [#allocation4], 0  ;;  %66 = vmatpush.msra.mxu0 %v36_v5  ;;  %v44_v9 = vld [vmem:[%s3081_s1 + $0x58] sm:$0xff]  ;;  %v41_v10 = vld [vmem:[%s3081_s1 + $0x40] sm:$0xff]  ;;  %s2294_s11 = smov 64   ;;  %s2296_s12 = smov 32  }
   0x8   :  { %90 = vmatpush.msra.mxu2 %v34_v6  ;;  %v38_v11 = vld [vmem:[%s3081_s1 + $0x28] sm:$0xff]  ;;  %v35_v12 = vld [vmem:[%s3081_s1 + $0x10] sm:$0xff]  ;;  %vm149_vm1 = vcmask 64512   ;;  %s2050_s16 = sshll.u32 %s3088_s8, 4  ;;  %s2051_s16 = int_to_ptr.hbm [resolvable:$true] %s2050_s16 }
   0x9   :  { %2061 = vmatmul.msk.f32.vlgmr.msra.gmra.mxu2 %vm45_vm0, %v2369_v7  ;;  %67 = vmatpush.msra.mxu0 %v33_v8  ;;  %v2393_v13 = vld [vmem:[%s3080_s0 + $0x8] sm:$0xff]  ;;  %s2295_s0 = smov 96  }
   0xa   :  { %2059 = vmatmul.msk.f32.vlgmr.msra.gmra.mxu0 %vm45_vm0, %v2369_v7  ;;  %110 = vmatpush.msrb.mxu2 %v44_v9 }
   0xc   :  { %111 = vmatpush.msrb.mxu2 %v41_v10 }
   0xe   :  { %112 = vmatpush.msrb.mxu2 %v38_v11 }
  0x10   :  { %113 = vmatpush.msrb.mxu2 %v35_v12 }
  0x11   :  { %2062 = vmatmul.msk.f32.gmra.mxu2 %vm45_vm0, %v2393_v13 }
  0x12   :  { %2060 = vmatmul.msk.f32.gmra.mxu0 %vm45_vm0, %v2393_v13 }
  0x19   :  { %2063 = vmatmul.msk.f32.vlgmr.msrb.gmra.mxu2 %vm45_vm0, %v2369_v7 }
  0x21   :  { %2064 = vmatmul.msk.f32.gmra.mxu2 %vm45_vm0, %v2393_v13 }
  0x87   :  { %v69_v15 = vpop.f32.mrf.mxu0 }
  0x88   :  { %v121_v17 = vmul.f32 0.4204482, %v69_v15 }
  0x8c   :  { %v92_v14 = vpop.f32.mrf.mxu2 }
  0x8d   :  { %v122_v16 = vmul.f32 0.4204482, %v92_v14 }
  0x8f   :  { %285 = vrot.lane.b32.xlu2 %v122_v16, %s2294_s11  ;;  %200 = vrot.lane.b32.xlu1 %v122_v16, %s2295_s0  ;;  %v72_v21 = vpop.f32.mrf.mxu0 }
  0x90   :  { %2065 = vmatpush.xpose.msk.msrb.mxu0 %vm45_vm0, %v122_v16  ;;  %v451_v22 = vmul.f32 0.4204482, %v72_v21 }
  0x93   :  { %2066 = vmatmul.msk.f32.vlgmr.msrb.gmra.mxu0 %vm45_vm0, %v121_v17 }
  0x94   :  { %v95_v18 = vpop.f32.mrf.mxu2 }
  0x95   :  { %v452_v19 = vmul.f32 0.4204482, %v95_v18 }
  0x97   :  { %369 = vrot.lane.b32.xlu2 %v122_v16, %s2296_s12  ;;  %198 = vrot.lane.b32.xlu1 %v121_v17, %s2295_s0 }
  0x9c   :  { %v2411_v20 = vpop.f32.mrf.mxu2 }
  0x9d   :  { %192 = vmatpush.msra.mxu3 %v2411_v20 }
  0x9f   :  { %367 = vrot.lane.b32.xlu1 %v121_v17, %s2296_s12  ;;  %529 = vrot.lane.b32.xlu2 %v452_v19, %s2295_s0 }
  0xa7   :  { %613 = vrot.lane.b32.xlu2 %v452_v19, %s2294_s11  ;;  %527 = vrot.lane.b32.xlu1 %v451_v22, %s2295_s0 }
  0xaf   :  { %611 = vrot.lane.b32.xlu2 %v451_v22, %s2294_s11  ;;  %696 = vrot.lane.b32.xlu1 %v452_v19, %s2296_s12 }
  0xe9   :  { %v286_v23 = vpop.permute.xlu2 %285 }
  0xea   :  { %2071 = vmatpush.xpose.msk.msra.mxu1 %vm45_vm0, %v286_v23 }
  0xee   :  { %2077 = vmatpush.xpose.msk.msrb.mxu1 %vm45_vm0, %v452_v19 }
  0xf1   :  { %v370_v33 = vpop.permute.xlu2 %369 }
  0xf9   :  { %v530_v37 = vpop.permute.xlu2 %529 }
 0x101   :  { %v201_v24 = vpop.permute.xlu1 %200  ;;  %v614_v49 = vpop.permute.xlu2 %613 }
 0x102   :  { %2068 = vmatpush.xpose.msk.msrb.mxu3 %vm45_vm0, %v201_v24 }
 0x109   :  { %v199_v35 = vpop.permute.xlu1 %198  ;;  %v612_v52 = vpop.permute.xlu2 %611 }
 0x110   :  { %v146_v25 = vpop.f32.mrf.mxu0 }
 0x111   :  { %v150_v26 = vsel %vm149_vm1, %v146_v25, -inf  ;;  %v368_v46 = vpop.permute.xlu1 %367 }
 0x112   :  { %151 = vmax.xlane.f32.xlu0 %v150_v26 }
 0x119   :  { %v528_v50 = vpop.permute.xlu1 %527 }
 0x121   :  { %v697_v51 = vpop.permute.xlu1 %696 }
 0x185   :  { %v152_v27 = vpop.xlane.xlu0 %151 }
 0x186   :  { %v153_v28 = vsub.f32 %v146_v25, %v152_v27 }
 0x188   :  { %v154_v29 = vmul.f32 1.442695, %v153_v28 }
 0x18a   :  { %2180 = vpow2.f32 %v154_v29 }
 0x190   :  { %v2181_v30 = vpop.eup %2180 }
 0x191   :  { %v156_v31 = vsel %vm149_vm1, %v2181_v30, 0.0 }
 0x192   :  { %157 = vadd.xlane.f32.xlu0 %v156_v31 }
 0x1a6   :  { %283 = vrot.lane.b32.xlu0 %v121_v17, %s2294_s11 }
 0x1ae   :  { %694 = vrot.lane.b32.xlu0 %v451_v22, %s2296_s12 }
 0x205   :  { %v158_v32 = vpop.xlane.xlu0 %157 }
 0x206   :  { %2182 = vrcp.f32 %v158_v32  ;;  %v170_v39 = vand.u32 2147483648, %v158_v32  ;;  %v168_v41 = vand.u32 2147483647, %v158_v32  ;;  %vm164_vm3 = vweird.f32 %v158_v32 }
 0x208   :  { %v171_v43 = vor.u32 1.1754944e-38, %v170_v39  ;;  %vm169_vm5 = vcmp.eq.f32.partialorder %v168_v41, 8.507059e+37 }
 0x20c   :  { %v2183_v34 = vpop.eup %2182 }
 0x20d   :  { %v160_v36 = vmul.f32 %v2183_v34, %v158_v32  ;;  %vm165_vm2 = vweird.f32 %v2183_v34 }
 0x20e   :  { %vm166_vm4 = vmor %vm164_vm3, %vm165_vm2 }
 0x20f   :  { %v161_v38 = vsub.f32 1.0, %v160_v36 }
 0x211   :  { %v162_v40 = vmul.f32 %v2183_v34, %v161_v38 }
 0x213   :  { %v163_v42 = vadd.f32 %v2183_v34, %v162_v40 }
 0x215   :  { %v167_v44 = vsel %vm166_vm4, %v2183_v34, %v163_v42 }
 0x216   :  { %v172_v45 = vsel %vm169_vm5, %v171_v43, %v167_v44 }
 0x217   :  { %v173_v47 = vmul.f32 %v2181_v30, %v172_v45 }
 0x218   :  { %v284_v48 = vpop.permute.xlu0 %283 }
 0x219   :  { %2067 = vmatmul.msk.f32.vlgmr.msra.gmra.mxu3 %vm149_vm1, %v173_v47  ;;  %2072 = vmatmul.msk.f32.vlgmr.msra.gmra.mxu1 %vm45_vm0, %v284_v48 }
 0x21a   :  { %2074 = vmatpush.xpose.msk.msra.mxu3 %vm45_vm0, %v370_v33  ;;  %2083 = vmatpush.xpose.msk.msra.mxu1 %vm45_vm0, %v614_v49 }
 0x220   :  { %v695_v53 = vpop.permute.xlu0 %694 }
 0x221   :  { %2069 = vmatmul.msk.f32.vlgmr.msrb.gmra.mxu3 %vm45_vm0, %v199_v35  ;;  %2078 = vmatmul.msk.f32.vlgmr.msrb.gmra.mxu1 %vm45_vm0, %v451_v22 }
 0x222   :  { %2080 = vmatpush.xpose.msk.msrb.mxu3 %vm45_vm0, %v530_v37 }
 0x229   :  { %2075 = vmatmul.msk.f32.vlgmr.msra.gmra.mxu3 %vm45_vm0, %v368_v46  ;;  %2084 = vmatmul.msk.f32.vlgmr.msra.gmra.mxu1 %vm45_vm0, %v612_v52 }
 0x22a   :  { %2086 = vmatpush.xpose.msk.msra.mxu3 %vm45_vm0, %v697_v51 }
 0x231   :  { %2081 = vmatmul.msk.f32.vlgmr.msrb.gmra.mxu3 %vm45_vm0, %v528_v50 }
 0x239   :  { %2087 = vmatmul.msk.f32.vlgmr.msra.gmra.mxu3 %vm45_vm0, %v695_v53 }
 0x296   :  { %v308_v54 = vpop.f32.mrf.mxu1 }
 0x297   :  { %v311_v55 = vsel %vm149_vm1, %v308_v54, -inf }
 0x298   :  { %312 = vmax.xlane.f32.xlu2 %v311_v55 }
 0x29c   :  { %v194_v56 = vpop.f32.mrf.mxu3 }
 0x29d   :  { %197 = vst.msk [vmem:[#allocation2] sm:$0xff] %vm45_vm0, %v194_v56 }
 0x29e   :  { %v476_v57 = vpop.f32.mrf.mxu1 }
 0x29f   :  { %v479_v58 = vsel %vm149_vm1, %v476_v57, -inf }
 0x2a0   :  { %480 = vmax.xlane.f32.xlu2 %v479_v58 }
 0x2a4   :  { %v223_v63 = vpop.f32.mrf.mxu3 }
 0x2a5   :  { %v226_v17 = vsel %vm149_vm1, %v223_v63, -inf }
 0x2a6   :  { %v636_v59 = vpop.f32.mrf.mxu1 }
 0x2a7   :  { %v639_v60 = vsel %vm149_vm1, %v636_v59, -inf }
 0x2a8   :  { %640 = vmax.xlane.f32.xlu0 %v639_v60  ;;  %v118_v60 = vpop.f32.mrf.mxu2 }
 0x2ac   :  { %v392_v6 = vpop.f32.mrf.mxu3 }
 0x2ad   :  { %v395_v12 = vsel %vm149_vm1, %v392_v6, -inf }
 0x2b4   :  { %v552_v15 = vpop.f32.mrf.mxu3 }
 0x2b5   :  { %v555_v21 = vsel %vm149_vm1, %v552_v15, -inf }
 0x2bc   :  { %v719_v19 = vpop.f32.mrf.mxu3 }
 0x2bd   :  { %v722_v22 = vsel %vm149_vm1, %v719_v19, -inf }
 0x30b   :  { %v313_v61 = vpop.xlane.xlu2 %312 }
 0x30c   :  { %v314_v62 = vsub.f32 %v308_v54, %v313_v61 }
 0x30e   :  { %v315_v0 = vmul.f32 1.442695, %v314_v62 }
 0x310   :  { %2184 = vpow2.f32 %v315_v0 }
 0x313   :  { %v481_v1 = vpop.xlane.xlu2 %480 }
 0x314   :  { %v482_v2 = vsub.f32 %v476_v57, %v481_v1 }
 0x316   :  { %v2441_v3 = vpop.eup %2184  ;;  %v483_v4 = vmul.f32 1.442695, %v482_v2 }
 0x317   :  { %v317_v5 = vsel %vm149_vm1, %v2441_v3, 0.0 }
 0x318   :  { %2186 = vpow2.f32 %v483_v4  ;;  %318 = vadd.xlane.f32.xlu0 %v317_v5 }
 0x31b   :  { %v641_v8 = vpop.xlane.xlu0 %640 }
 0x31c   :  { %v642_v9 = vsub.f32 %v636_v59, %v641_v8 }
 0x31e   :  { %v2445_v10 = vpop.eup %2186  ;;  %v643_v11 = vmul.f32 1.442695, %v642_v9 }
 0x31f   :  { %v485_v14 = vsel %vm149_vm1, %v2445_v10, 0.0 }
 0x320   :  { %2188 = vpow2.f32 %v643_v11  ;;  %396 = vmax.xlane.f32.xlu0 %v395_v12  ;;  %486 = vadd.xlane.f32.xlu1 %v485_v14 }
 0x326   :  { %v2450_v16 = vpop.eup %2188 }
 0x327   :  { %v645_v18 = vsel %vm149_vm1, %v2450_v16, 0.0 }
 0x328   :  { %227 = vmax.xlane.f32.xlu1 %v226_v17  ;;  %646 = vadd.xlane.f32.xlu2 %v645_v18 }
 0x330   :  { %556 = vmax.xlane.f32.xlu1 %v555_v21  ;;  %723 = vmax.xlane.f32.xlu2 %v722_v22 }
 0x334   :  { %335 = vrot.lane.b32.xlu0 %v2411_v20, %s2294_s11 }
 0x349   :  { %251 = vrot.lane.b32.xlu1 %v2411_v20, %s2295_s0 }
 0x38b   :  { %v319_v23 = vpop.xlane.xlu0 %318 }
 0x38c   :  { %2190 = vrcp.f32 %v319_v23  ;;  %v331_v38 = vand.u32 2147483648, %v319_v23  ;;  %vm325_vm7 = vweird.f32 %v319_v23  ;;  %v329_v40 = vand.u32 2147483647, %v319_v23 }
 0x38e   :  { %v332_v46 = vor.u32 1.1754944e-38, %v331_v38  ;;  %vm330_vm9 = vcmp.eq.f32.partialorder %v329_v40, 8.507059e+37 }
 0x392   :  { %v2191_v24 = vpop.eup %2190 }
 0x393   :  { %v321_v25 = vmul.f32 %v2191_v24, %v319_v23  ;;  %v487_v26 = vpop.xlane.xlu1 %486  ;;  %v397_v27 = vpop.xlane.xlu0 %396  ;;  %vm326_vm6 = vweird.f32 %v2191_v24 }
 0x394   :  { %2192 = vrcp.f32 %v487_v26  ;;  %v398_v29 = vsub.f32 %v392_v6, %v397_v27  ;;  %vm327_vm8 = vmor %vm325_vm7, %vm326_vm6  ;;  %vm493_vm11 = vweird.f32 %v487_v26  ;;  %v499_v53 = vand.u32 2147483648, %v487_v26 }
 0x395   :  { %v322_v28 = vsub.f32 1.0, %v321_v25  ;;  %v497_v55 = vand.u32 2147483647, %v487_v26 }
 0x396   :  { %v399_v30 = vmul.f32 1.442695, %v398_v29 }
 0x397   :  { %v323_v31 = vmul.f32 %v2191_v24, %v322_v28  ;;  %vm498_vm13 = vcmp.eq.f32.partialorder %v497_v55, 8.507059e+37 }
 0x398   :  { %2194 = vpow2.f32 %v399_v30 }
 0x399   :  { %v324_v36 = vadd.f32 %v2191_v24, %v323_v31 }
 0x39a   :  { %v2193_v32 = vpop.eup %2192 }
 0x39b   :  { %v489_v33 = vmul.f32 %v2193_v32, %v487_v26  ;;  %v228_v34 = vpop.xlane.xlu1 %227  ;;  %v2461_v35 = vpop.xlane.xlu2 %646  ;;  %v328_v43 = vsel %vm327_vm8, %v2191_v24, %v324_v36  ;;  %vm494_vm10 = vweird.f32 %v2193_v32 }
 0x39c   :  { %v229_v37 = vsub.f32 %v223_v63, %v228_v34  ;;  %v333_v47 = vsel %vm330_vm9, %v332_v46, %v328_v43  ;;  %vm495_vm12 = vmor %vm493_vm11, %vm494_vm10  ;;  %v500_v63 = vor.u32 1.1754944e-38, %v499_v53  ;;  %vm653_vm2 = vweird.f32 %v2461_v35  ;;  %v779_v34 = vld [vmem:[%s3082_s2] sm:$0xff] }
 0x39d   :  { %v490_v39 = vsub.f32 1.0, %v489_v33  ;;  %v334_v59 = vmul.f32 %v2441_v3, %v333_v47  ;;  %v657_v31 = vand.u32 2147483647, %v2461_v35 }
 0x39e   :  { %v230_v41 = vmul.f32 1.442695, %v229_v37  ;;  %v2463_v42 = vpop.eup %2194 }
 0x39f   :  { %v491_v44 = vmul.f32 %v2193_v32, %v490_v39  ;;  %v401_v45 = vsel %vm149_vm1, %v2463_v42, 0.0  ;;  %vm658_vm10 = vcmp.eq.f32.partialorder %v657_v31, 8.507059e+37  ;;  %v782_v31 = vld [vmem:[%s3082_s2 + $0x18] sm:$0xff] }
 0x3a0   :  { %2196 = vpow2.f32 %v230_v41  ;;  %402 = vadd.xlane.f32.xlu2 %v401_v45 }
 0x3a1   :  { %v492_v50 = vadd.f32 %v2193_v32, %v491_v44 }
 0x3a3   :  { %v557_v48 = vpop.xlane.xlu1 %556  ;;  %v724_v49 = vpop.xlane.xlu2 %723  ;;  %v496_v62 = vsel %vm495_vm12, %v2193_v32, %v492_v50  ;;  %v659_v32 = vand.u32 2147483648, %v2461_v35 }
 0x3a4   :  { %v558_v51 = vsub.f32 %v552_v15, %v557_v48  ;;  %v725_v52 = vsub.f32 %v719_v19, %v724_v49  ;;  %v501_v0 = vsel %vm498_vm13, %v500_v63, %v496_v62 }
 0x3a5   :  { %v502_v2 = vmul.f32 %v2445_v10, %v501_v0  ;;  %v660_v48 = vor.u32 1.1754944e-38, %v659_v32  ;;  %v781_v32 = vld [vmem:[%s3082_s2 + $0x10] sm:$0xff] }
 0x3a6   :  { %v2467_v54 = vpop.eup %2196  ;;  %v559_v56 = vmul.f32 1.442695, %v558_v51  ;;  %v726_v57 = vmul.f32 1.442695, %v725_v52  ;;  %v336_v58 = vpop.permute.xlu0 %335 }
 0x3a7   :  { %356 = vmatpush.msra.mxu2 %v336_v58  ;;  %v232_v61 = vsel %vm149_vm1, %v2467_v54, 0.0 }
 0x3a8   :  { %2198 = vpow2.f32 %v559_v56  ;;  %233 = vadd.xlane.f32.xlu1 %v232_v61  ;;  %2073 = vmatmul.msk.f32.vlgmr.msra.gmra.mxu2 %vm149_vm1, %v334_v59 }
 0x3a9   :  { %2200 = vpow2.f32 %v726_v57  ;;  %521 = vmatpush.msrb.mxu2 %v118_v60 }
 0x3aa   :  { %2202 = vrcp.f32 %v2461_v35 }
 0x3ae   :  { %v2473_v1 = vpop.eup %2198 }
 0x3af   :  { %v2476_v3 = vpop.eup %2200  ;;  %v561_v4 = vsel %vm149_vm1, %v2473_v1, 0.0 }
 0x3b0   :  { %562 = vadd.xlane.f32.xlu0 %v561_v4  ;;  %v728_v5 = vsel %vm149_vm1, %v2476_v3, 0.0  ;;  %2079 = vmatmul.msk.f32.vlgmr.msrb.gmra.mxu2 %vm149_vm1, %v502_v2  ;;  %v2203_v9 = vpop.eup %2202 }
 0x3b1   :  { %729 = vadd.xlane.f32.xlu2 %v728_v5  ;;  %v649_v12 = vmul.f32 %v2203_v9, %v2461_v35  ;;  %vm654_vm15 = vweird.f32 %v2203_v9 }
 0x3b2   :  { %vm2499_vm6 = vmor %vm653_vm2, %vm654_vm15 }
 0x3b3   :  { %v650_v15 = vsub.f32 1.0, %v649_v12 }
 0x3bb   :  { %v252_v6 = vpop.permute.xlu1 %251 }
 0x3bc   :  { %272 = vmatpush.msra.mxu0 %v252_v6 }
 0x3c1   :  { %663 = vrot.lane.b32.xlu1 %v118_v60, %s2294_s11 }
 0x3c4   :  { %580 = vrot.lane.b32.xlu0 %v118_v60, %s2295_s0 }
 0x3c9   :  { %419 = vrot.lane.b32.xlu2 %v2411_v20, %s2296_s12  ;;  %v651_v20 = vmul.f32 %v2203_v9, %v650_v15  ;;  %v794_v15 = vld [vmem:[%s3082_s2 + $0x78] sm:$0xff] }
 0x3ca   :  { %796 = vmatpush.msrb.mxu1 %v794_v15 }
 0x3cb   :  { %v652_v28 = vadd.f32 %v2203_v9, %v651_v20  ;;  %v792_v20 = vld [vmem:[%s3082_s2 + $0x68] sm:$0xff] }
 0x3cc   :  { %746 = vrot.lane.b32.xlu0 %v118_v60, %s2296_s12 }
 0x3cd   :  { %v656_v41 = vsel %vm2499_vm6, %v2203_v9, %v652_v28  ;;  %v785_v28 = vld [vmem:[%s3082_s2 + $0x30] sm:$0xff]  ;;  %vm281_vm6 = vcmask 523520  }
 0x3ce   :  { %v661_v52 = vsel %vm658_vm10, %v660_v48, %v656_v41 }
 0x413   :  { %v403_v8 = vpop.xlane.xlu2 %402 }
 0x414   :  { %2204 = vrcp.f32 %v403_v8  ;;  %v415_v43 = vand.u32 2147483648, %v403_v8  ;;  %vm409_vm8 = vweird.f32 %v403_v8  ;;  %v413_v45 = vand.u32 2147483647, %v403_v8 }
 0x416   :  { %v416_v53 = vor.u32 1.1754944e-38, %v415_v43  ;;  %vm414_vm11 = vcmp.eq.f32.partialorder %v413_v45, 8.507059e+37 }
 0x41a   :  { %v2205_v11 = vpop.eup %2204 }
 0x41b   :  { %v234_v10 = vpop.xlane.xlu1 %233  ;;  %v405_v14 = vmul.f32 %v2205_v11, %v403_v8  ;;  %vm410_vm4 = vweird.f32 %v2205_v11 }
 0x41c   :  { %2206 = vrcp.f32 %v234_v10  ;;  %v246_v24 = vand.u32 2147483648, %v234_v10  ;;  %v244_v27 = vand.u32 2147483647, %v234_v10  ;;  %vm240_vm3 = vweird.f32 %v234_v10  ;;  %vm411_vm9 = vmor %vm409_vm8, %vm410_vm4 }
 0x41d   :  { %v406_v18 = vsub.f32 1.0, %v405_v14  ;;  %vm449_vm8 = vcmask 1048320  }
 0x41e   :  { %v247_v33 = vor.u32 1.1754944e-38, %v246_v24  ;;  %vm245_vm7 = vcmp.eq.f32.partialorder %v244_v27, 8.507059e+37  ;;  %v789_v24 = vld [vmem:[%s3082_s2 + $0x50] sm:$0xff]  ;;  %v786_v27 = vld [vmem:[%s3082_s2 + $0x38] sm:$0xff] }
 0x41f   :  { %v407_v25 = vmul.f32 %v2205_v11, %v406_v18 }
 0x421   :  { %v408_v36 = vadd.f32 %v2205_v11, %v407_v25  ;;  %v788_v25 = vld [vmem:[%s3082_s2 + $0x48] sm:$0xff] }
 0x422   :  { %v2207_v17 = vpop.eup %2206 }
 0x423   :  { %v236_v19 = vmul.f32 %v2207_v17, %v234_v10  ;;  %v2490_v21 = vpop.xlane.xlu0 %562  ;;  %vm241_vm14 = vweird.f32 %v2207_v17  ;;  %v412_v49 = vsel %vm411_vm9, %v2205_v11, %v408_v36 }
 0x424   :  { %v2492_v22 = vpop.xlane.xlu2 %729  ;;  %2208 = vrcp.f32 %v2490_v21  ;;  %vm242_vm5 = vmor %vm240_vm3, %vm241_vm14  ;;  %v417_v55 = vsel %vm414_vm11, %v416_v53, %v412_v49  ;;  %v575_v60 = vand.u32 2147483648, %v2490_v21  ;;  %vm569_vm13 = vweird.f32 %v2490_v21 }
 0x425   :  { %v237_v23 = vsub.f32 1.0, %v236_v19  ;;  %2210 = vrcp.f32 %v2492_v22  ;;  %v573_v61 = vand.u32 2147483647, %v2490_v21  ;;  %v418_v62 = vmul.f32 %v2463_v42, %v417_v55 }
 0x426   :  { %v742_v6 = vand.u32 2147483648, %v2492_v22  ;;  %vm736_vm3 = vweird.f32 %v2492_v22  ;;  %v740_v8 = vand.u32 2147483647, %v2492_v22  ;;  %v2297_v55 = vmov 32.0  }
 0x427   :  { %v238_v26 = vmul.f32 %v2207_v17, %v237_v23  ;;  %vm574_vm15 = vcmp.eq.f32.partialorder %v573_v61, 8.507059e+37  ;;  %v790_v23 = vld [vmem:[%s3082_s2 + $0x58] sm:$0xff]  ;;  %2212 = vrcp.f32 %v2297_v55  ;;  %v915_v55 = vld [vmem:[%s3084_s4 + $0x8] sm:$0xff] }
 0x428   :  { %v743_v11 = vor.u32 1.1754944e-38, %v742_v6  ;;  %v881_v6 = vld [vmem:[%s3083_s3 + $0x18] sm:$0xff] }
 0x429   :  { %v239_v29 = vadd.f32 %v2207_v17, %v238_v26  ;;  %v787_v26 = vld [vmem:[%s3082_s2 + $0x40] sm:$0xff] }
 0x42a   :  { %v2209_v30 = vpop.eup %2208 }
 0x42b   :  { %v243_v37 = vsel %vm242_vm5, %v2207_v17, %v239_v29  ;;  %v565_v38 = vmul.f32 %v2209_v30, %v2490_v21  ;;  %v358_v39 = vpop.f32.mrf.mxu2  ;;  %v2211_v40 = vpop.eup %2210  ;;  %vm570_vm12 = vweird.f32 %v2209_v30  ;;  %vm741_vm5 = vcmp.eq.f32.partialorder %v740_v8, 8.507059e+37  ;;  %v784_v29 = vld [vmem:[%s3082_s2 + $0x28] sm:$0xff]  ;;  %v880_v8 = vld [vmem:[%s3083_s3 + $0x10] sm:$0xff] }
 0x42c   :  { %v248_v44 = vsel %vm245_vm7, %v247_v33, %v243_v37  ;;  %v420_v35 = vpop.permute.xlu2 %419  ;;  %362 = vrot.lane.b32.xlu2 %v358_v39, %s2294_s11  ;;  %v732_v50 = vmul.f32 %v2211_v40, %v2492_v22  ;;  %vm571_vm14 = vmor %vm569_vm13, %vm570_vm12  ;;  %vm737_vm2 = vweird.f32 %v2211_v40  ;;  %v791_v22 = vld [vmem:[%s3082_s2 + $0x60] sm:$0xff]  ;;  %v780_v33 = vld [vmem:[%s3082_s2 + $0x8] sm:$0xff]  ;;  %vm365_vm7 = vcmask 785920  }
 0x42d   :  { %v566_v46 = vsub.f32 1.0, %v565_v38  ;;  %440 = vmatpush.msrb.mxu0 %v420_v35  ;;  %v249_v47 = vmul.f32 %v2467_v54, %v248_v44  ;;  %v662_v54 = vmul.f32 %v2450_v16, %v661_v52  ;;  %v576_v16 = vor.u32 1.1754944e-38, %v575_v60  ;;  %vm738_vm4 = vmor %vm736_vm3, %vm737_vm2  ;;  %v2588_v35 = vld [vmem:[%s3085_s5] sm:$0xff] }
 0x42e   :  { %v733_v56 = vsub.f32 1.0, %v732_v50  ;;  %v795_v45 = vperm.slane %v2588_v35, 0 }
 0x42f   :  { %v567_v51 = vmul.f32 %v2209_v30, %v566_v46  ;;  %2070 = vmatmul.msk.f32.vlgmr.msra.gmra.mxu0 %vm149_vm1, %v249_v47 }
 0x430   :  { %v734_v0 = vmul.f32 %v2211_v40, %v733_v56  ;;  %v2213_v56 = vpop.eup %2212 }
 0x431   :  { %v568_v57 = vadd.f32 %v2209_v30, %v567_v51  ;;  %vm832_vm9 = vweird.f32 %v2213_v56 }
 0x432   :  { %v735_v5 = vadd.f32 %v2211_v40, %v734_v0 }
 0x433   :  { %v664_v58 = vpop.permute.xlu1 %663  ;;  %v523_v59 = vpop.f32.mrf.mxu2  ;;  %v572_v2 = vsel %vm571_vm14, %v2209_v30, %v568_v57  ;;  %v783_v30 = vld [vmem:[%s3082_s2 + $0x20] sm:$0xff]  ;;  %v828_v57 = vmul.f32 32.0, %v2213_v56 }
 0x434   :  { %526 = vst.msk [vmem:[#allocation2 + $0x8] sm:$0xff] %vm45_vm0, %v523_v59  ;;  %684 = vmatpush.msra.mxu2 %v664_v58  ;;  %v577_v4 = vsel %vm574_vm15, %v576_v16, %v572_v2  ;;  %v739_v10 = vsel %vm738_vm4, %v2211_v40, %v735_v5 }
 0x435   :  { %2085 = vmatmul.msk.f32.vlgmr.msra.gmra.mxu2 %vm149_vm1, %v662_v54  ;;  %v578_v42 = vmul.f32 %v2473_v1, %v577_v4  ;;  %v744_v12 = vsel %vm741_vm5, %v743_v11, %v739_v10  ;;  %v793_v1 = vld [vmem:[%s3082_s2 + $0x70] sm:$0xff]  ;;  %v829_v58 = vsub.f32 1.0, %v828_v57  ;;  %v882_v57 = vperm.slane %v2588_v35, 3 }
 0x436   :  { %v581_v63 = vpop.permute.xlu0 %580  ;;  %v745_v14 = vmul.f32 %v2476_v3, %v744_v12  ;;  %797 = vmatpush.msrb.mxu1 %v793_v1  ;;  %901 = vmatpush.msrb.mxu2 %v881_v6  ;;  %v929_v1 = vld [vmem:[%s3084_s4 + $0x78] sm:$0xff] }
 0x437   :  { %2076 = vmatmul.msk.f32.vlgmr.msrb.gmra.mxu0 %vm149_vm1, %v418_v62  ;;  %v830_v59 = vmul.f32 %v2213_v56, %v829_v58  ;;  %931 = vmatpush.msrb.mxu3 %v929_v1 }
 0x438   :  { %601 = vmatpush.msra.mxu0 %v581_v63  ;;  %798 = vmatpush.msrb.mxu1 %v792_v20 }
 0x439   :  { %v831_v54 = vadd.f32 %v2213_v56, %v830_v59  ;;  %902 = vmatpush.msrb.mxu2 %v880_v8 }
 0x43a   :  { %799 = vmatpush.msrb.mxu1 %v791_v22  ;;  %v926_v22 = vld [vmem:[%s3084_s4 + $0x60] sm:$0xff] }
 0x43b   :  { %v2595_v60 = vsel %vm832_vm9, %v2213_v56, %v831_v54  ;;  %v914_v56 = vld [vmem:[%s3084_s4] sm:$0xff] }
 0x43c   :  { %800 = vmatpush.msrb.mxu1 %v790_v23 }
 0x43e   :  { %v747_v9 = vpop.permute.xlu0 %746  ;;  %801 = vmatpush.msrb.mxu1 %v789_v24 }
 0x43f   :  { %2082 = vmatmul.msk.f32.vlgmr.msra.gmra.mxu0 %vm149_vm1, %v578_v42  ;;  %v879_v42 = vld [vmem:[%s3083_s3 + $0x8] sm:$0xff] }
 0x440   :  { %767 = vmatpush.msrb.mxu0 %v747_v9  ;;  %802 = vmatpush.msrb.mxu1 %v788_v25  ;;  %v878_v9 = vld [vmem:[%s3083_s3] sm:$0xff]  ;;  %v925_v25 = vld [vmem:[%s3084_s4 + $0x58] sm:$0xff] }
 0x441   :  { %903 = vmatpush.msrb.mxu2 %v879_v42 }
 0x442   :  { %803 = vmatpush.msrb.mxu1 %v787_v26 }
 0x443   :  { %904 = vmatpush.msrb.mxu2 %v878_v9 }
 0x444   :  { %804 = vmatpush.msrb.mxu1 %v786_v27  ;;  %v872_v27 = vperm.slane %v2588_v35, 1 }
 0x446   :  { %805 = vmatpush.msrb.mxu1 %v785_v28  ;;  %v924_v28 = vld [vmem:[%s3084_s4 + $0x50] sm:$0xff] }
 0x447   :  { %2088 = vmatmul.msk.f32.vlgmr.msrb.gmra.mxu0 %vm149_vm1, %v745_v14 }
 0x448   :  { %806 = vmatpush.msrb.mxu1 %v784_v29 }
 0x44a   :  { %807 = vmatpush.msrb.mxu1 %v783_v30 }
 0x44c   :  { %808 = vmatpush.msrb.mxu1 %v782_v31  ;;  %v875_v31 = vperm.slane %v2588_v35, 2 }
 0x44e   :  { %809 = vmatpush.msrb.mxu1 %v781_v32  ;;  %v923_v32 = vld [vmem:[%s3084_s4 + $0x48] sm:$0xff] }
 0x450   :  { %810 = vmatpush.msrb.mxu1 %v780_v33 }
 0x452   :  { %811 = vmatpush.msrb.mxu1 %v779_v34  ;;  %v922_v34 = vld [vmem:[%s3084_s4 + $0x40] sm:$0xff] }
 0x486   :  { %v363_v37 = vpop.permute.xlu2 %362 }
 0x4ac   :  { %v274_v17 = vpop.f32.mrf.mxu0 }
 0x4ad   :  { %278 = vrot.lane.b32.xlu1 %v274_v17, %s2296_s12  ;;  %v928_v17 = vld [vmem:[%s3084_s4 + $0x70] sm:$0xff] }
 0x4ae   :  { %932 = vmatpush.msrb.mxu3 %v928_v17 }
 0x4b4   :  { %v442_v18 = vpop.f32.mrf.mxu0 }
 0x4b5   :  { %446 = vrot.lane.b32.xlu0 %v442_v18, %s2295_s0 }
 0x4b8   :  { %v686_v19 = vpop.f32.mrf.mxu2 }
 0x4b9   :  { %690 = vrot.lane.b32.xlu2 %v686_v19, %s2294_s11  ;;  %v927_v19 = vld [vmem:[%s3084_s4 + $0x68] sm:$0xff] }
 0x4ba   :  { %933 = vmatpush.msrb.mxu3 %v927_v19  ;;  %v2101_v19 = vld [vmem:[%s3081_s1 + $0xa8] sm:$0xff] }
 0x4bb   :  { %1039 = vmatpush.msra.mxu0 %v2101_v19 }
 0x4bc   :  { %v603_v3 = vpop.f32.mrf.mxu0  ;;  %934 = vmatpush.msrb.mxu3 %v926_v22  ;;  %v2095_v22 = vld [vmem:[%s3081_s1 + $0x78] sm:$0xff] }
 0x4bd   :  { %607 = vrot.lane.b32.xlu1 %v603_v3, %s2296_s12 }
 0x4be   :  { %935 = vmatpush.msrb.mxu3 %v925_v25  ;;  %v2093_v25 = vld [vmem:[%s3081_s1 + $0x68] sm:$0xff] }
 0x4c0   :  { %936 = vmatpush.msrb.mxu3 %v924_v28 }
 0x4c2   :  { %937 = vmatpush.msrb.mxu3 %v923_v32  ;;  %v2100_v32 = vld [vmem:[%s3081_s1 + $0xa0] sm:$0xff] }
 0x4c4   :  { %v769_v21 = vpop.f32.mrf.mxu0  ;;  %938 = vmatpush.msrb.mxu3 %v922_v34  ;;  %v2097_v34 = vld [vmem:[%s3081_s1 + $0x88] sm:$0xff] }
 0x4c5   :  { %773 = vrot.lane.b32.xlu0 %v769_v21, %s2295_s0 }
 0x513   :  { %v691_v41 = vpop.permute.xlu2 %690 }
 0x51f   :  { %v279_v36 = vpop.permute.xlu1 %278 }
 0x520   :  { %282 = vst.msk [vmem:[#allocation2] sm:$0xff] %vm281_vm6, %v279_v36 }
 0x521   :  { %366 = vst.msk [vmem:[#allocation2] sm:$0xff] %vm365_vm7, %v363_v37 }
 0x527   :  { %v447_v38 = vpop.permute.xlu0 %446 }
 0x528   :  { %450 = vst.msk [vmem:[#allocation2] sm:$0xff] %vm449_vm8, %v447_v38  ;;  %v921_v38 = vld [vmem:[%s3084_s4 + $0x38] sm:$0xff] }
 0x529   :  { %939 = vmatpush.msrb.mxu3 %v921_v38 }
 0x52f   :  { %v608_v39 = vpop.permute.xlu1 %607  ;;  %v777_v40 = vld [vmem:[#allocation2] sm:$0xff] }
 0x530   :  { %610 = vst.msk [vmem:[#allocation2 + $0x8] sm:$0xff] %vm281_vm6, %v608_v39  ;;  %812 = vmatmul.f32.vlgmr.msrb.gmra.mxu1 %v777_v40  ;;  %v920_v40 = vld [vmem:[%s3084_s4 + $0x30] sm:$0xff] }
 0x531   :  { %693 = vst.msk [vmem:[#allocation2 + $0x8] sm:$0xff] %vm365_vm7, %v691_v41  ;;  %940 = vmatpush.msrb.mxu3 %v920_v40 }
 0x537   :  { %v774_v43 = vpop.permute.xlu0 %773 }
 0x538   :  { %776 = vst.msk [vmem:[#allocation2 + $0x8] sm:$0xff] %vm449_vm8, %v774_v43  ;;  %v919_v43 = vld [vmem:[%s3084_s4 + $0x28] sm:$0xff] }
 0x539   :  { %941 = vmatpush.msrb.mxu3 %v919_v43 }
 0x53f   :  { %v778_v44 = vld [vmem:[#allocation2 + $0x8] sm:$0xff] }
 0x540   :  { %815 = vmatmul.f32.gmra.mxu1 %v778_v44 }
 0x5ad   :  { %v813_v46 = vpop.f32.mrf.mxu1 }
 0x5ae   :  { %v814_v47 = vadd.f32 %v813_v46, %v795_v45 }
 0x5b0   :  { %v819_v48 = vadd.f32 %v814_v47, %v2369_v7  ;;  %v917_v47 = vld [vmem:[%s3084_s4 + $0x18] sm:$0xff] }
 0x5b2   :  { %v821_v49 = vsel %vm45_vm0, %v819_v48, 0.0 }
 0x5b3   :  { %822 = vadd.xlane.f32.xlu1 %v821_v49 }
 0x5bd   :  { %v816_v50 = vpop.f32.mrf.mxu1 }
 0x5be   :  { %v817_v51 = vadd.f32 %v816_v50, %v795_v45  ;;  %v918_v45 = vld [vmem:[%s3084_s4 + $0x20] sm:$0xff] }
 0x5bf   :  { %942 = vmatpush.msrb.mxu3 %v918_v45 }
 0x5c0   :  { %v820_v52 = vadd.f32 %v817_v51, %v2393_v13 }
 0x5c1   :  { %943 = vmatpush.msrb.mxu3 %v917_v47  ;;  %v1003_v47 = vperm.slane %v2588_v35, 6 }
 0x5c2   :  { %v824_v53 = vsel %vm45_vm0, %v820_v52, 0.0 }
 0x5c3   :  { %825 = vadd.xlane.f32.xlu2 %v824_v53  ;;  %v916_v53 = vld [vmem:[%s3084_s4 + $0x10] sm:$0xff] }
 0x5c4   :  { %944 = vmatpush.msrb.mxu3 %v916_v53 }
 0x5c6   :  { %945 = vmatpush.msrb.mxu3 %v915_v55 }
 0x5c8   :  { %946 = vmatpush.msrb.mxu3 %v914_v56 }
 0x626   :  { %v823_v7 = vpop.xlane.xlu1 %822 }
 0x627   :  { %v834_v61 = vmul.f32 %v2595_v60, %v823_v7 }
 0x629   :  { %v836_v62 = vsub.f32 %v819_v48, %v834_v61 }
 0x62b   :  { %v838_v63 = vmul.f32 %v836_v62, %v836_v62 }
 0x62d   :  { %v840_v13 = vsel %vm45_vm0, %v838_v63, 0.0  ;;  %v930_v63 = vperm.slane %v2588_v35, 4 }
 0x62e   :  { %841 = vadd.xlane.f32.xlu0 %v840_v13 }
 0x636   :  { %v826_v0 = vpop.xlane.xlu2 %825 }
 0x637   :  { %v835_v2 = vmul.f32 %v2595_v60, %v826_v0 }
 0x639   :  { %v2600_v16 = vsub.f32 %v820_v52, %v835_v2 }
 0x63b   :  { %v839_v4 = vmul.f32 %v2600_v16, %v2600_v16 }
 0x63d   :  { %v843_v5 = vsel %vm45_vm0, %v839_v4, 0.0 }
 0x63e   :  { %844 = vadd.xlane.f32.xlu1 %v843_v5 }
 0x6a1   :  { %v842_v10 = vpop.xlane.xlu0 %841 }
 0x6a2   :  { %v846_v11 = vmul.f32 %v842_v10, %v2595_v60 }
 0x6a4   :  { %v848_v12 = vadd.f32 1e-05, %v846_v11 }
 0x6a6   :  { %2214 = vrsqrt.f32 %v848_v12  ;;  %vm856_vm11 = vweird.f32 %v848_v12 }
 0x6ac   :  { %v2215_v14 = vpop.eup %2214 }
 0x6ad   :  { %v851_v15 = vmul.f32 %v2215_v14, %v848_v12  ;;  %vm857_vm10 = vweird.f32 %v2215_v14 }
 0x6ae   :  { %vm858_vm12 = vmor %vm856_vm11, %vm857_vm10 }
 0x6af   :  { %v852_v18 = vmul.f32 %v2215_v14, %v851_v15 }
 0x6b1   :  { %v853_v3 = vmul.f32 0.5, %v852_v18  ;;  %v845_v21 = vpop.xlane.xlu1 %844 }
 0x6b2   :  { %v847_v20 = vmul.f32 %v845_v21, %v2595_v60  ;;  %v2098_v21 = vld [vmem:[%s3081_s1 + $0x90] sm:$0xff] }
 0x6b3   :  { %v854_v23 = vsub.f32 1.5, %v853_v3  ;;  %v2102_v3 = vld [vmem:[%s3081_s1 + $0xb0] sm:$0xff]  ;;  %1040 = vmatpush.msra.mxu0 %v2098_v21 }
 0x6b4   :  { %v849_v24 = vadd.f32 1e-05, %v847_v20  ;;  %1062 = vmatpush.msra.mxu2 %v2102_v3  ;;  %v2099_v20 = vld [vmem:[%s3081_s1 + $0x98] sm:$0xff] }
 0x6b5   :  { %v855_v26 = vmul.f32 %v2215_v14, %v854_v23  ;;  %v2096_v23 = vld [vmem:[%s3081_s1 + $0x80] sm:$0xff]  ;;  %1041 = vmatpush.msra.mxu0 %v2095_v22 }
 0x6b6   :  { %2216 = vrsqrt.f32 %v849_v24  ;;  %vm866_vm14 = vweird.f32 %v849_v24  ;;  %1063 = vmatpush.msra.mxu2 %v2099_v20 }
 0x6b7   :  { %v859_v29 = vsel %vm858_vm12, %v2215_v14, %v855_v26 }
 0x6b8   :  { %v870_v30 = vmul.f32 %v859_v29, %v836_v62  ;;  %1064 = vmatpush.msra.mxu2 %v2096_v23 }
 0x6ba   :  { %v873_v33 = vmul.f32 %v872_v27, %v870_v30  ;;  %1065 = vmatpush.msra.mxu2 %v2093_v25 }
 0x6bc   :  { %v2217_v36 = vpop.eup %2216  ;;  %v876_v37 = vadd.f32 %v875_v31, %v873_v33 }
 0x6bd   :  { %v861_v39 = vmul.f32 %v2217_v36, %v849_v24  ;;  %vm867_vm13 = vweird.f32 %v2217_v36  ;;  %v2092_v24 = vld [vmem:[%s3081_s1 + $0x60] sm:$0xff] }
 0x6be   :  { %2089 = vmatmul.msk.f32.vlgmr.msrb.gmra.mxu2 %vm45_vm0, %v876_v37  ;;  %vm868_vm15 = vmor %vm866_vm14, %vm867_vm13  ;;  %1042 = vmatpush.msra.mxu0 %v2092_v24 }
 0x6bf   :  { %v862_v41 = vmul.f32 %v2217_v36, %v861_v39  ;;  %v2094_v39 = vld [vmem:[%s3081_s1 + $0x70] sm:$0xff] }
 0x6c1   :  { %v863_v44 = vmul.f32 0.5, %v862_v41 }
 0x6c3   :  { %v864_v46 = vsub.f32 1.5, %v863_v44  ;;  %v1000_v44 = vperm.slane %v2588_v35, 5 }
 0x6c5   :  { %v865_v48 = vmul.f32 %v2217_v36, %v864_v46 }
 0x6c7   :  { %v869_v49 = vsel %vm868_vm15, %v2217_v36, %v865_v48 }
 0x6c8   :  { %v871_v50 = vmul.f32 %v869_v49, %v2600_v16 }
 0x6ca   :  { %v874_v51 = vmul.f32 %v872_v27, %v871_v50 }
 0x6cc   :  { %v877_v52 = vadd.f32 %v875_v31, %v874_v51  ;;  %v2103_v31 = vld [vmem:[%s3081_s1 + $0xb8] sm:$0xff] }
 0x6cd   :  { %1085 = vmatpush.msrb.mxu0 %v2103_v31 }
 0x6ce   :  { %2090 = vmatmul.msk.f32.gmra.mxu2 %vm45_vm0, %v877_v52 }
 0x6cf   :  { %1086 = vmatpush.msrb.mxu0 %v2100_v32 }
 0x6d1   :  { %1087 = vmatpush.msrb.mxu0 %v2097_v34 }
 0x6d3   :  { %1088 = vmatpush.msrb.mxu0 %v2094_v39 }
 0x741   :  { %v906_v58 = vpop.f32.mrf.mxu2 }
 0x742   :  { %v907_v59 = vadd.f32 %v906_v58, %v882_v57 }
 0x744   :  { %v912_v54 = vmax.f32 %v907_v59, 0.0 }
 0x746   :  { %947 = vmatmul.f32.vlgmr.msrb.gmra.mxu3 %v912_v54 }
 0x751   :  { %v909_v7 = vpop.f32.mrf.mxu2 }
 0x752   :  { %v910_v61 = vadd.f32 %v909_v7, %v882_v57 }
 0x754   :  { %v913_v62 = vmax.f32 %v910_v61, 0.0 }
 0x756   :  { %950 = vmatmul.f32.gmra.mxu3 %v913_v62 }
 0x7c9   :  { %v948_v13 = vpop.f32.mrf.mxu3 }
 0x7ca   :  { %v949_v0 = vadd.f32 %v948_v13, %v930_v63 }
 0x7cc   :  { %v954_v2 = vadd.f32 %v949_v0, %v876_v37 }
 0x7ce   :  { %v956_v16 = vsel %vm45_vm0, %v954_v2, 0.0 }
 0x7cf   :  { %957 = vadd.xlane.f32.xlu2 %v956_v16 }
 0x7d9   :  { %v951_v4 = vpop.f32.mrf.mxu3 }
 0x7da   :  { %v952_v5 = vadd.f32 %v951_v4, %v930_v63 }
 0x7dc   :  { %v955_v6 = vadd.f32 %v952_v5, %v877_v52 }
 0x7de   :  { %v959_v8 = vsel %vm45_vm0, %v955_v6, 0.0 }
 0x7df   :  { %960 = vadd.xlane.f32.xlu0 %v959_v8 }
 0x842   :  { %v958_v42 = vpop.xlane.xlu2 %957 }
 0x843   :  { %v962_v9 = vmul.f32 %v958_v42, %v2595_v60 }
 0x845   :  { %v964_v10 = vsub.f32 %v954_v2, %v962_v9 }
 0x847   :  { %v966_v11 = vmul.f32 %v964_v10, %v964_v10 }
 0x849   :  { %v968_v12 = vsel %vm45_vm0, %v966_v11, 0.0 }
 0x84a   :  { %969 = vadd.xlane.f32.xlu1 %v968_v12 }
 0x852   :  { %v961_v14 = vpop.xlane.xlu0 %960 }
 0x853   :  { %v963_v15 = vmul.f32 %v961_v14, %v2595_v60 }
 0x855   :  { %v2679_v1 = vsub.f32 %v955_v6, %v963_v15 }
 0x857   :  { %v967_v17 = vmul.f32 %v2679_v1, %v2679_v1 }
 0x859   :  { %v971_v18 = vsel %vm45_vm0, %v967_v17, 0.0 }
 0x85a   :  { %972 = vadd.xlane.f32.xlu2 %v971_v18 }
 0x8bd   :  { %v970_v26 = vpop.xlane.xlu1 %969 }
 0x8be   :  { %v974_v27 = vmul.f32 %v970_v26, %v2595_v60 }
 0x8c0   :  { %v976_v28 = vadd.f32 1e-05, %v974_v27 }
 0x8c2   :  { %2218 = vrsqrt.f32 %v976_v28  ;;  %vm984_vm3 = vweird.f32 %v976_v28 }
 0x8c8   :  { %v2219_v29 = vpop.eup %2218 }
 0x8c9   :  { %v979_v30 = vmul.f32 %v2219_v29, %v976_v28  ;;  %vm985_vm2 = vweird.f32 %v2219_v29 }
 0x8ca   :  { %vm986_vm4 = vmor %vm984_vm3, %vm985_vm2 }
 0x8cb   :  { %v980_v33 = vmul.f32 %v2219_v29, %v979_v30 }
 0x8cd   :  { %v981_v36 = vmul.f32 0.5, %v980_v33  ;;  %v973_v37 = vpop.xlane.xlu2 %972 }
 0x8ce   :  { %v975_v38 = vmul.f32 %v973_v37, %v2595_v60 }
 0x8cf   :  { %v982_v40 = vsub.f32 1.5, %v981_v36 }
 0x8d0   :  { %v977_v41 = vadd.f32 1e-05, %v975_v38 }
 0x8d1   :  { %v983_v43 = vmul.f32 %v2219_v29, %v982_v40 }
 0x8d2   :  { %2220 = vrsqrt.f32 %v977_v41  ;;  %vm994_vm9 = vweird.f32 %v977_v41 }
 0x8d3   :  { %v987_v45 = vsel %vm986_vm4, %v2219_v29, %v983_v43 }
 0x8d4   :  { %v998_v46 = vmul.f32 %v987_v45, %v964_v10 }
 0x8d6   :  { %v1001_v48 = vmul.f32 %v1000_v44, %v998_v46 }
 0x8d8   :  { %v2221_v49 = vpop.eup %2220  ;;  %v2724_v50 = vadd.f32 %v1003_v47, %v1001_v48 }
 0x8d9   :  { %v989_v51 = vmul.f32 %v2221_v49, %v977_v41  ;;  %vm995_vm5 = vweird.f32 %v2221_v49 }
 0x8da   :  { %2104 = vmatmul.msk.f32.vlgmr.msra.gmra.mxu0 %vm45_vm0, %v2724_v50  ;;  %2106 = vmatmul.msk.f32.vlgmr.msra.gmra.mxu2 %vm45_vm0, %v2724_v50  ;;  %vm996_vm10 = vmor %vm994_vm9, %vm995_vm5 }
 0x8db   :  { %v990_v52 = vmul.f32 %v2221_v49, %v989_v51 }
 0x8dd   :  { %v991_v53 = vmul.f32 0.5, %v990_v52 }
 0x8df   :  { %v992_v55 = vsub.f32 1.5, %v991_v53 }
 0x8e1   :  { %v993_v56 = vmul.f32 %v2221_v49, %v992_v55 }
 0x8e3   :  { %v997_v57 = vsel %vm996_vm10, %v2221_v49, %v993_v56 }
 0x8e4   :  { %v999_v35 = vmul.f32 %v997_v57, %v2679_v1 }
 0x8e6   :  { %v1002_v58 = vmul.f32 %v1000_v44, %v999_v35 }
 0x8e8   :  { %v2731_v59 = vadd.f32 %v1003_v47, %v1002_v58 }
 0x8ea   :  { %2105 = vmatmul.msk.f32.gmra.mxu0 %vm45_vm0, %v2731_v59  ;;  %2107 = vmatmul.msk.f32.gmra.mxu2 %vm45_vm0, %v2731_v59 }
 0x8f2   :  { %2108 = vmatmul.msk.f32.vlgmr.msrb.gmra.mxu0 %vm45_vm0, %v2724_v50 }
 0x8fa   :  { %2109 = vmatmul.msk.f32.gmra.mxu0 %vm45_vm0, %v2731_v59 }
 0x957   :  { %v1044_v54 = vpop.f32.mrf.mxu0 }
 0x958   :  { %v1096_v7 = vmul.f32 0.4204482, %v1044_v54 }
 0x95a   :  { %1172 = vrot.lane.b32.xlu1 %v1096_v7, %s2295_s0 }
 0x95d   :  { %v1067_v61 = vpop.f32.mrf.mxu2 }
 0x95e   :  { %v1097_v62 = vmul.f32 0.4204482, %v1067_v61 }
 0x960   :  { %1258 = vrot.lane.b32.xlu2 %v1097_v62, %s2294_s11  ;;  %1174 = vrot.lane.b32.xlu0 %v1097_v62, %s2295_s0 }
 0x961   :  { %2110 = vmatpush.xpose.msk.msrb.mxu2 %vm45_vm0, %v1097_v62 }
 0x962   :  { %1256 = vrot.lane.b32.xlu1 %v1096_v7, %s2294_s11 }
 0x964   :  { %2111 = vmatmul.msk.f32.vlgmr.msrb.gmra.mxu2 %vm45_vm0, %v1096_v7 }
 0x967   :  { %v1047_v63 = vpop.f32.mrf.mxu0 }
 0x968   :  { %v1422_v13 = vmul.f32 0.4204482, %v1047_v63  ;;  %1341 = vrot.lane.b32.xlu0 %v1097_v62, %s2296_s12 }
 0x96a   :  { %1498 = vrot.lane.b32.xlu1 %v1422_v13, %s2295_s0 }
 0x96d   :  { %v1070_v0 = vpop.f32.mrf.mxu2 }
 0x96e   :  { %v1423_v2 = vmul.f32 0.4204482, %v1070_v0 }
 0x96f   :  { %v2749_v16 = vpop.f32.mrf.mxu0 }
 0x970   :  { %1339 = vrot.lane.b32.xlu0 %v1096_v7, %s2296_s12  ;;  %1500 = vrot.lane.b32.xlu2 %v1423_v2, %s2295_s0 }
 0x971   :  { %1166 = vmatpush.msra.mxu0 %v2749_v16 }
 0x972   :  { %1582 = vrot.lane.b32.xlu1 %v1422_v13, %s2294_s11 }
 0x978   :  { %1584 = vrot.lane.b32.xlu0 %v1423_v2, %s2294_s11  ;;  %1667 = vrot.lane.b32.xlu2 %v1423_v2, %s2296_s12 }
 0x980   :  { %1665 = vrot.lane.b32.xlu0 %v1422_v13, %s2296_s12 }
 0x9ba   :  { %v1259_v4 = vpop.permute.xlu2 %1258 }
 0x9bb   :  { %2116 = vmatpush.xpose.msk.msra.mxu3 %vm45_vm0, %v1259_v4 }
 0x9bf   :  { %2122 = vmatpush.xpose.msk.msrb.mxu3 %vm45_vm0, %v1423_v2 }
 0x9ca   :  { %v1501_v42 = vpop.permute.xlu2 %1500 }
 0x9cc   :  { %v1173_v5 = vpop.permute.xlu1 %1172 }
 0x9d2   :  { %v1175_v6 = vpop.permute.xlu0 %1174  ;;  %v1668_v11 = vpop.permute.xlu2 %1667 }
 0x9d3   :  { %2113 = vmatpush.xpose.msk.msra.mxu1 %vm45_vm0, %v1175_v6 }
 0x9d4   :  { %v1257_v8 = vpop.permute.xlu1 %1256 }
 0x9d5   :  { %2117 = vmatmul.msk.f32.vlgmr.msra.gmra.mxu3 %vm45_vm0, %v1257_v8 }
 0x9d6   :  { %2114 = vmatmul.msk.f32.vlgmr.msra.gmra.mxu1 %vm45_vm0, %v1173_v5 }
 0x9da   :  { %v1342_v9 = vpop.permute.xlu0 %1341 }
 0x9db   :  { %2119 = vmatpush.xpose.msk.msrb.mxu1 %vm45_vm0, %v1342_v9 }
 0x9dc   :  { %v1499_v12 = vpop.permute.xlu1 %1498 }
 0x9dd   :  { %2123 = vmatmul.msk.f32.vlgmr.msrb.gmra.mxu3 %vm45_vm0, %v1422_v13 }
 0x9df   :  { %2125 = vmatpush.xpose.msk.msra.mxu1 %vm45_vm0, %v1501_v42 }
 0x9e2   :  { %v1340_v10 = vpop.permute.xlu0 %1339 }
 0x9e3   :  { %2120 = vmatmul.msk.f32.vlgmr.msrb.gmra.mxu1 %vm45_vm0, %v1340_v10 }
 0x9e4   :  { %2131 = vmatpush.xpose.msk.msrb.mxu1 %vm45_vm0, %v1668_v11  ;;  %v1583_v17 = vpop.permute.xlu1 %1582 }
 0x9e7   :  { %v1121_v14 = vpop.f32.mrf.mxu2 }
 0x9e8   :  { %v1124_v15 = vsel %vm149_vm1, %v1121_v14, -inf }
 0x9e9   :  { %1125 = vmax.xlane.f32.xlu1 %v1124_v15 }
 0x9ea   :  { %v1585_v1 = vpop.permute.xlu0 %1584 }
 0x9eb   :  { %2126 = vmatmul.msk.f32.vlgmr.msra.gmra.mxu1 %vm45_vm0, %v1499_v12  ;;  %2128 = vmatpush.xpose.msk.msra.mxu3 %vm45_vm0, %v1585_v1 }
 0x9ee   :  { %2129 = vmatmul.msk.f32.vlgmr.msra.gmra.mxu3 %vm45_vm0, %v1583_v17 }
 0x9f2   :  { %v1666_v18 = vpop.permute.xlu0 %1665 }
 0x9f3   :  { %2132 = vmatmul.msk.f32.vlgmr.msrb.gmra.mxu1 %vm45_vm0, %v1666_v18 }
 0xa53   :  { %v1197_v19 = vpop.f32.mrf.mxu1 }
 0xa54   :  { %v1200_v3 = vsel %vm149_vm1, %v1197_v19, -inf }
 0xa55   :  { %1201 = vmax.xlane.f32.xlu2 %v1200_v3 }
 0xa58   :  { %v1281_v21 = vpop.f32.mrf.mxu3 }
 0xa59   :  { %v1284_v22 = vsel %vm149_vm1, %v1281_v21, -inf }
 0xa5c   :  { %v1126_v20 = vpop.xlane.xlu1 %1125 }
 0xa5d   :  { %v1127_v23 = vsub.f32 %v1121_v14, %v1126_v20  ;;  %1285 = vmax.xlane.f32.xlu2 %v1284_v22 }
 0xa5f   :  { %v1128_v24 = vmul.f32 1.442695, %v1127_v23  ;;  %v2820_v23 = vpop.f32.mrf.mxu0 }
 0xa60   :  { %v1364_v25 = vpop.f32.mrf.mxu1  ;;  %v1447_v27 = vpop.f32.mrf.mxu3 }
 0xa61   :  { %2222 = vpow2.f32 %v1128_v24  ;;  %v1367_v26 = vsel %vm149_vm1, %v1364_v25, -inf  ;;  %v1450_v31 = vsel %vm149_vm1, %v1447_v27, -inf }
 0xa62   :  { %1368 = vmax.xlane.f32.xlu0 %v1367_v26 }
 0xa67   :  { %v2776_v28 = vpop.eup %2222 }
 0xa68   :  { %v1130_v29 = vsel %vm149_vm1, %v2776_v28, 0.0  ;;  %v1523_v30 = vpop.f32.mrf.mxu1 }
 0xa69   :  { %1131 = vadd.xlane.f32.xlu2 %v1130_v29  ;;  %v1526_v32 = vsel %vm149_vm1, %v1523_v30, -inf }
 0xa6a   :  { %1451 = vmax.xlane.f32.xlu0 %v1450_v31  ;;  %1527 = vmax.xlane.f32.xlu1 %v1526_v32 }
 0xa70   :  { %v2782_v33 = vpop.f32.mrf.mxu1 }
 0xa71   :  { %v1607_v34 = vpop.f32.mrf.mxu3  ;;  %v1693_v36 = vsel %vm149_vm1, %v2782_v33, -inf }
 0xa72   :  { %1694 = vmax.xlane.f32.xlu2 %v1693_v36  ;;  %v1610_v37 = vsel %vm149_vm1, %v1607_v34, -inf }
 0xa73   :  { %1611 = vmax.xlane.f32.xlu1 %v1610_v37 }
 0xa7e   :  { %1391 = vrot.lane.b32.xlu0 %v2749_v16, %s2296_s12 }
 0xa8c   :  { %1225 = vrot.lane.b32.xlu1 %v2749_v16, %s2295_s0 }
 0xac8   :  { %v1202_v38 = vpop.xlane.xlu2 %1201 }
 0xac9   :  { %v1203_v39 = vsub.f32 %v1197_v19, %v1202_v38 }
 0xacb   :  { %v1204_v40 = vmul.f32 1.442695, %v1203_v39 }
 0xacd   :  { %2224 = vpow2.f32 %v1204_v40 }
 0xad0   :  { %v1286_v41 = vpop.xlane.xlu2 %1285 }
 0xad1   :  { %v1287_v43 = vsub.f32 %v1281_v21, %v1286_v41 }
 0xad3   :  { %v2791_v44 = vpop.eup %2224  ;;  %v1288_v45 = vmul.f32 1.442695, %v1287_v43 }
 0xad4   :  { %v1206_v46 = vsel %vm149_vm1, %v2791_v44, 0.0 }
 0xad5   :  { %2226 = vpow2.f32 %v1288_v45  ;;  %v1369_v47 = vpop.xlane.xlu0 %1368  ;;  %1207 = vadd.xlane.f32.xlu0 %v1206_v46 }
 0xad6   :  { %v1370_v48 = vsub.f32 %v1364_v25, %v1369_v47 }
 0xad8   :  { %v1371_v49 = vmul.f32 1.442695, %v1370_v48 }
 0xada   :  { %2228 = vpow2.f32 %v1371_v49 }
 0xadb   :  { %v2795_v51 = vpop.eup %2226 }
 0xadc   :  { %v1132_v52 = vpop.xlane.xlu2 %1131  ;;  %v1290_v53 = vsel %vm149_vm1, %v2795_v51, 0.0 }
 0xadd   :  { %2230 = vrcp.f32 %v1132_v52  ;;  %v1452_v55 = vpop.xlane.xlu0 %1451  ;;  %v1528_v56 = vpop.xlane.xlu1 %1527  ;;  %1291 = vadd.xlane.f32.xlu0 %v1290_v53  ;;  %v1144_v4 = vand.u32 2147483648, %v1132_v52  ;;  %v1142_v42 = vand.u32 2147483647, %v1132_v52  ;;  %vm1138_vm12 = vweird.f32 %v1132_v52 }
 0xade   :  { %v1453_v57 = vsub.f32 %v1447_v27, %v1452_v55  ;;  %v1529_v35 = vsub.f32 %v1523_v30, %v1528_v56 }
 0xadf   :  { %v1145_v1 = vor.u32 1.1754944e-38, %v1144_v4  ;;  %vm1143_vm14 = vcmp.eq.f32.partialorder %v1142_v42, 8.507059e+37 }
 0xae0   :  { %v2799_v58 = vpop.eup %2228  ;;  %v1454_v54 = vmul.f32 1.442695, %v1453_v57  ;;  %v1530_v7 = vmul.f32 1.442695, %v1529_v35 }
 0xae1   :  { %v1373_v61 = vsel %vm149_vm1, %v2799_v58, 0.0 }
 0xae2   :  { %2232 = vpow2.f32 %v1454_v54  ;;  %1374 = vadd.xlane.f32.xlu1 %v1373_v61 }
 0xae3   :  { %v2231_v62 = vpop.eup %2230  ;;  %2234 = vpow2.f32 %v1530_v7 }
 0xae4   :  { %v1134_v63 = vmul.f32 %v2231_v62, %v1132_v52  ;;  %vm1139_vm11 = vweird.f32 %v2231_v62 }
 0xae5   :  { %v1695_v0 = vpop.xlane.xlu2 %1694  ;;  %vm1140_vm13 = vmor %vm1138_vm12, %vm1139_vm11 }
 0xae6   :  { %v1135_v13 = vsub.f32 1.0, %v1134_v63  ;;  %v1612_v2 = vpop.xlane.xlu1 %1611  ;;  %v1696_v10 = vsub.f32 %v2782_v33, %v1695_v0 }
 0xae7   :  { %v1613_v5 = vsub.f32 %v1607_v34, %v1612_v2 }
 0xae8   :  { %v2803_v6 = vpop.eup %2232  ;;  %v1136_v8 = vmul.f32 %v2231_v62, %v1135_v13  ;;  %v1697_v19 = vmul.f32 1.442695, %v1696_v10 }
 0xae9   :  { %v2805_v9 = vpop.eup %2234  ;;  %v1614_v11 = vmul.f32 1.442695, %v1613_v5  ;;  %v1456_v12 = vsel %vm149_vm1, %v2803_v6, 0.0 }
 0xaea   :  { %v1137_v14 = vadd.f32 %v2231_v62, %v1136_v8  ;;  %v1532_v15 = vsel %vm149_vm1, %v2805_v9, 0.0  ;;  %1457 = vadd.xlane.f32.xlu0 %v1456_v12 }
 0xaeb   :  { %2236 = vpow2.f32 %v1614_v11  ;;  %1533 = vadd.xlane.f32.xlu2 %v1532_v15 }
 0xaec   :  { %v1141_v17 = vsel %vm1140_vm13, %v2231_v62, %v1137_v14  ;;  %2238 = vpow2.f32 %v1697_v19 }
 0xaed   :  { %v1146_v18 = vsel %vm1143_vm14, %v1145_v1, %v1141_v17 }
 0xaee   :  { %v1147_v3 = vmul.f32 %v2776_v28, %v1146_v18 }
 0xaf0   :  { %2112 = vmatmul.msk.f32.vlgmr.msra.gmra.mxu0 %vm149_vm1, %v1147_v3  ;;  %v1392_v26 = vpop.permute.xlu0 %1391 }
 0xaf1   :  { %v2814_v21 = vpop.eup %2236 }
 0xaf2   :  { %v1616_v20 = vsel %vm149_vm1, %v2814_v21, 0.0  ;;  %v2818_v22 = vpop.eup %2238 }
 0xaf3   :  { %1617 = vadd.xlane.f32.xlu2 %v1616_v20  ;;  %v1699_v24 = vsel %vm149_vm1, %v2818_v22, 0.0 }
 0xafb   :  { %1551 = vrot.lane.b32.xlu1 %v2820_v23, %s2295_s0  ;;  %1700 = vadd.xlane.f32.xlu2 %v1699_v24 }
 0xafe   :  { %v1226_v25 = vpop.permute.xlu1 %1225  ;;  %1717 = vrot.lane.b32.xlu0 %v2820_v23, %s2296_s12 }
 0xaff   :  { %1246 = vmatpush.msra.mxu2 %v1226_v25 }
 0xb01   :  { %1412 = vmatpush.msrb.mxu2 %v1392_v26 }
 0xb03   :  { %1634 = vrot.lane.b32.xlu1 %v2820_v23, %s2294_s11 }
 0xb13   :  { %1308 = vrot.lane.b32.xlu2 %v2749_v16, %s2294_s11 }
 0xb48   :  { %v1208_v27 = vpop.xlane.xlu0 %1207 }
 0xb49   :  { %2240 = vrcp.f32 %v1208_v27  ;;  %v1220_v31 = vand.u32 2147483648, %v1208_v27  ;;  %v1218_v33 = vand.u32 2147483647, %v1208_v27  ;;  %vm1214_vm2 = vweird.f32 %v1208_v27 }
 0xb4b   :  { %v1221_v38 = vor.u32 1.1754944e-38, %v1220_v31  ;;  %vm1219_vm4 = vcmp.eq.f32.partialorder %v1218_v33, 8.507059e+37 }
 0xb4f   :  { %v2241_v28 = vpop.eup %2240 }
 0xb50   :  { %v1210_v29 = vmul.f32 %v2241_v28, %v1208_v27  ;;  %vm1215_vm15 = vweird.f32 %v2241_v28  ;;  %v2832_v34 = vpop.xlane.xlu0 %1291 }
 0xb51   :  { %vm1216_vm3 = vmor %vm1214_vm2, %vm1215_vm15  ;;  %v1304_v15 = vand.u32 2147483648, %v2832_v34  ;;  %vm1298_vm2 = vweird.f32 %v2832_v34  ;;  %v1302_v18 = vand.u32 2147483647, %v2832_v34 }
 0xb52   :  { %v1211_v30 = vsub.f32 1.0, %v1210_v29 }
 0xb53   :  { %v1305_v29 = vor.u32 1.1754944e-38, %v1304_v15  ;;  %v2141_v15 = vld [vmem:[%s3082_s2 + $0xb8] sm:$0xff] }
 0xb54   :  { %v1212_v32 = vmul.f32 %v2241_v28, %v1211_v30 }
 0xb55   :  { %v1375_v36 = vpop.xlane.xlu1 %1374 }
 0xb56   :  { %v1213_v37 = vadd.f32 %v2241_v28, %v1212_v32  ;;  %2242 = vrcp.f32 %v1375_v36  ;;  %v1387_v52 = vand.u32 2147483648, %v1375_v36  ;;  %vm1381_vm9 = vweird.f32 %v1375_v36 }
 0xb57   :  { %2244 = vrcp.f32 %v2832_v34 }
 0xb58   :  { %v1217_v16 = vsel %vm1216_vm3, %v2241_v28, %v1213_v37  ;;  %v1388_v35 = vor.u32 1.1754944e-38, %v1387_v52 }
 0xb59   :  { %v1222_v39 = vsel %vm1219_vm4, %v1221_v38, %v1217_v16 }
 0xb5a   :  { %v1223_v40 = vmul.f32 %v2791_v44, %v1222_v39  ;;  %v1385_v44 = vand.u32 2147483647, %v1375_v36 }
 0xb5c   :  { %v2243_v41 = vpop.eup %2242  ;;  %2115 = vmatmul.msk.f32.vlgmr.msra.gmra.mxu2 %vm149_vm1, %v1223_v40  ;;  %vm1386_vm11 = vcmp.eq.f32.partialorder %v1385_v44, 8.507059e+37 }
 0xb5d   :  { %v2837_v43 = vpop.eup %2244  ;;  %v1377_v45 = vmul.f32 %v2243_v41, %v1375_v36  ;;  %v2839_v46 = vpop.xlane.xlu0 %1457  ;;  %vm1382_vm5 = vweird.f32 %v2243_v41 }
 0xb5e   :  { %2246 = vrcp.f32 %v2839_v46  ;;  %v1534_v47 = vpop.xlane.xlu2 %1533  ;;  %v1294_v49 = vmul.f32 %v2837_v43, %v2832_v34  ;;  %vm1383_vm10 = vmor %vm1381_vm9, %vm1382_vm5  ;;  %vm1299_vm13 = vweird.f32 %v2837_v43  ;;  %vm1303_vm5 = vcmp.eq.f32.partialorder %v1302_v18, 8.507059e+37  ;;  %v2137_v18 = vld [vmem:[%s3082_s2 + $0x98] sm:$0xff] }
 0xb5f   :  { %v1378_v48 = vsub.f32 1.0, %v1377_v45  ;;  %2248 = vrcp.f32 %v1534_v47  ;;  %v1546_v5 = vand.u32 2147483648, %v1534_v47  ;;  %v1544_v42 = vand.u32 2147483647, %v1534_v47  ;;  %vm1300_vm4 = vmor %vm1298_vm2, %vm1299_vm13 }
 0xb60   :  { %v1295_v57 = vsub.f32 1.0, %v1294_v49  ;;  %vm1540_vm14 = vweird.f32 %v1534_v47  ;;  %v1470_v34 = vand.u32 2147483648, %v2839_v46  ;;  %v1468_v36 = vand.u32 2147483647, %v2839_v46 }
 0xb61   :  { %v1379_v53 = vmul.f32 %v2243_v41, %v1378_v48  ;;  %v1547_v1 = vor.u32 1.1754944e-38, %v1546_v5  ;;  %vm1545_vm3 = vcmp.eq.f32.partialorder %v1544_v42, 8.507059e+37  ;;  %v2148_v5 = vld [vmem:[%s3082_s2 + $0xf0] sm:$0xff]  ;;  %v2146_v42 = vld [vmem:[%s3082_s2 + $0xe0] sm:$0xff] }
 0xb62   :  { %v1296_v13 = vmul.f32 %v2837_v43, %v1295_v57 }
 0xb63   :  { %v1380_v55 = vadd.f32 %v2243_v41, %v1379_v53 }
 0xb64   :  { %v2844_v56 = vpop.eup %2246  ;;  %v1297_v10 = vadd.f32 %v2837_v43, %v1296_v13 }
 0xb65   :  { %v2249_v54 = vpop.eup %2248  ;;  %v1384_v7 = vsel %vm1383_vm10, %v2243_v41, %v1380_v55  ;;  %v1460_v0 = vmul.f32 %v2844_v56, %v2839_v46  ;;  %vm1465_vm9 = vweird.f32 %v2844_v56  ;;  %vm1464_vm10 = vweird.f32 %v2839_v46 }
 0xb66   :  { %v1389_v61 = vsel %vm1386_vm11, %v1388_v35, %v1384_v7  ;;  %v1536_v62 = vmul.f32 %v2249_v54, %v1534_v47  ;;  %v2846_v63 = vpop.xlane.xlu2 %1617  ;;  %vm1541_vm12 = vweird.f32 %v2249_v54  ;;  %v1301_v24 = vsel %vm1300_vm4, %v2837_v43, %v1297_v10  ;;  %vm2876_vm11 = vmor %vm1464_vm10, %vm1465_vm9  ;;  %v2145_v10 = vld [vmem:[%s3082_s2 + $0xd8] sm:$0xff] }
 0xb67   :  { %2250 = vrcp.f32 %v2846_v63  ;;  %v1390_v4 = vmul.f32 %v2799_v58, %v1389_v61  ;;  %v1461_v11 = vsub.f32 1.0, %v1460_v0  ;;  %vm1542_vm15 = vmor %vm1540_vm14, %vm1541_vm12  ;;  %v1306_v30 = vsel %vm1303_vm5, %v1305_v29, %v1301_v24 }
 0xb68   :  { %v1537_v2 = vsub.f32 1.0, %v1536_v62  ;;  %v1307_v38 = vmul.f32 %v2795_v51, %v1306_v30  ;;  %v1471_v43 = vor.u32 1.1754944e-38, %v1470_v34  ;;  %vm1469_vm12 = vcmp.eq.f32.partialorder %v1468_v36, 8.507059e+37 }
 0xb69   :  { %2121 = vmatmul.msk.f32.vlgmr.msrb.gmra.mxu2 %vm149_vm1, %v1390_v4  ;;  %v1462_v25 = vmul.f32 %v2844_v56, %v1461_v11  ;;  %vm1624_vm2 = vweird.f32 %v2846_v63  ;;  %v1630_v53 = vand.u32 2147483648, %v2846_v63  ;;  %v2144_v11 = vld [vmem:[%s3082_s2 + $0xd0] sm:$0xff] }
 0xb6a   :  { %v1538_v8 = vmul.f32 %v2249_v54, %v1537_v2 }
 0xb6b   :  { %v1463_v31 = vadd.f32 %v2844_v56, %v1462_v25  ;;  %v1631_v7 = vor.u32 1.1754944e-38, %v1630_v53  ;;  %v2152_v53 = vld [vmem:[%s3083_s3 + $0x30] sm:$0xff] }
 0xb6c   :  { %v1539_v12 = vadd.f32 %v2249_v54, %v1538_v8  ;;  %v2147_v8 = vld [vmem:[%s3082_s2 + $0xe8] sm:$0xff] }
 0xb6d   :  { %v2856_v14 = vpop.eup %2250  ;;  %v1168_v58 = vpop.f32.mrf.mxu0  ;;  %v1467_v39 = vsel %vm2876_vm11, %v2844_v56, %v1463_v31 }
 0xb6e   :  { %v1552_v17 = vpop.permute.xlu1 %1551  ;;  %v1543_v19 = vsel %vm1542_vm15, %v2249_v54, %v1539_v12  ;;  %1171 = vst.msk [vmem:[#allocation2] sm:$0xff] %vm45_vm0, %v1168_v58  ;;  %v1701_v3 = vpop.xlane.xlu2 %1700  ;;  %v1620_v26 = vmul.f32 %v2856_v14, %v2846_v63  ;;  %v1472_v48 = vsel %vm1469_vm12, %v1471_v43, %v1467_v39  ;;  %vm1625_vm14 = vweird.f32 %v2856_v14  ;;  %v2143_v12 = vld [vmem:[%s3082_s2 + $0xc8] sm:$0xff] }
 0xb6f   :  { %1572 = vmatpush.msra.mxu2 %v1552_v17  ;;  %v1548_v20 = vsel %vm1545_vm3, %v1547_v1, %v1543_v19  ;;  %2252 = vrcp.f32 %v1701_v3  ;;  %v1713_v45 = vand.u32 2147483648, %v1701_v3  ;;  %v1711_v47 = vand.u32 2147483647, %v1701_v3  ;;  %vm1626_vm5 = vmor %vm1624_vm2, %vm1625_vm14  ;;  %v2140_v1 = vld [vmem:[%s3082_s2 + $0xb0] sm:$0xff]  ;;  %v2139_v58 = vld [vmem:[%s3082_s2 + $0xa8] sm:$0xff] }
 0xb70   :  { %v1718_v27 = vpop.permute.xlu0 %1717  ;;  %v1549_v28 = vmul.f32 %v2805_v9, %v1548_v20  ;;  %v1621_v32 = vsub.f32 1.0, %v1620_v26  ;;  %vm1707_vm15 = vweird.f32 %v1701_v3  ;;  %v1473_v56 = vmul.f32 %v2803_v6, %v1472_v48  ;;  %v2138_v17 = vld [vmem:[%s3082_s2 + $0xa0] sm:$0xff]  ;;  %v2136_v19 = vld [vmem:[%s3082_s2 + $0x90] sm:$0xff] }
 0xb71   :  { %1738 = vmatpush.msrb.mxu2 %v1718_v27  ;;  %v1714_v44 = vor.u32 1.1754944e-38, %v1713_v45  ;;  %vm1712_vm4 = vcmp.eq.f32.partialorder %v1711_v47, 8.507059e+37  ;;  %v2134_v20 = vld [vmem:[%s3082_s2 + $0x80] sm:$0xff] }
 0xb72   :  { %2127 = vmatmul.msk.f32.vlgmr.msra.gmra.mxu2 %vm149_vm1, %v1549_v28  ;;  %v1622_v40 = vmul.f32 %v2856_v14, %v1621_v32  ;;  %v2962_v32 = vld [vmem:[%s3085_s5 + $0x8] sm:$0xff] }
 0xb74   :  { %v1623_v49 = vadd.f32 %v2856_v14, %v1622_v40 }
 0xb75   :  { %v2253_v33 = vpop.eup %2252 }
 0xb76   :  { %v1703_v37 = vmul.f32 %v2253_v33, %v1701_v3  ;;  %v1309_v9 = vpop.permute.xlu2 %1308  ;;  %v1635_v46 = vpop.permute.xlu1 %1634  ;;  %vm1708_vm13 = vweird.f32 %v2253_v33  ;;  %v1627_v35 = vsel %vm1626_vm5, %v2856_v14, %v1623_v49  ;;  %v2142_v14 = vld [vmem:[%s3082_s2 + $0xc0] sm:$0xff]  ;;  %v2135_v3 = vld [vmem:[%s3082_s2 + $0x88] sm:$0xff]  ;;  %vm1996_vm5 = vcmask 1040384  }
 0xb77   :  { %1329 = vmatpush.msrb.mxu0 %v1309_v9  ;;  %vm1709_vm3 = vmor %vm1707_vm15, %vm1708_vm13 }
 0xb78   :  { %v1704_v41 = vsub.f32 1.0, %v1703_v37  ;;  %2118 = vmatmul.msk.f32.vlgmr.msrb.gmra.mxu0 %vm149_vm1, %v1307_v38 }
 0xb79   :  { %1492 = vmatpush.msra.mxu0 %v2820_v23  ;;  %v1628_v23 = vand.u32 2147483647, %v2846_v63 }
 0xb7a   :  { %v1705_v51 = vmul.f32 %v2253_v33, %v1704_v41 }
 0xb7b   :  { %1655 = vmatpush.msrb.mxu0 %v1635_v46  ;;  %vm1629_vm9 = vcmp.eq.f32.partialorder %v1628_v23, 8.507059e+37  ;;  %v2150_v23 = vld [vmem:[%s3083_s3 + $0x20] sm:$0xff] }
 0xb7c   :  { %v1706_v52 = vadd.f32 %v2253_v33, %v1705_v51  ;;  %v1632_v61 = vsel %vm1629_vm9, %v1631_v7, %v1627_v35  ;;  %v2171_v7 = vld [vmem:[%s3084_s4 + $0xf8] sm:$0xff]  ;;  %vm2029_vm9 = vcmask 58368  }
 0xb7d   :  { %v1633_v62 = vmul.f32 %v2814_v21, %v1632_v61  ;;  %v2149_v21 = vld [vmem:[%s3082_s2 + $0xf8] sm:$0xff]  ;;  %v2170_v61 = vld [vmem:[%s3084_s4 + $0xf0] sm:$0xff]  ;;  %1898 = vmatpush.msra.mxu1 %v2171_v7 }
 0xb7e   :  { %v1710_v55 = vsel %vm1709_vm3, %v2253_v33, %v1706_v52  ;;  %1768 = vmatpush.msrb.mxu3 %v2149_v21  ;;  %v1767_v33 = vperm.slane %v2962_v32, 0  ;;  %v2153_v52 = vld [vmem:[%s3083_s3 + $0x38] sm:$0xff] }
 0xb7f   :  { %v1715_v57 = vsel %vm1712_vm4, %v1714_v44, %v1710_v55  ;;  %v2151_v44 = vld [vmem:[%s3083_s3 + $0x28] sm:$0xff]  ;;  %1899 = vmatpush.msra.mxu1 %v2170_v61  ;;  %v2167_v21 = vld [vmem:[%s3084_s4 + $0xd8] sm:$0xff] }
 0xb80   :  { %2124 = vmatmul.msk.f32.vlgmr.msra.gmra.mxu0 %vm149_vm1, %v1473_v56  ;;  %v1716_v54 = vmul.f32 %v2818_v22, %v1715_v57  ;;  %1769 = vmatpush.msrb.mxu3 %v2148_v5 }
 0xb81   :  { %1867 = vmatpush.msra.mxu0 %v2153_v52 }
 0xb82   :  { %2133 = vmatmul.msk.f32.vlgmr.msrb.gmra.mxu2 %vm149_vm1, %v1716_v54  ;;  %1770 = vmatpush.msrb.mxu3 %v2147_v8  ;;  %v2166_v8 = vld [vmem:[%s3084_s4 + $0xd0] sm:$0xff] }
 0xb83   :  { %1868 = vmatpush.msra.mxu0 %v2152_v53 }
 0xb84   :  { %1771 = vmatpush.msrb.mxu3 %v2146_v42  ;;  %v1837_v42 = vperm.slane %v2962_v32, 1 }
 0xb85   :  { %1869 = vmatpush.msra.mxu0 %v2151_v44 }
 0xb86   :  { %1772 = vmatpush.msrb.mxu3 %v2145_v10 }
 0xb87   :  { %1870 = vmatpush.msra.mxu0 %v2150_v23 }
 0xb88   :  { %2130 = vmatmul.msk.f32.vlgmr.msrb.gmra.mxu0 %vm149_vm1, %v1633_v62  ;;  %1773 = vmatpush.msrb.mxu3 %v2144_v11  ;;  %v2165_v11 = vld [vmem:[%s3084_s4 + $0xc8] sm:$0xff] }
 0xb8a   :  { %1774 = vmatpush.msrb.mxu3 %v2143_v12 }
 0xb8c   :  { %1775 = vmatpush.msrb.mxu3 %v2142_v14  ;;  %v1840_v14 = vperm.slane %v2962_v32, 2 }
 0xb8e   :  { %1776 = vmatpush.msrb.mxu3 %v2141_v15  ;;  %v2164_v15 = vld [vmem:[%s3084_s4 + $0xc0] sm:$0xff] }
 0xb90   :  { %1777 = vmatpush.msrb.mxu3 %v2140_v1 }
 0xb92   :  { %1778 = vmatpush.msrb.mxu3 %v2139_v58 }
 0xb94   :  { %1779 = vmatpush.msrb.mxu3 %v2138_v17  ;;  %v2163_v17 = vld [vmem:[%s3084_s4 + $0xb8] sm:$0xff] }
 0xb96   :  { %1780 = vmatpush.msrb.mxu3 %v2137_v18 }
 0xb98   :  { %1781 = vmatpush.msrb.mxu3 %v2136_v19 }
 0xb9a   :  { %1782 = vmatpush.msrb.mxu3 %v2135_v3  ;;  %v2162_v3 = vld [vmem:[%s3084_s4 + $0xb0] sm:$0xff] }
 0xb9c   :  { %1783 = vmatpush.msrb.mxu3 %v2134_v20 }
 0xbdf   :  { %v1248_v63 = vpop.f32.mrf.mxu2 }
 0xbe0   :  { %1252 = vrot.lane.b32.xlu0 %v1248_v63, %s2296_s12  ;;  %v2169_v63 = vld [vmem:[%s3084_s4 + $0xe8] sm:$0xff] }
 0xbe1   :  { %1900 = vmatpush.msra.mxu1 %v2169_v63 }
 0xbec   :  { %v1414_v6 = vpop.f32.mrf.mxu2 }
 0xbed   :  { %1418 = vrot.lane.b32.xlu2 %v1414_v6, %s2295_s0 }
 0xbf5   :  { %v1574_v13 = vpop.f32.mrf.mxu2  ;;  %v1331_v0 = vpop.f32.mrf.mxu0 }
 0xbf6   :  { %1578 = vrot.lane.b32.xlu0 %v1574_v13, %s2296_s12  ;;  %1335 = vrot.lane.b32.xlu1 %v1331_v0, %s2294_s11  ;;  %s2299_s12 = smov [#allocation3]  }
 0xbf7   :  { %s2048_s14 = sshll.u32 %s2299_s12, 4  ;;  %s2049_s14 = int_to_ptr.vmem [resolvable:$true] %s2048_s14 }
 0xbfd   :  { %v1494_v22 = vpop.f32.mrf.mxu0 }
 0xbfe   :  { %1497 = vst.msk [vmem:[#allocation2 + $0x8] sm:$0xff] %vm45_vm0, %v1494_v22  ;;  %v2168_v22 = vld [vmem:[%s3084_s4 + $0xe0] sm:$0xff] }
 0xbff   :  { %1901 = vmatpush.msra.mxu1 %v2168_v22 }
 0xc01   :  { %1902 = vmatpush.msra.mxu1 %v2167_v21 }
 0xc03   :  { %1903 = vmatpush.msra.mxu1 %v2166_v8  ;;  %v1999_v8 = vld [vmem:[%s3086_s6 + $0x8] sm:$0xff] }
 0xc05   :  { %v1657_v2 = vpop.f32.mrf.mxu0  ;;  %v1740_v4 = vpop.f32.mrf.mxu2  ;;  %1904 = vmatpush.msra.mxu1 %v2165_v11  ;;  %v1998_v11 = vld [vmem:[%s3086_s6] sm:$0xff] }
 0xc06   :  { %1744 = vrot.lane.b32.xlu2 %v1740_v4, %s2295_s0  ;;  %1661 = vrot.lane.b32.xlu1 %v1657_v2, %s2294_s11 }
 0xc07   :  { %1905 = vmatpush.msra.mxu1 %v2164_v15 }
 0xc09   :  { %1906 = vmatpush.msra.mxu1 %v2163_v17  ;;  %v1970_v17 = vperm.slane %v2962_v32, 6 }
 0xc0b   :  { %1907 = vmatpush.msra.mxu1 %v2162_v3 }
 0xc47   :  { %v1419_v27 = vpop.permute.xlu2 %1418 }
 0xc52   :  { %v1253_v24 = vpop.permute.xlu0 %1252 }
 0xc53   :  { %1255 = vst.msk [vmem:[#allocation2] sm:$0xff] %vm281_vm6, %v1253_v24  ;;  %v2161_v24 = vld [vmem:[%s3084_s4 + $0xa8] sm:$0xff] }
 0xc54   :  { %1908 = vmatpush.msra.mxu1 %v2161_v24 }
 0xc60   :  { %v1745_v30 = vpop.permute.xlu2 %1744 }
 0xc68   :  { %v1579_v25 = vpop.permute.xlu0 %1578  ;;  %v1336_v26 = vpop.permute.xlu1 %1335 }
 0xc69   :  { %1581 = vst.msk [vmem:[#allocation2 + $0x8] sm:$0xff] %vm281_vm6, %v1579_v25 }
 0xc6a   :  { %1338 = vst.msk [vmem:[#allocation2] sm:$0xff] %vm365_vm7, %v1336_v26  ;;  %v2160_v26 = vld [vmem:[%s3084_s4 + $0xa0] sm:$0xff] }
 0xc6b   :  { %1421 = vst.msk [vmem:[#allocation2] sm:$0xff] %vm449_vm8, %v1419_v27  ;;  %1909 = vmatpush.msra.mxu1 %v2160_v26 }
 0xc72   :  { %v1748_v28 = vld [vmem:[#allocation2] sm:$0xff] }
 0xc73   :  { %1784 = vmatmul.f32.vlgmr.msrb.gmra.mxu3 %v1748_v28  ;;  %v2159_v28 = vld [vmem:[%s3084_s4 + $0x98] sm:$0xff] }
 0xc74   :  { %1910 = vmatpush.msra.mxu1 %v2159_v28 }
 0xc78   :  { %v1662_v29 = vpop.permute.xlu1 %1661 }
 0xc79   :  { %1664 = vst.msk [vmem:[#allocation2 + $0x8] sm:$0xff] %vm365_vm7, %v1662_v29 }
 0xc7a   :  { %1747 = vst.msk [vmem:[#allocation2 + $0x8] sm:$0xff] %vm449_vm8, %v1745_v30 }
 0xc81   :  { %v1749_v31 = vld [vmem:[#allocation2 + $0x8] sm:$0xff] }
 0xc82   :  { %1787 = vmatmul.f32.gmra.mxu3 %v1749_v31 }
 0xcf6   :  { %v1785_v34 = vpop.f32.mrf.mxu3 }
 0xcf7   :  { %v1786_v36 = vadd.f32 %v1785_v34, %v1767_v33 }
 0xcf9   :  { %v1791_v37 = vadd.f32 %v1786_v36, %v2724_v50  ;;  %v2158_v36 = vld [vmem:[%s3084_s4 + $0x90] sm:$0xff] }
 0xcfa   :  { %1911 = vmatpush.msra.mxu1 %v2158_v36 }
 0xcfb   :  { %v1793_v9 = vsel %vm45_vm0, %v1791_v37, 0.0 }
 0xcfc   :  { %1794 = vadd.xlane.f32.xlu0 %v1793_v9  ;;  %v2156_v9 = vld [vmem:[%s3084_s4 + $0x80] sm:$0xff] }
 0xd05   :  { %v1788_v38 = vpop.f32.mrf.mxu3 }
 0xd06   :  { %v1789_v16 = vadd.f32 %v1788_v38, %v1767_v33  ;;  %v1848_v38 = vperm.slane %v2962_v32, 3 }
 0xd08   :  { %v1792_v39 = vadd.f32 %v1789_v16, %v2731_v59 }
 0xd0a   :  { %v1796_v40 = vsel %vm45_vm0, %v1792_v39, 0.0 }
 0xd0b   :  { %1797 = vadd.xlane.f32.xlu1 %v1796_v40 }
 0xd6f   :  { %v1795_v41 = vpop.xlane.xlu0 %1794 }
 0xd70   :  { %v1799_v43 = vmul.f32 %v1795_v41, %v2595_v60 }
 0xd72   :  { %v1801_v45 = vsub.f32 %v1791_v37, %v1799_v43  ;;  %v2157_v37 = vld [vmem:[%s3084_s4 + $0x88] sm:$0xff] }
 0xd73   :  { %1912 = vmatpush.msra.mxu1 %v2157_v37 }
 0xd74   :  { %v1803_v46 = vmul.f32 %v1801_v45, %v1801_v45 }
 0xd75   :  { %1913 = vmatpush.msra.mxu1 %v2156_v9 }
 0xd76   :  { %v1805_v51 = vsel %vm45_vm0, %v1803_v46, 0.0  ;;  %v1897_v46 = vperm.slane %v2962_v32, 4 }
 0xd77   :  { %1806 = vadd.xlane.f32.xlu2 %v1805_v51 }
 0xd7e   :  { %v1798_v47 = vpop.xlane.xlu1 %1797 }
 0xd7f   :  { %v1800_v50 = vmul.f32 %v1798_v47, %v2595_v60 }
 0xd81   :  { %v2972_v48 = vsub.f32 %v1792_v39, %v1800_v50 }
 0xd83   :  { %v1804_v49 = vmul.f32 %v2972_v48, %v2972_v48 }
 0xd85   :  { %v1808_v59 = vsel %vm45_vm0, %v1804_v49, 0.0 }
 0xd86   :  { %1809 = vadd.xlane.f32.xlu0 %v1808_v59 }
 0xdea   :  { %v1807_v55 = vpop.xlane.xlu2 %1806 }
 0xdeb   :  { %v1811_v56 = vmul.f32 %v1807_v55, %v2595_v60 }
 0xded   :  { %v1813_v57 = vadd.f32 1e-05, %v1811_v56 }
 0xdef   :  { %2254 = vrsqrt.f32 %v1813_v57  ;;  %vm1821_vm6 = vweird.f32 %v1813_v57 }
 0xdf5   :  { %v2255_v35 = vpop.eup %2254 }
 0xdf6   :  { %v1816_v54 = vmul.f32 %v2255_v35, %v1813_v57  ;;  %vm1822_vm1 = vweird.f32 %v2255_v35 }
 0xdf7   :  { %vm1823_vm7 = vmor %vm1821_vm6, %vm1822_vm1 }
 0xdf8   :  { %v1817_v62 = vmul.f32 %v2255_v35, %v1816_v54 }
 0xdf9   :  { %v1810_v6 = vpop.xlane.xlu0 %1809 }
 0xdfa   :  { %v1818_v13 = vmul.f32 0.5, %v1817_v62  ;;  %v1812_v0 = vmul.f32 %v1810_v6, %v2595_v60 }
 0xdfc   :  { %v1819_v2 = vsub.f32 1.5, %v1818_v13  ;;  %v1814_v4 = vadd.f32 1e-05, %v1812_v0 }
 0xdfe   :  { %v1820_v5 = vmul.f32 %v2255_v35, %v1819_v2  ;;  %2256 = vrsqrt.f32 %v1814_v4  ;;  %vm1831_vm10 = vweird.f32 %v1814_v4  ;;  %v2001_v2 = vld [vmem:[%s3086_s6 + $0x18] sm:$0xff] }
 0xdff   :  { %2021 = vmatpush.msra.mxu2 %v2001_v2 }
 0xe00   :  { %v1824_v10 = vsel %vm1823_vm7, %v2255_v35, %v1820_v5 }
 0xe01   :  { %v1835_v12 = vmul.f32 %v1824_v10, %v1801_v45 }
 0xe03   :  { %v1838_v1 = vmul.f32 %v1837_v42, %v1835_v12 }
 0xe04   :  { %v2257_v58 = vpop.eup %2256 }
 0xe05   :  { %v1826_v18 = vmul.f32 %v2257_v58, %v1814_v4  ;;  %v1841_v19 = vadd.f32 %v1840_v14, %v1838_v1  ;;  %vm1832_vm8 = vweird.f32 %v2257_v58  ;;  %v2000_v4 = vld [vmem:[%s3086_s6 + $0x10] sm:$0xff]  ;;  %v1967_v1 = vperm.slane %v2962_v32, 5 }
 0xe06   :  { %vm1833_vm11 = vmor %vm1831_vm10, %vm1832_vm8  ;;  %2022 = vmatpush.msra.mxu2 %v2000_v4 }
 0xe07   :  { %v1827_v20 = vmul.f32 %v2257_v58, %v1826_v18  ;;  %2154 = vmatmul.msk.f32.vlgmr.msra.gmra.mxu0 %vm45_vm0, %v1841_v19 }
 0xe08   :  { %2023 = vmatpush.msra.mxu2 %v1999_v8 }
 0xe09   :  { %v1828_v25 = vmul.f32 0.5, %v1827_v20 }
 0xe0a   :  { %2024 = vmatpush.msra.mxu2 %v1998_v11 }
 0xe0b   :  { %v1829_v27 = vsub.f32 1.5, %v1828_v25  ;;  %v2298_v25 = vmov 8.0  }
 0xe0d   :  { %v1830_v29 = vmul.f32 %v2257_v58, %v1829_v27 }
 0xe0f   :  { %v1834_v30 = vsel %vm1833_vm11, %v2257_v58, %v1830_v29 }
 0xe10   :  { %v1836_v31 = vmul.f32 %v1834_v30, %v2972_v48 }
 0xe12   :  { %v1839_v33 = vmul.f32 %v1837_v42, %v1836_v31 }
 0xe14   :  { %v1842_v34 = vadd.f32 %v1840_v14, %v1839_v33 }
 0xe16   :  { %2155 = vmatmul.msk.f32.gmra.mxu0 %vm45_vm0, %v1842_v34 }
 0xe84   :  { %v1872_v16 = vpop.f32.mrf.mxu0 }
 0xe85   :  { %v1873_v39 = vadd.f32 %v1872_v16, %v1848_v38 }
 0xe87   :  { %v1878_v40 = vmax.f32 %v1873_v39, 0.0 }
 0xe89   :  { %1914 = vmatmul.f32.vlgmr.msra.gmra.mxu1 %v1878_v40 }
 0xe93   :  { %v1875_v41 = vpop.f32.mrf.mxu0 }
 0xe94   :  { %v1876_v43 = vadd.f32 %v1875_v41, %v1848_v38 }
 0xe96   :  { %v1879_v45 = vmax.f32 %v1876_v43, 0.0 }
 0xe98   :  { %1917 = vmatmul.f32.gmra.mxu1 %v1879_v45 }
 0xf06   :  { %v1915_v51 = vpop.f32.mrf.mxu1 }
 0xf07   :  { %v1916_v47 = vadd.f32 %v1915_v51, %v1897_v46 }
 0xf09   :  { %v1921_v50 = vadd.f32 %v1916_v47, %v1841_v19 }
 0xf0b   :  { %v1923_v48 = vsel %vm45_vm0, %v1921_v50, 0.0 }
 0xf0c   :  { %1924 = vadd.xlane.f32.xlu1 %v1923_v48 }
 0xf15   :  { %v1918_v49 = vpop.f32.mrf.mxu1 }
 0xf16   :  { %v1919_v59 = vadd.f32 %v1918_v49, %v1897_v46 }
 0xf18   :  { %v1922_v52 = vadd.f32 %v1919_v59, %v1842_v34 }
 0xf1a   :  { %v1926_v53 = vsel %vm45_vm0, %v1922_v52, 0.0 }
 0xf1b   :  { %1927 = vadd.xlane.f32.xlu2 %v1926_v53 }
 0xf7f   :  { %v1925_v44 = vpop.xlane.xlu1 %1924 }
 0xf80   :  { %v1929_v23 = vmul.f32 %v1925_v44, %v2595_v60 }
 0xf82   :  { %v1931_v55 = vsub.f32 %v1921_v50, %v1929_v23 }
 0xf84   :  { %v1933_v56 = vmul.f32 %v1931_v55, %v1931_v55 }
 0xf86   :  { %v1935_v57 = vsel %vm45_vm0, %v1933_v56, 0.0 }
 0xf87   :  { %1936 = vadd.xlane.f32.xlu0 %v1935_v57 }
 0xf8e   :  { %v1928_v35 = vpop.xlane.xlu2 %1927 }
 0xf8f   :  { %v1930_v54 = vmul.f32 %v1928_v35, %v2595_v60 }
 0xf91   :  { %v1932_v7 = vsub.f32 %v1922_v52, %v1930_v54 }
 0xf93   :  { %v1934_v61 = vmul.f32 %v1932_v7, %v1932_v7 }
 0xf95   :  { %v1938_v62 = vsel %vm45_vm0, %v1934_v61, 0.0 }
 0xf96   :  { %1939 = vadd.xlane.f32.xlu1 %v1938_v62 }
 0xffa   :  { %v1937_v63 = vpop.xlane.xlu0 %1936 }
 0xffb   :  { %v1941_v6 = vmul.f32 %v1937_v63, %v2595_v60 }
 0xffd   :  { %v1943_v13 = vadd.f32 1e-05, %v1941_v6 }
 0xfff   :  { %2258 = vrsqrt.f32 %v1943_v13  ;;  %vm1951_vm13 = vweird.f32 %v1943_v13 }
0x1005   :  { %v2259_v0 = vpop.eup %2258 }
0x1006   :  { %v1946_v22 = vmul.f32 %v2259_v0, %v1943_v13  ;;  %vm1952_vm12 = vweird.f32 %v2259_v0 }
0x1007   :  { %vm1953_vm14 = vmor %vm1951_vm13, %vm1952_vm12 }
0x1008   :  { %v1947_v21 = vmul.f32 %v2259_v0, %v1946_v22 }
0x1009   :  { %v1940_v5 = vpop.xlane.xlu1 %1939 }
0x100a   :  { %v1948_v42 = vmul.f32 0.5, %v1947_v21  ;;  %v1942_v10 = vmul.f32 %v1940_v5, %v2595_v60 }
0x100c   :  { %v1949_v12 = vsub.f32 1.5, %v1948_v42  ;;  %v1944_v14 = vadd.f32 1e-05, %v1942_v10 }
0x100e   :  { %v1950_v15 = vmul.f32 %v2259_v0, %v1949_v12  ;;  %2260 = vrsqrt.f32 %v1944_v14  ;;  %vm1961_vm2 = vweird.f32 %v1944_v14 }
0x100f   :  { %2262 = vrcp.f32 %v2298_v25 }
0x1010   :  { %v1954_v58 = vsel %vm1953_vm14, %v2259_v0, %v1950_v15 }
0x1011   :  { %v1965_v60 = vmul.f32 %v1954_v58, %v1931_v55  ;;  %v2179_v55 = vld [vmem:[%s3087_s7] ss:$0 sm:$0xff] }
0x1013   :  { %v1968_v18 = vmul.f32 %v1967_v1, %v1965_v60 }
0x1014   :  { %v2261_v19 = vpop.eup %2260 }
0x1015   :  { %v1971_v3 = vadd.f32 %v1970_v17, %v1968_v18  ;;  %v1956_v20 = vmul.f32 %v2261_v19, %v1944_v14  ;;  %vm1962_vm15 = vweird.f32 %v2261_v19  ;;  %v2263_v30 = vpop.eup %2262 }
0x1016   :  { %vm1963_vm3 = vmor %vm1961_vm2, %vm1962_vm15  ;;  %v1981_v36 = vmul.f32 8.0, %v2263_v30  ;;  %vm1985_vm4 = vweird.f32 %v2263_v30 }
0x1017   :  { %v1957_v24 = vmul.f32 %v2261_v19, %v1956_v20  ;;  %v1973_v26 = vsel %vm45_vm0, %v1971_v3, 0.0 }
0x1018   :  { %v1974_v28 = vrot.slane %v1973_v26, 4  ;;  %v1982_v16 = vsub.f32 1.0, %v1981_v36 }
0x1019   :  { %v1958_v27 = vmul.f32 0.5, %v1957_v24 }
0x101a   :  { %v1975_v32 = vadd.f32 %v1974_v28, %v1973_v26  ;;  %v1983_v43 = vmul.f32 %v2263_v30, %v1982_v16 }
0x101b   :  { %v1959_v29 = vsub.f32 1.5, %v1958_v27 }
0x101c   :  { %v1976_v9 = vrot.slane %v1975_v32, 2  ;;  %v1984_v47 = vadd.f32 %v2263_v30, %v1983_v43 }
0x101d   :  { %v1960_v31 = vmul.f32 %v2261_v19, %v1959_v29 }
0x101e   :  { %v1977_v41 = vadd.f32 %v1976_v9, %v1975_v32  ;;  %v1986_v59 = vsel %vm1985_vm4, %v2263_v30, %v1984_v47 }
0x101f   :  { %v1964_v33 = vsel %vm1963_vm3, %v2261_v19, %v1960_v31 }
0x1020   :  { %v1966_v34 = vmul.f32 %v1964_v33, %v1932_v7  ;;  %v1978_v46 = vrot.slane %v1977_v41, 1 }
0x1022   :  { %v1969_v37 = vmul.f32 %v1967_v1, %v1966_v34  ;;  %v1979_v48 = vadd.f32 %v1978_v46, %v1977_v41 }
0x1024   :  { %v1972_v38 = vadd.f32 %v1970_v17, %v1969_v37  ;;  %v1987_v53 = vmul.f32 %v1986_v59, %v1979_v48 }
0x1026   :  { %v1988_v39 = vsel %vm45_vm0, %v1972_v38, 0.0 }
0x1027   :  { %v1989_v40 = vrot.slane %v1988_v39, 4 }
0x1029   :  { %v1990_v45 = vadd.f32 %v1989_v40, %v1988_v39 }
0x102b   :  { %v1991_v51 = vrot.slane %v1990_v45, 2 }
0x102d   :  { %v1992_v50 = vadd.f32 %v1991_v51, %v1990_v45 }
0x102f   :  { %v1993_v49 = vrot.slane %v1992_v50, 1 }
0x1031   :  { %v1994_v52 = vadd.f32 %v1993_v49, %v1992_v50 }
0x1033   :  { %v1995_v44 = vmul.f32 %v1994_v52, %v1986_v59 }
0x1035   :  { %v1997_v23 = vsel %vm1996_vm5, %v1987_v53, %v1995_v44 }
0x1036   :  { %2172 = vmatmul.msk.f32.vlgmr.msra.gmra.mxu2 %vm45_vm0, %v1997_v23 }
0x10b9   :  { %v2026_v56 = vpop.f32.mrf.mxu2 }
0x10ba   :  { %v2027_v57 = vadd.f32 %v2179_v55, %v2026_v56 }
0x10bc   :  { %v2030_v35 = vsel %vm2029_vm9, %v2027_v57, -inf }
0x10bd   :  { %2031 = vmax.xlane.f32.xlu2 %v2030_v35 }
0x1130   :  { %v2032_v54 = vpop.xlane.xlu2 %2031 }
0x1131   :  { %v2033_v7 = vsub.f32 %v2027_v57, %v2032_v54 }
0x1133   :  { %v2034_v61 = vmul.f32 1.442695, %v2033_v7 }
0x1135   :  { %2264 = vpow2.f32 %v2034_v61 }
0x113b   :  { %v2265_v62 = vpop.eup %2264 }
0x113c   :  { %v2036_v63 = vsel %vm2029_vm9, %v2265_v62, 0.0 }
0x113d   :  { %2037 = vadd.xlane.f32.xlu0 %v2036_v63 }
0x11b0   :  { %v2038_v6 = vpop.xlane.xlu0 %2037 }
0x11b1   :  { %2266 = vlog2.f32 %v2038_v6 }
0x11b7   :  { %v2267_v13 = vpop.eup %2266 }
0x11b8   :  { %v2040_v0 = vmul.f32 0.6931472, %v2267_v13 }
0x11ba   :  { %v2041_v22 = vsub.f32 %v2033_v7, %v2040_v0 }
0x11bc   :  { %2042 = vst.msk [vmem:[#allocation3] sm:$0x3] %vm2029_vm9, %v2041_v22 }
0x11bd   :  { %2053 = dma.vmem_to_hbm [thread:$0]  %s2049_s14, 32, %s2051_s16, [#allocation4]  }
0x11be   :  { %2292 = dma.done.wait [#allocation4], 32  }
0x11bf   :  { %2293 = vsyncadd [#allocation4], 4294967264 }
0x11c0   :  { %2058 = vsyncpa [#allocation4], 1 }

</bundles_post_ra>
